<compile_context>
chip_gen: v7x
topology: tpu7x:2x2x1
jax: 0.10.0
libtpu: 0.0.40
codegen_flags: <defaults>
</compile_context>

<pallas_src>
import math
import functools

import jax
import jax.numpy as jnp
from jax import lax
from jax.experimental import pallas as pl
from jax.experimental.pallas import tpu as pltpu

LN_EPS = 1e-5
LANE = 128

# Row layout of the packed (8, out_p) per-feature-vector block.
_ROW_B1, _ROW_G1, _ROW_BE1, _ROW_B2, _ROW_G2, _ROW_BE2, _ROW_BS = range(7)


def _round_up(n, m):
    return ((n + m - 1) // m) * m


@functools.lru_cache(maxsize=1)
def _chip_info():
    """(vmem_capacity_bytes, tensorcores_per_chip) with conservative fallbacks."""
    vmem_cap = 64 * 1024 * 1024      # conservative default (v7x per-core)
    num_cores = 1
    try:
        info = pltpu.get_tpu_info()
        cap = getattr(info, "vmem_capacity_bytes", None)
        if cap:
            vmem_cap = int(cap)
        for attr in ("tensorcores_per_chip", "num_tensorcores",
                     "num_cores", "core_count"):
            v = getattr(info, attr, None)
            if v:
                num_cores = int(v)
                break
    except Exception:
        pass
    return vmem_cap, num_cores


def _gelu(x, approximate):
    if approximate:
        # tanh approximation rides the EUP; numerics differ slightly from
        # PyTorch's default -> opt-in only.
        return jax.nn.gelu(x, approximate=True)
    # PyTorch nn.GELU() default: exact erf formulation.
    return 0.5 * x * (1.0 + lax.erf(x * (1.0 / math.sqrt(2.0))))


def _layernorm(x, gamma, beta, n):
    # Single-pass mean / variance; `n` is the real (unpadded) feature count.
    # Padded columns are exactly zero, so sums over the padded width equal
    # sums over the real width.  Variance clamped at 0 (cancellation guard).
    inv_n = 1.0 / n
    s = jnp.sum(x, axis=-1, keepdims=True)
    ss = jnp.sum(x * x, axis=-1, keepdims=True)
    mean = s * inv_n
    var = jnp.maximum(ss * inv_n - mean * mean, 0.0)
    inv = lax.rsqrt(var + LN_EPS)
    # gamma/beta are zero in padded columns -> padded outputs stay exactly 0.
    return (x - mean) * inv * gamma + beta


def _residual_block_kernel(*refs, out_dim, has_proj, approx_gelu):
    if has_proj:
        x_ref, w1_ref, w2_ref, ws_ref, vec_ref, o_ref = refs
    else:
        x_ref, w1_ref, w2_ref, vec_ref, o_ref = refs
        ws_ref = None

    vecs = vec_ref[...]                                     # (8, out_p) f32
    b1 = vecs[_ROW_B1:_ROW_B1 + 1]
    g1 = vecs[_ROW_G1:_ROW_G1 + 1]
    be1 = vecs[_ROW_BE1:_ROW_BE1 + 1]
    b2 = vecs[_ROW_B2:_ROW_B2 + 1]
    g2 = vecs[_ROW_G2:_ROW_G2 + 1]
    be2 = vecs[_ROW_BE2:_ROW_BE2 + 1]

    x = x_ref[...]
    x_bf16 = x if x.dtype == jnp.bfloat16 else x.astype(jnp.bfloat16)

    # linear1 -> norm1 -> gelu -> (dropout = identity in eval mode)
    h = jnp.dot(x_bf16, w1_ref[...], preferred_element_type=jnp.float32) + b1
    h = _layernorm(h, g1, be1, out_dim)
    h = _gelu(h, approx_gelu)

    # linear2 -> norm2
    h = jnp.dot(h.astype(jnp.bfloat16), w2_ref[...],
                preferred_element_type=jnp.float32) + b2
    h = _layernorm(h, g2, be2, out_dim)

    # Shortcut computed late (smaller [TB, IN] live range across the middle
    # matmuls instead of the [TB, OUT] residual).
    if has_proj:
        bs = vecs[_ROW_BS:_ROW_BS + 1]
        residual = jnp.dot(x_bf16, ws_ref[...],
                           preferred_element_type=jnp.float32) + bs
    else:
        residual = x.astype(jnp.float32)         # nn.Identity shortcut (f32)

    h = _gelu(h + residual, approx_gelu)   # (dropout = identity in eval mode)
    o_ref[...] = h.astype(o_ref.dtype)


@functools.partial(
    jax.jit,
    static_argnames=("out_dim", "block_b", "approx_gelu",
                     "vmem_cap", "num_cores", "single_buffer_resident"))
def _residual_block_impl(x, w1, w2, ws, vecs, *, out_dim, block_b, approx_gelu,
                         vmem_cap, num_cores, single_buffer_resident):
    B = x.shape[0]
    in_p, out_p = w1.shape                  # padded (lane-aligned) dims
    has_proj = ws is not None
    out_dtype = x.dtype
    out_isize = jnp.dtype(out_dtype).itemsize

    # bf16 x halves its DMA/VMEM when the residual comes from the projection;
    # keep f32 when the shortcut is the identity (full-precision residual).
    xk = x.astype(jnp.bfloat16) if has_proj else x
    x_isize = jnp.dtype(xk.dtype).itemsize

    # Resident (single-buffered) bytes: weights + packed vectors.
    wgt_arrays = (w1, w2) + ((ws,) if has_proj else ())
    w_bytes = sum(int(a.size) * jnp.dtype(a.dtype).itemsize for a in wgt_arrays)
    v_bytes = int(vecs.size) * jnp.dtype(vecs.dtype).itemsize

    # Batch tiling: tile count first (no over-padding), tile size from it,
    # rounded to 8 sublanes; on multi-core chips force an even tile count so
    # the "parallel" axis load-balances.  Shrink the tile if the VMEM
    # estimate would not fit.
    vmem_budget = int(0.70 * vmem_cap)
    bb = max(8, block_b)
    while True:
        n_tiles = max(1, pl.cdiv(B, bb))
        if num_cores > 1 and B >= 8 * num_cores:
            n_tiles = _round_up(n_tiles, num_cores)
        tb = _round_up(pl.cdiv(B, n_tiles), 8)
        need = (w_bytes + v_bytes                     # resident, 1 buffer
                + 2 * tb * in_p * x_isize             # x tile, double-buffered
                + 2 * tb * out_p * out_isize          # out tile, double-buffered
                + 6 * tb * out_p * 4)                 # live f32 intermediates
        if need <= vmem_budget or tb <= 8:
            break
        bb = max(8, tb // 2)
    bp = n_tiles * tb

    xp = xk
    if xp.shape[1] != in_p:
        xp = jnp.pad(xp, ((0, 0), (0, in_p - xp.shape[1])))
    if bp != B:
        xp = jnp.pad(xp, ((0, bp - B), (0, 0)))

    def resident(shape):
        # Constant index_map -> block never changes; one buffer is enough.
        if single_buffer_resident:
            return pl.BlockSpec(shape, lambda i: (0, 0),
                                pipeline_mode=pl.Buffered(1))
        return pl.BlockSpec(shape, lambda i: (0, 0))

    x_spec = pl.BlockSpec((tb, in_p), lambda i: (i, 0))
    out_spec = pl.BlockSpec((tb, out_p), lambda i: (i, 0))

    args = [xp, w1, w2]
    in_specs = [x_spec,
                resident((in_p, out_p)),
                resident((out_p, out_p))]
    if has_proj:
        args.append(ws)
        in_specs.append(resident((in_p, out_p)))
    args.append(vecs)
    in_specs.append(resident((8, out_p)))

    vmem_limit = min(int(0.75 * vmem_cap),
                     max(int(1.3 * need), 32 * 1024 * 1024))

    flops = 2 * bp * out_p * (in_p + out_p + (in_p if has_proj else 0))
    transcendentals = 2 * bp * out_p + 2 * bp            # erf/tanh + rsqrt
    bytes_accessed = int(xp.size * x_isize + w_bytes + v_bytes
                         + bp * out_p * out_isize)

    kernel = functools.partial(_residual_block_kernel, out_dim=out_dim,
                               has_proj=has_proj, approx_gelu=approx_gelu)

    out = pl.pallas_call(
        kernel,
        out_shape=jax.ShapeDtypeStruct((bp, out_p), out_dtype),
        grid=(n_tiles,),
        in_specs=in_specs,
        out_specs=out_spec,
        compiler_params=pltpu.CompilerParams(
            dimension_semantics=("parallel",),
            vmem_limit_bytes=vmem_limit),
        cost_estimate=pl.CostEstimate(
            flops=flops, transcendentals=transcendentals,
            bytes_accessed=bytes_accessed),
    )(*args)

    return out[:B, :out_dim]


def residual_block(x, params, *, block_b=512, approx_gelu=False):
    """x: [B, in_dim] float32. params: dict from init_params()."""
    meta = params["meta"]
    vmem_cap, num_cores = _chip_info()
    call = functools.partial(
        _residual_block_impl,
        x, params["w1"], params["w2"], params.get("ws"), params["vecs"],
        out_dim=meta["out_dim"], block_b=block_b, approx_gelu=approx_gelu,
        vmem_cap=vmem_cap, num_cores=num_cores)
    try:
        return call(single_buffer_resident=True)
    except Exception:
        # Fallback if this JAX build rejects pipeline_mode=pl.Buffered(1).
        return call(single_buffer_resident=False)


def init_params(key, in_dim, out_dim, *, weight_dtype=jnp.bfloat16):
    """PyTorch-like uniform fan-in init; weights stored padded+transposed
    ([IN_pad, OUT_pad], bf16); biases/LN params packed into one (8, OUT_pad)
    f32 block (zeros in padded columns)."""
    in_p = _round_up(in_dim, LANE)
    out_p = _round_up(out_dim, LANE)
    ks = jax.random.split(key, 6)

    def linear(kw, kb, fan_in, fan_out):
        bound = 1.0 / math.sqrt(fan_in)
        w = jax.random.uniform(kw, (fan_out, fan_in), jnp.float32, -bound, bound)
        b = jax.random.uniform(kb, (fan_out,), jnp.float32, -bound, bound)
        return w, b

    def pad_w(w_t, rows, cols):  # w_t: [fan_in, fan_out]
        return jnp.pad(w_t, ((0, rows - w_t.shape[0]), (0, cols - w_t.shape[1])))

    def pad_v(v, cols):
        return jnp.pad(v, ((0, cols - v.shape[0]),))

    w1, b1 = linear(ks[0], ks[1], in_dim, out_dim)
    w2, b2 = linear(ks[2], ks[3], out_dim, out_dim)

    ones = jnp.ones((out_dim,), jnp.float32)
    zeros = jnp.zeros((out_dim,), jnp.float32)
    rows = [jnp.zeros((out_p,), jnp.float32)] * 8
    rows[_ROW_B1] = pad_v(b1, out_p)
    rows[_ROW_G1] = pad_v(ones, out_p)          # LayerNorm gamma = 1
    rows[_ROW_BE1] = pad_v(zeros, out_p)        # LayerNorm beta = 0
    rows[_ROW_B2] = pad_v(b2, out_p)
    rows[_ROW_G2] = pad_v(ones, out_p)
    rows[_ROW_BE2] = pad_v(zeros, out_p)

    params = {
        "w1": pad_w(w1.T, in_p, out_p).astype(weight_dtype),
        "w2": pad_w(w2.T, out_p, out_p).astype(weight_dtype),
        "meta": {"in_dim": in_dim, "out_dim": out_dim},
    }
    if in_dim != out_dim:
        ws, bs = linear(ks[4], ks[5], in_dim, out_dim)
        params["ws"] = pad_w(ws.T, in_p, out_p).astype(weight_dtype)
        rows[_ROW_BS] = pad_v(bs, out_p)
    # else: shortcut is nn.Identity() -> projection matmul skipped in-kernel.
    params["vecs"] = jnp.stack(rows, axis=0)    # (8, out_p) f32
    return params


def residual_block_ref(x, params, *, approx_gelu=False):
    """Pure-JAX reference of the PyTorch forward (eval mode), same precision
    policy as the kernel (bf16 matmul operands, f32 accumulation)."""
    meta = params["meta"]
    in_dim, out_dim = meta["in_dim"], meta["out_dim"]
    vecs = params["vecs"]
    w1 = params["w1"][:in_dim, :out_dim]
    w2 = params["w2"][:out_dim, :out_dim]
    b1 = vecs[_ROW_B1, :out_dim][None, :]
    g1 = vecs[_ROW_G1, :out_dim][None, :]
    be1 = vecs[_ROW_BE1, :out_dim][None, :]
    b2 = vecs[_ROW_B2, :out_dim][None, :]
    g2 = vecs[_ROW_G2, :out_dim][None, :]
    be2 = vecs[_ROW_BE2, :out_dim][None, :]

    xb = x.astype(w1.dtype)
    h = jnp.dot(xb, w1, preferred_element_type=jnp.float32) + b1
    h = _layernorm(h, g1, be1, out_dim)
    h = _gelu(h, approx_gelu)
    h = jnp.dot(h.astype(w2.dtype), w2, preferred_element_type=jnp.float32) + b2
    h = _layernorm(h, g2, be2, out_dim)
    if "ws" in params:
        ws = params["ws"][:in_dim, :out_dim]
        bs = vecs[_ROW_BS, :out_dim][None, :]
        residual = jnp.dot(xb, ws, preferred_element_type=jnp.float32) + bs
    else:
        residual = x.astype(jnp.float32)
    return _gelu(h + residual, approx_gelu)


if __name__ == "__main__":
    key = jax.random.PRNGKey(0)
    k1, k2, k3, k4 = jax.random.split(key, 4)

    # Config A: in_dim != out_dim (Linear shortcut). Unaligned feature dim
    # exercises lane padding; B not a multiple of 8*cores exercises batch
    # tiling with no over-padding.
    B, IN_DIM, OUT_DIM = 192, 192, 128
    x = jax.random.normal(k1, (B, IN_DIM), jnp.float32)
    params = init_params(k2, IN_DIM, OUT_DIM)
    out = jax.block_until_ready(residual_block(x, params))
    ref = residual_block_ref(x, params)
    assert out.shape == (B, OUT_DIM), out.shape
    assert jnp.allclose(out, ref, atol=2e-3, rtol=2e-3), \
        float(jnp.max(jnp.abs(out - ref)))

    # Config B: in_dim == out_dim -> identity shortcut (no projection matmul).
    B2, DIM = 64, 128
    x2 = jax.random.normal(k3, (B2, DIM), jnp.float32)
    params2 = init_params(k4, DIM, DIM)
    out2 = jax.block_until_ready(residual_block(x2, params2))
    ref2 = residual_block_ref(x2, params2)
    assert out2.shape == (B2, DIM), out2.shape
    assert jnp.allclose(out2, ref2, atol=2e-3, rtol=2e-3), \
        float(jnp.max(jnp.abs(out2 - ref2)))

    print("KERNEL_OK")
</pallas_src>

<mosaic_0001>
module attributes {stable_mosaic.version = 11 : i64} {
  func.func @_residual_block_kernel(%arg0: i32, %arg1: memref<192x256xbf16, #tpu.memory_space<vmem>>, %arg2: memref<256x128xbf16, #tpu.memory_space<vmem>>, %arg3: memref<128x128xbf16, #tpu.memory_space<vmem>>, %arg4: memref<256x128xbf16, #tpu.memory_space<vmem>>, %arg5: memref<8x128xf32, #tpu.memory_space<vmem>>, %arg6: memref<192x128xf32, #tpu.memory_space<vmem>>) attributes {dimension_semantics = [#tpu.dimension_semantics<parallel>], iteration_bounds = array<i64: 1>, scalar_prefetch = 0 : i64, scratch_operands = 0 : i64, tpu.core_type = #tpu.core_type<tc>, window_params = [{transform_indices = @transform_0, window_bounds = array<i64: 192, 256>}, {pipeline_mode = #tpu.pipeline_mode<synchronous>, transform_indices = @transform_1, window_bounds = array<i64: 256, 128>}, {pipeline_mode = #tpu.pipeline_mode<synchronous>, transform_indices = @transform_2, window_bounds = array<i64: 128, 128>}, {pipeline_mode = #tpu.pipeline_mode<synchronous>, transform_indices = @transform_3, window_bounds = array<i64: 256, 128>}, {pipeline_mode = #tpu.pipeline_mode<synchronous>, transform_indices = @transform_4, window_bounds = array<i64: 8, 128>}, {transform_indices = @transform_5, window_bounds = array<i64: 192, 128>}]} {
    %c0 = arith.constant 0 : index
    %c0_0 = arith.constant 0 : index
    %0 = vector.load %arg5[%c0, %c0_0] : memref<8x128xf32, #tpu.memory_space<vmem>>, vector<8x128xf32>
    %1 = vector.extract_strided_slice %0 {offsets = [0, 0], sizes = [1, 128], strides = [1, 1]} : vector<8x128xf32> to vector<1x128xf32>
    %2 = vector.extract_strided_slice %0 {offsets = [1, 0], sizes = [1, 128], strides = [1, 1]} : vector<8x128xf32> to vector<1x128xf32>
    %3 = vector.extract_strided_slice %0 {offsets = [2, 0], sizes = [1, 128], strides = [1, 1]} : vector<8x128xf32> to vector<1x128xf32>
    %4 = vector.extract_strided_slice %0 {offsets = [3, 0], sizes = [1, 128], strides = [1, 1]} : vector<8x128xf32> to vector<1x128xf32>
    %5 = vector.extract_strided_slice %0 {offsets = [4, 0], sizes = [1, 128], strides = [1, 1]} : vector<8x128xf32> to vector<1x128xf32>
    %6 = vector.extract_strided_slice %0 {offsets = [5, 0], sizes = [1, 128], strides = [1, 1]} : vector<8x128xf32> to vector<1x128xf32>
    %c0_1 = arith.constant 0 : index
    %c0_2 = arith.constant 0 : index
    %7 = vector.load %arg1[%c0_1, %c0_2] : memref<192x256xbf16, #tpu.memory_space<vmem>>, vector<192x256xbf16>
    %c0_3 = arith.constant 0 : index
    %c0_4 = arith.constant 0 : index
    %8 = vector.load %arg2[%c0_3, %c0_4] : memref<256x128xbf16, #tpu.memory_space<vmem>>, vector<256x128xbf16>
    %cst = arith.constant dense<0.000000e+00> : vector<192x128xf32>
    %9 = tpu.matmul %7, %8, %cst {dimension_numbers = #tpu.dot_dimension_numbers<[1], [0], [0], [1], [0, 0, 1, 1], [], []>} : vector<192x256xbf16>, vector<256x128xbf16>, vector<192x128xf32> -> vector<192x128xf32>
    %10 = vector.broadcast %1 : vector<1x128xf32> to vector<192x128xf32>
    %11 = arith.addf %9, %10 : vector<192x128xf32>
    %cst_5 = arith.constant dense<0.000000e+00> : vector<192xf32>
    %12 = vector.multi_reduction <add>, %11, %cst_5 [1] : vector<192x128xf32> to vector<192xf32>
    %13 = vector.shape_cast %12 : vector<192xf32> to vector<192x1xf32>
    %14 = arith.mulf %11, %11 : vector<192x128xf32>
    %cst_6 = arith.constant dense<0.000000e+00> : vector<192xf32>
    %15 = vector.multi_reduction <add>, %14, %cst_6 [1] : vector<192x128xf32> to vector<192xf32>
    %16 = vector.shape_cast %15 : vector<192xf32> to vector<192x1xf32>
    %cst_7 = arith.constant 7.812500e-03 : f32
    %17 = vector.broadcast %cst_7 : f32 to vector<192x1xf32>
    %18 = arith.mulf %13, %17 : vector<192x1xf32>
    %cst_8 = arith.constant 7.812500e-03 : f32
    %19 = vector.broadcast %cst_8 : f32 to vector<192x1xf32>
    %20 = arith.mulf %16, %19 : vector<192x1xf32>
    %21 = arith.mulf %18, %18 : vector<192x1xf32>
    %22 = arith.subf %20, %21 : vector<192x1xf32>
    %cst_9 = arith.constant 0.000000e+00 : f32
    %23 = vector.broadcast %cst_9 : f32 to vector<192x1xf32>
    %24 = arith.maximumf %22, %23 : vector<192x1xf32>
    %cst_10 = arith.constant 9.99999974E-6 : f32
    %25 = vector.broadcast %cst_10 : f32 to vector<192x1xf32>
    %26 = arith.addf %24, %25 : vector<192x1xf32>
    %27 = math.rsqrt %26 : vector<192x1xf32>
    %28 = vector.broadcast %18 : vector<192x1xf32> to vector<192x128xf32>
    %29 = arith.subf %11, %28 : vector<192x128xf32>
    %30 = vector.broadcast %27 : vector<192x1xf32> to vector<192x128xf32>
    %31 = arith.mulf %29, %30 : vector<192x128xf32>
    %32 = vector.broadcast %2 : vector<1x128xf32> to vector<192x128xf32>
    %33 = arith.mulf %31, %32 : vector<192x128xf32>
    %34 = vector.broadcast %3 : vector<1x128xf32> to vector<192x128xf32>
    %35 = arith.addf %33, %34 : vector<192x128xf32>
    %cst_11 = arith.constant 5.000000e-01 : f32
    %36 = vector.broadcast %cst_11 : f32 to vector<192x128xf32>
    %37 = arith.mulf %36, %35 : vector<192x128xf32>
    %cst_12 = arith.constant 0.707106769 : f32
    %38 = vector.broadcast %cst_12 : f32 to vector<192x128xf32>
    %39 = arith.mulf %35, %38 : vector<192x128xf32>
    %40 = math.erf %39 : vector<192x128xf32>
    %cst_13 = arith.constant 1.000000e+00 : f32
    %41 = vector.broadcast %cst_13 : f32 to vector<192x128xf32>
    %42 = arith.addf %41, %40 : vector<192x128xf32>
    %43 = arith.mulf %37, %42 : vector<192x128xf32>
    %44 = arith.truncf %43 : vector<192x128xf32> to vector<192x128xbf16>
    %c0_14 = arith.constant 0 : index
    %c0_15 = arith.constant 0 : index
    %45 = vector.load %arg3[%c0_14, %c0_15] : memref<128x128xbf16, #tpu.memory_space<vmem>>, vector<128x128xbf16>
    %cst_16 = arith.constant dense<0.000000e+00> : vector<192x128xf32>
    %46 = tpu.matmul %44, %45, %cst_16 {dimension_numbers = #tpu.dot_dimension_numbers<[1], [0], [0], [1], [0, 0, 1, 1], [], []>} : vector<192x128xbf16>, vector<128x128xbf16>, vector<192x128xf32> -> vector<192x128xf32>
    %47 = vector.broadcast %4 : vector<1x128xf32> to vector<192x128xf32>
    %48 = arith.addf %46, %47 : vector<192x128xf32>
    %cst_17 = arith.constant dense<0.000000e+00> : vector<192xf32>
    %49 = vector.multi_reduction <add>, %48, %cst_17 [1] : vector<192x128xf32> to vector<192xf32>
    %50 = vector.shape_cast %49 : vector<192xf32> to vector<192x1xf32>
    %51 = arith.mulf %48, %48 : vector<192x128xf32>
    %cst_18 = arith.constant dense<0.000000e+00> : vector<192xf32>
    %52 = vector.multi_reduction <add>, %51, %cst_18 [1] : vector<192x128xf32> to vector<192xf32>
    %53 = vector.shape_cast %52 : vector<192xf32> to vector<192x1xf32>
    %cst_19 = arith.constant 7.812500e-03 : f32
    %54 = vector.broadcast %cst_19 : f32 to vector<192x1xf32>
    %55 = arith.mulf %50, %54 : vector<192x1xf32>
    %cst_20 = arith.constant 7.812500e-03 : f32
    %56 = vector.broadcast %cst_20 : f32 to vector<192x1xf32>
    %57 = arith.mulf %53, %56 : vector<192x1xf32>
    %58 = arith.mulf %55, %55 : vector<192x1xf32>
    %59 = arith.subf %57, %58 : vector<192x1xf32>
    %cst_21 = arith.constant 0.000000e+00 : f32
    %60 = vector.broadcast %cst_21 : f32 to vector<192x1xf32>
    %61 = arith.maximumf %59, %60 : vector<192x1xf32>
    %cst_22 = arith.constant 9.99999974E-6 : f32
    %62 = vector.broadcast %cst_22 : f32 to vector<192x1xf32>
    %63 = arith.addf %61, %62 : vector<192x1xf32>
    %64 = math.rsqrt %63 : vector<192x1xf32>
    %65 = vector.broadcast %55 : vector<192x1xf32> to vector<192x128xf32>
    %66 = arith.subf %48, %65 : vector<192x128xf32>
    %67 = vector.broadcast %64 : vector<192x1xf32> to vector<192x128xf32>
    %68 = arith.mulf %66, %67 : vector<192x128xf32>
    %69 = vector.broadcast %5 : vector<1x128xf32> to vector<192x128xf32>
    %70 = arith.mulf %68, %69 : vector<192x128xf32>
    %71 = vector.broadcast %6 : vector<1x128xf32> to vector<192x128xf32>
    %72 = arith.addf %70, %71 : vector<192x128xf32>
    %73 = vector.extract_strided_slice %0 {offsets = [6, 0], sizes = [1, 128], strides = [1, 1]} : vector<8x128xf32> to vector<1x128xf32>
    %c0_23 = arith.constant 0 : index
    %c0_24 = arith.constant 0 : index
    %74 = vector.load %arg4[%c0_23, %c0_24] : memref<256x128xbf16, #tpu.memory_space<vmem>>, vector<256x128xbf16>
    %cst_25 = arith.constant dense<0.000000e+00> : vector<192x128xf32>
    %75 = tpu.matmul %7, %74, %cst_25 {dimension_numbers = #tpu.dot_dimension_numbers<[1], [0], [0], [1], [0, 0, 1, 1], [], []>} : vector<192x256xbf16>, vector<256x128xbf16>, vector<192x128xf32> -> vector<192x128xf32>
    %76 = vector.broadcast %73 : vector<1x128xf32> to vector<192x128xf32>
    %77 = arith.addf %75, %76 : vector<192x128xf32>
    %78 = arith.addf %72, %77 : vector<192x128xf32>
    %cst_26 = arith.constant 5.000000e-01 : f32
    %79 = vector.broadcast %cst_26 : f32 to vector<192x128xf32>
    %80 = arith.mulf %79, %78 : vector<192x128xf32>
    %cst_27 = arith.constant 0.707106769 : f32
    %81 = vector.broadcast %cst_27 : f32 to vector<192x128xf32>
    %82 = arith.mulf %78, %81 : vector<192x128xf32>
    %83 = math.erf %82 : vector<192x128xf32>
    %cst_28 = arith.constant 1.000000e+00 : f32
    %84 = vector.broadcast %cst_28 : f32 to vector<192x128xf32>
    %85 = arith.addf %84, %83 : vector<192x128xf32>
    %86 = arith.mulf %80, %85 : vector<192x128xf32>
    %c0_29 = arith.constant 0 : index
    %c0_30 = arith.constant 0 : index
    %87 = vector.load %arg6[%c0_29, %c0_30] : memref<192x128xf32, #tpu.memory_space<vmem>>, vector<192x128xf32>
    tpu.vector_store %arg6[%c0_29, %c0_30], %86 {strides = array<i32>} : memref<192x128xf32, #tpu.memory_space<vmem>>, vector<192x128xf32>,
    return
  }
  func.func @transform_0(%arg0: i32) -> (i32, i32) {
    %c0_i32 = arith.constant 0 : i32
    %c0_i32_0 = arith.constant 0 : i32
    return %arg0, %c0_i32 : i32, i32
  }
  func.func @transform_1(%arg0: i32) -> (i32, i32) {
    %c0_i32 = arith.constant 0 : i32
    %c0_i32_0 = arith.constant 0 : i32
    %c0_i32_1 = arith.constant 0 : i32
    return %c0_i32, %c0_i32_0 : i32, i32
  }
  func.func @transform_2(%arg0: i32) -> (i32, i32) {
    %c0_i32 = arith.constant 0 : i32
    %c0_i32_0 = arith.constant 0 : i32
    %c0_i32_1 = arith.constant 0 : i32
    return %c0_i32, %c0_i32_0 : i32, i32
  }
  func.func @transform_3(%arg0: i32) -> (i32, i32) {
    %c0_i32 = arith.constant 0 : i32
    %c0_i32_0 = arith.constant 0 : i32
    %c0_i32_1 = arith.constant 0 : i32
    return %c0_i32, %c0_i32_0 : i32, i32
  }
  func.func @transform_4(%arg0: i32) -> (i32, i32) {
    %c0_i32 = arith.constant 0 : i32
    %c0_i32_0 = arith.constant 0 : i32
    %c0_i32_1 = arith.constant 0 : i32
    return %c0_i32, %c0_i32_0 : i32, i32
  }
  func.func @transform_5(%arg0: i32) -> (i32, i32) {
    %c0_i32 = arith.constant 0 : i32
    %c0_i32_0 = arith.constant 0 : i32
    return %arg0, %c0_i32 : i32, i32
  }
}

module attributes {stable_mosaic.version = 11 : i64} {
  func.func @_residual_block_kernel(%arg0: i32, %arg1: memref<192x256xbf16, #tpu.memory_space<vmem>>, %arg2: memref<256x128xbf16, #tpu.memory_space<vmem>>, %arg3: memref<128x128xbf16, #tpu.memory_space<vmem>>, %arg4: memref<256x128xbf16, #tpu.memory_space<vmem>>, %arg5: memref<8x128xf32, #tpu.memory_space<vmem>>, %arg6: memref<192x128xf32, #tpu.memory_space<vmem>>) attributes {dimension_semantics = [#tpu.dimension_semantics<parallel>], iteration_bounds = array<i64: 1>, scalar_prefetch = 0 : i64, scratch_operands = 0 : i64, tpu.core_type = #tpu.core_type<tc>, window_params = [{transform_indices = @transform_0, window_bounds = array<i64: 192, 256>}, {pipeline_mode = #tpu.pipeline_mode<synchronous>, transform_indices = @transform_1, window_bounds = array<i64: 256, 128>}, {pipeline_mode = #tpu.pipeline_mode<synchronous>, transform_indices = @transform_2, window_bounds = array<i64: 128, 128>}, {pipeline_mode = #tpu.pipeline_mode<synchronous>, transform_indices = @transform_3, window_bounds = array<i64: 256, 128>}, {pipeline_mode = #tpu.pipeline_mode<synchronous>, transform_indices = @transform_4, window_bounds = array<i64: 8, 128>}, {transform_indices = @transform_5, window_bounds = array<i64: 192, 128>}]} {
    %c0 = arith.constant 0 : index
    %c0_0 = arith.constant 0 : index
    %0 = vector.load %arg5[%c0, %c0_0] : memref<8x128xf32, #tpu.memory_space<vmem>>, vector<8x128xf32>
    %1 = vector.extract_strided_slice %0 {offsets = [0, 0], sizes = [1, 128], strides = [1, 1]} : vector<8x128xf32> to vector<1x128xf32>
    %2 = vector.extract_strided_slice %0 {offsets = [1, 0], sizes = [1, 128], strides = [1, 1]} : vector<8x128xf32> to vector<1x128xf32>
    %3 = vector.extract_strided_slice %0 {offsets = [2, 0], sizes = [1, 128], strides = [1, 1]} : vector<8x128xf32> to vector<1x128xf32>
    %4 = vector.extract_strided_slice %0 {offsets = [3, 0], sizes = [1, 128], strides = [1, 1]} : vector<8x128xf32> to vector<1x128xf32>
    %5 = vector.extract_strided_slice %0 {offsets = [4, 0], sizes = [1, 128], strides = [1, 1]} : vector<8x128xf32> to vector<1x128xf32>
    %6 = vector.extract_strided_slice %0 {offsets = [5, 0], sizes = [1, 128], strides = [1, 1]} : vector<8x128xf32> to vector<1x128xf32>
    %c0_1 = arith.constant 0 : index
    %c0_2 = arith.constant 0 : index
    %7 = vector.load %arg1[%c0_1, %c0_2] : memref<192x256xbf16, #tpu.memory_space<vmem>>, vector<192x256xbf16>
    %c0_3 = arith.constant 0 : index
    %c0_4 = arith.constant 0 : index
    %8 = vector.load %arg2[%c0_3, %c0_4] : memref<256x128xbf16, #tpu.memory_space<vmem>>, vector<256x128xbf16>
    %cst = arith.constant dense<0.000000e+00> : vector<192x128xf32>
    %9 = tpu.matmul %7, %8, %cst {dimension_numbers = #tpu.dot_dimension_numbers<[1], [0], [0], [1], [0, 0, 1, 1], [], []>} : vector<192x256xbf16>, vector<256x128xbf16>, vector<192x128xf32> -> vector<192x128xf32>
    %10 = vector.broadcast %1 : vector<1x128xf32> to vector<192x128xf32>
    %11 = arith.addf %9, %10 : vector<192x128xf32>
    %cst_5 = arith.constant dense<0.000000e+00> : vector<192xf32>
    %12 = vector.multi_reduction <add>, %11, %cst_5 [1] : vector<192x128xf32> to vector<192xf32>
    %13 = vector.shape_cast %12 : vector<192xf32> to vector<192x1xf32>
    %14 = arith.mulf %11, %11 : vector<192x128xf32>
    %cst_6 = arith.constant dense<0.000000e+00> : vector<192xf32>
    %15 = vector.multi_reduction <add>, %14, %cst_6 [1] : vector<192x128xf32> to vector<192xf32>
    %16 = vector.shape_cast %15 : vector<192xf32> to vector<192x1xf32>
    %cst_7 = arith.constant 7.812500e-03 : f32
    %17 = vector.broadcast %cst_7 : f32 to vector<192x1xf32>
    %18 = arith.mulf %13, %17 : vector<192x1xf32>
    %cst_8 = arith.constant 7.812500e-03 : f32
    %19 = vector.broadcast %cst_8 : f32 to vector<192x1xf32>
    %20 = arith.mulf %16, %19 : vector<192x1xf32>
    %21 = arith.mulf %18, %18 : vector<192x1xf32>
    %22 = arith.subf %20, %21 : vector<192x1xf32>
    %cst_9 = arith.constant 0.000000e+00 : f32
    %23 = vector.broadcast %cst_9 : f32 to vector<192x1xf32>
    %24 = arith.maximumf %22, %23 : vector<192x1xf32>
    %cst_10 = arith.constant 9.99999974E-6 : f32
    %25 = vector.broadcast %cst_10 : f32 to vector<192x1xf32>
    %26 = arith.addf %24, %25 : vector<192x1xf32>
    %27 = math.rsqrt %26 : vector<192x1xf32>
    %28 = vector.broadcast %18 : vector<192x1xf32> to vector<192x128xf32>
    %29 = arith.subf %11, %28 : vector<192x128xf32>
    %30 = vector.broadcast %27 : vector<192x1xf32> to vector<192x128xf32>
    %31 = arith.mulf %29, %30 : vector<192x128xf32>
    %32 = vector.broadcast %2 : vector<1x128xf32> to vector<192x128xf32>
    %33 = arith.mulf %31, %32 : vector<192x128xf32>
    %34 = vector.broadcast %3 : vector<1x128xf32> to vector<192x128xf32>
    %35 = arith.addf %33, %34 : vector<192x128xf32>
    %cst_11 = arith.constant 5.000000e-01 : f32
    %36 = vector.broadcast %cst_11 : f32 to vector<192x128xf32>
    %37 = arith.mulf %36, %35 : vector<192x128xf32>
    %cst_12 = arith.constant 0.707106769 : f32
    %38 = vector.broadcast %cst_12 : f32 to vector<192x128xf32>
    %39 = arith.mulf %35, %38 : vector<192x128xf32>
    %40 = math.erf %39 : vector<192x128xf32>
    %cst_13 = arith.constant 1.000000e+00 : f32
    %41 = vector.broadcast %cst_13 : f32 to vector<192x128xf32>
    %42 = arith.addf %41, %40 : vector<192x128xf32>
    %43 = arith.mulf %37, %42 : vector<192x128xf32>
    %44 = arith.truncf %43 : vector<192x128xf32> to vector<192x128xbf16>
    %c0_14 = arith.constant 0 : index
    %c0_15 = arith.constant 0 : index
    %45 = vector.load %arg3[%c0_14, %c0_15] : memref<128x128xbf16, #tpu.memory_space<vmem>>, vector<128x128xbf16>
    %cst_16 = arith.constant dense<0.000000e+00> : vector<192x128xf32>
    %46 = tpu.matmul %44, %45, %cst_16 {dimension_numbers = #tpu.dot_dimension_numbers<[1], [0], [0], [1], [0, 0, 1, 1], [], []>} : vector<192x128xbf16>, vector<128x128xbf16>, vector<192x128xf32> -> vector<192x128xf32>
    %47 = vector.broadcast %4 : vector<1x128xf32> to vector<192x128xf32>
    %48 = arith.addf %46, %47 : vector<192x128xf32>
    %cst_17 = arith.constant dense<0.000000e+00> : vector<192xf32>
    %49 = vector.multi_reduction <add>, %48, %cst_17 [1] : vector<192x128xf32> to vector<192xf32>
    %50 = vector.shape_cast %49 : vector<192xf32> to vector<192x1xf32>
    %51 = arith.mulf %48, %48 : vector<192x128xf32>
    %cst_18 = arith.constant dense<0.000000e+00> : vector<192xf32>
    %52 = vector.multi_reduction <add>, %51, %cst_18 [1] : vector<192x128xf32> to vector<192xf32>
    %53 = vector.shape_cast %52 : vector<192xf32> to vector<192x1xf32>
    %cst_19 = arith.constant 7.812500e-03 : f32
    %54 = vector.broadcast %cst_19 : f32 to vector<192x1xf32>
    %55 = arith.mulf %50, %54 : vector<192x1xf32>
    %cst_20 = arith.constant 7.812500e-03 : f32
    %56 = vector.broadcast %cst_20 : f32 to vector<192x1xf32>
    %57 = arith.mulf %53, %56 : vector<192x1xf32>
    %58 = arith.mulf %55, %55 : vector<192x1xf32>
    %59 = arith.subf %57, %58 : vector<192x1xf32>
    %cst_21 = arith.constant 0.000000e+00 : f32
    %60 = vector.broadcast %cst_21 : f32 to vector<192x1xf32>
    %61 = arith.maximumf %59, %60 : vector<192x1xf32>
    %cst_22 = arith.constant 9.99999974E-6 : f32
    %62 = vector.broadcast %cst_22 : f32 to vector<192x1xf32>
    %63 = arith.addf %61, %62 : vector<192x1xf32>
    %64 = math.rsqrt %63 : vector<192x1xf32>
    %65 = vector.broadcast %55 : vector<192x1xf32> to vector<192x128xf32>
    %66 = arith.subf %48, %65 : vector<192x128xf32>
    %67 = vector.broadcast %64 : vector<192x1xf32> to vector<192x128xf32>
    %68 = arith.mulf %66, %67 : vector<192x128xf32>
    %69 = vector.broadcast %5 : vector<1x128xf32> to vector<192x128xf32>
    %70 = arith.mulf %68, %69 : vector<192x128xf32>
    %71 = vector.broadcast %6 : vector<1x128xf32> to vector<192x128xf32>
    %72 = arith.addf %70, %71 : vector<192x128xf32>
    %73 = vector.extract_strided_slice %0 {offsets = [6, 0], sizes = [1, 128], strides = [1, 1]} : vector<8x128xf32> to vector<1x128xf32>
    %c0_23 = arith.constant 0 : index
    %c0_24 = arith.constant 0 : index
    %74 = vector.load %arg4[%c0_23, %c0_24] : memref<256x128xbf16, #tpu.memory_space<vmem>>, vector<256x128xbf16>
    %cst_25 = arith.constant dense<0.000000e+00> : vector<192x128xf32>
    %75 = tpu.matmul %7, %74, %cst_25 {dimension_numbers = #tpu.dot_dimension_numbers<[1], [0], [0], [1], [0, 0, 1, 1], [], []>} : vector<192x256xbf16>, vector<256x128xbf16>, vector<192x128xf32> -> vector<192x128xf32>
    %76 = vector.broadcast %73 : vector<1x128xf32> to vector<192x128xf32>
    %77 = arith.addf %75, %76 : vector<192x128xf32>
    %78 = arith.addf %72, %77 : vector<192x128xf32>
    %cst_26 = arith.constant 5.000000e-01 : f32
    %79 = vector.broadcast %cst_26 : f32 to vector<192x128xf32>
    %80 = arith.mulf %79, %78 : vector<192x128xf32>
    %cst_27 = arith.constant 0.707106769 : f32
    %81 = vector.broadcast %cst_27 : f32 to vector<192x128xf32>
    %82 = arith.mulf %78, %81 : vector<192x128xf32>
    %83 = math.erf %82 : vector<192x128xf32>
    %cst_28 = arith.constant 1.000000e+00 : f32
    %84 = vector.broadcast %cst_28 : f32 to vector<192x128xf32>
    %85 = arith.addf %84, %83 : vector<192x128xf32>
    %86 = arith.mulf %80, %85 : vector<192x128xf32>
    %c0_29 = arith.constant 0 : index
    %c0_30 = arith.constant 0 : index
    %87 = vector.load %arg6[%c0_29, %c0_30] : memref<192x128xf32, #tpu.memory_space<vmem>>, vector<192x128xf32>
    tpu.vector_store %arg6[%c0_29, %c0_30], %86 {strides = array<i32>} : memref<192x128xf32, #tpu.memory_space<vmem>>, vector<192x128xf32>,
    return
  }
  func.func @transform_0(%arg0: i32) -> (i32, i32) {
    %c0_i32 = arith.constant 0 : i32
    %c0_i32_0 = arith.constant 0 : i32
    return %arg0, %c0_i32 : i32, i32
  }
  func.func @transform_1(%arg0: i32) -> (i32, i32) {
    %c0_i32 = arith.constant 0 : i32
    %c0_i32_0 = arith.constant 0 : i32
    %c0_i32_1 = arith.constant 0 : i32
    return %c0_i32, %c0_i32_0 : i32, i32
  }
  func.func @transform_2(%arg0: i32) -> (i32, i32) {
    %c0_i32 = arith.constant 0 : i32
    %c0_i32_0 = arith.constant 0 : i32
    %c0_i32_1 = arith.constant 0 : i32
    return %c0_i32, %c0_i32_0 : i32, i32
  }
  func.func @transform_3(%arg0: i32) -> (i32, i32) {
    %c0_i32 = arith.constant 0 : i32
    %c0_i32_0 = arith.constant 0 : i32
    %c0_i32_1 = arith.constant 0 : i32
    return %c0_i32, %c0_i32_0 : i32, i32
  }
  func.func @transform_4(%arg0: i32) -> (i32, i32) {
    %c0_i32 = arith.constant 0 : i32
    %c0_i32_0 = arith.constant 0 : i32
    %c0_i32_1 = arith.constant 0 : i32
    return %c0_i32, %c0_i32_0 : i32, i32
  }
  func.func @transform_5(%arg0: i32) -> (i32, i32) {
    %c0_i32 = arith.constant 0 : i32
    %c0_i32_0 = arith.constant 0 : i32
    return %arg0, %c0_i32 : i32, i32
  }
}

</mosaic_0001>

<bundles_post_ra>
// kernel: _residual_block_impl.1
= control target key start
LH: loop header
LB: loop body
LE: loop exit
PB: predicated region body
PF: predicated region fallthrough
CT: control target
= control target key end

     0   :  { %s3927_s0 = inlined_call_operand.vmem [shape: bf16[192,256], index: 0, kind: input, shape index: {}]   ;;  %s3928_s1 = inlined_call_operand.vmem [shape: bf16[256,128], index: 1, kind: input, shape index: {}]   ;;  %s3929_s2 = inlined_call_operand.vmem [shape: bf16[128,128], index: 2, kind: input, shape index: {}]   ;;  %s3930_s3 = inlined_call_operand.vmem [shape: bf16[256,128], index: 3, kind: input, shape index: {}]   ;;  %s3931_s4 = inlined_call_operand.vmem [shape: f32[8,128], index: 4, kind: input, shape index: {}]   ;;  %s3932_s5 = inlined_call_operand.hbm [shape: f32[192,128], index: 5, kind: output, shape index: {}]  }
   0x1   :  { %v2305_v0 = vld [vmem:[%s3928_s1 + $0x40] sm:$0xff]   ;;  %v2307_v2 = vld [vmem:[%s3928_s1 + $0x48] sm:$0xff]   ;;  %v2309_v4 = vld [vmem:[%s3928_s1 + $0x50] sm:$0xff]  }
   0x2   :  { %v2306_v1 = vld [vmem:[%s3928_s1] sm:$0xff]   ;;  %2050 = vmatprep.subr.bf16.mxu0 %v2305_v0  ;;  %v2308_v3 = vld [vmem:[%s3928_s1 + $0x8] sm:$0xff]   ;;  %v2310_v5 = vld [vmem:[%s3928_s1 + $0x10] sm:$0xff]  }
   0x3   :  { %2051 = vmatpush3.bf16.msra.mxu0 %v2306_v1  ;;  %v2311_v6 = vld [vmem:[%s3928_s1 + $0x58] sm:$0xff]   ;;  %v2313_v8 = vld [vmem:[%s3928_s1 + $0x60] sm:$0xff]   ;;  %v2315_v10 = vld [vmem:[%s3928_s1 + $0x68] sm:$0xff]  }
   0x4   :  { %2052 = vmatprep.subr.bf16.mxu0 %v2307_v2  ;;  %v2312_v7 = vld [vmem:[%s3928_s1 + $0x18] sm:$0xff]   ;;  %v2314_v9 = vld [vmem:[%s3928_s1 + $0x20] sm:$0xff]   ;;  %v2316_v12 = vld [vmem:[%s3928_s1 + $0x28] sm:$0xff]  }
   0x5   :  { %v2323_v11 = vld [vmem:[%s3927_s0 + $0x4] ss:$8 sps:$4 sm:$0xff]   ;;  %v2317_v13 = vld [vmem:[%s3928_s1 + $0x70] sm:$0xff]   ;;  %v2319_v15 = vld [vmem:[%s3928_s1 + $0x78] sm:$0xff]  }
   0x6   :  { %331 = vmatprep.mubr.bf16.mxu0 %v2323_v11  ;;  %v2318_v14 = vld [vmem:[%s3928_s1 + $0x30] sm:$0xff]   ;;  %v2320_v16 = vld [vmem:[%s3928_s1 + $0x38] sm:$0xff]   ;;  %v2704_v17 = vld [vmem:[%s3927_s0] ss:$8 sps:$4 sm:$0xff]  }
   0x7   :  { %2053 = vmatpush3.bf16.msra.mxu0 %v2308_v3  ;;  %v2709_v18 = vld [vmem:[%s3927_s0 + $0x14] ss:$8 sps:$4 sm:$0xff]   ;;  %v2716_v19 = vld [vmem:[%s3927_s0 + $0x10] ss:$8 sps:$4 sm:$0xff]   ;;  %v2721_v20 = vld [vmem:[%s3927_s0 + $0x24] ss:$8 sps:$4 sm:$0xff]  }
   0x8   :  { %2054 = vmatprep.subr.bf16.mxu0 %v2309_v4  ;;  %v2329_v21 = vld [vmem:[%s3927_s0 + $0x20] ss:$8 sps:$4 sm:$0xff]   ;;  %v2330_v22 = vld [vmem:[%s3927_s0 + $0x34] ss:$8 sps:$4 sm:$0xff]  }
   0xb   :  { %2055 = vmatpush3.bf16.msra.mxu0 %v2310_v5 }
   0xc   :  { %2056 = vmatprep.subr.bf16.mxu0 %v2311_v6 }
   0xf   :  { %2057 = vmatpush3.bf16.msra.mxu0 %v2312_v7 }
  0x10   :  { %2058 = vmatprep.subr.bf16.mxu0 %v2313_v8 }
  0x13   :  { %2059 = vmatpush3.bf16.msra.mxu0 %v2314_v9 }
  0x14   :  { %2060 = vmatprep.subr.bf16.mxu0 %v2315_v10 }
  0x17   :  { %2061 = vmatpush3.bf16.msra.mxu0 %v2316_v12 }
  0x18   :  { %2062 = vmatprep.subr.bf16.mxu0 %v2317_v13 }
  0x1b   :  { %2063 = vmatpush3.bf16.msra.mxu0 %v2318_v14 }
  0x1c   :  { %2064 = vmatprep.subr.bf16.mxu0 %v2319_v15 }
  0x1f   :  { %2065 = vmatpush3.bf16.msra.mxu0 %v2320_v16 }
  0x22   :  { %332 = vmatmul.mubr.bf16.vlgmr.msra.gmra.mrb[0].mxu0 %v2704_v17 }
  0x23   :  { %339 = vmatprep.mubr.bf16.mxu0 %v2709_v18 }
  0x2a   :  { %340 = vmatmul.mubr.bf16.gmra.mrb[4].mxu0 %v2716_v19 }
  0x2b   :  { %347 = vmatprep.mubr.bf16.mxu0 %v2721_v20 }
  0x2c   :  { %10 = vsyncpa [#allocation3], 0  ;;  %v2332_v23 = vld [vmem:[%s3927_s0 + $0x30] ss:$8 sps:$4 sm:$0xff]   ;;  %v2333_v24 = vld [vmem:[%s3927_s0 + $0x44] ss:$8 sps:$4 sm:$0xff]   ;;  %v79_v40 = vlaneseq }
  0x2d   :  { %v2335_v25 = vld [vmem:[%s3927_s0 + $0x40] ss:$8 sps:$4 sm:$0xff]   ;;  %v2336_v26 = vld [vmem:[%s3927_s0 + $0x54] ss:$8 sps:$4 sm:$0xff]   ;;  %v2338_v27 = vld [vmem:[%s3927_s0 + $0x50] ss:$8 sps:$4 sm:$0xff]  }
  0x2e   :  { %v2339_v28 = vld [vmem:[%s3927_s0 + $0x64] ss:$8 sps:$4 sm:$0xff]   ;;  %v2341_v29 = vld [vmem:[%s3927_s0 + $0x60] ss:$8 sps:$4 sm:$0xff]   ;;  %v2342_v30 = vld [vmem:[%s3927_s0 + $0x74] ss:$8 sps:$4 sm:$0xff]  }
  0x2f   :  { %v2344_v31 = vld [vmem:[%s3927_s0 + $0x70] ss:$8 sps:$4 sm:$0xff]   ;;  %v2345_v32 = vld [vmem:[%s3927_s0 + $0x84] ss:$8 sps:$4 sm:$0xff]   ;;  %v2347_v33 = vld [vmem:[%s3927_s0 + $0x80] ss:$8 sps:$4 sm:$0xff]  }
  0x30   :  { %v2348_v34 = vld [vmem:[%s3927_s0 + $0x94] ss:$8 sps:$4 sm:$0xff]   ;;  %v2350_v35 = vld [vmem:[%s3927_s0 + $0x90] ss:$8 sps:$4 sm:$0xff]   ;;  %v2351_v36 = vld [vmem:[%s3927_s0 + $0xa4] ss:$8 sps:$4 sm:$0xff]  }
  0x31   :  { %v2353_v37 = vld [vmem:[%s3927_s0 + $0xa0] ss:$8 sps:$4 sm:$0xff]   ;;  %v2354_v38 = vld [vmem:[%s3927_s0 + $0xb4] ss:$8 sps:$4 sm:$0xff]   ;;  %v2356_v39 = vld [vmem:[%s3927_s0 + $0xb0] ss:$8 sps:$4 sm:$0xff]  }
  0x32   :  { %348 = vmatmul.mubr.bf16.gmra.mrb[8].mxu0 %v2329_v21  ;;  %v2782_v41 = vshrl.u32 %v79_v40, 7  ;;  %v2788_v43 = vld [vmem:[%s3931_s4] sm:$0xff] }
  0x33   :  { %355 = vmatprep.mubr.bf16.mxu0 %v2330_v22 }
  0x34   :  { %3948 = vst [vmem:[#allocation5_spill] sm:$0xff] %v2782_v41  ;;  %v81_v42 = vsub.s32 0, %v2782_v41 }
  0x36   :  { %v2791_v45 = vrot.slane %v2788_v43, %v81_v42 }
  0x3a   :  { %356 = vmatmul.mubr.bf16.gmra.mrb[12].mxu0 %v2332_v23 }
  0x3b   :  { %363 = vmatprep.mubr.bf16.mxu0 %v2333_v24 }
  0x42   :  { %364 = vmatmul.mubr.bf16.gmra.mrb[16].mxu0 %v2335_v25 }
  0x43   :  { %371 = vmatprep.mubr.bf16.mxu0 %v2336_v26 }
  0x4a   :  { %372 = vmatmul.mubr.bf16.gmra.mrb[20].mxu0 %v2338_v27 }
  0x4b   :  { %379 = vmatprep.mubr.bf16.mxu0 %v2339_v28 }
  0x52   :  { %380 = vmatmul.mubr.bf16.gmra.mrb[24].mxu0 %v2341_v29 }
  0x53   :  { %387 = vmatprep.mubr.bf16.mxu0 %v2342_v30 }
  0x5a   :  { %388 = vmatmul.mubr.bf16.gmra.mrb[28].mxu0 %v2344_v31 }
  0x5b   :  { %395 = vmatprep.mubr.bf16.mxu0 %v2345_v32 }
  0x62   :  { %396 = vmatmul.mubr.bf16.gmra.mrb[32].mxu0 %v2347_v33 }
  0x63   :  { %403 = vmatprep.mubr.bf16.mxu0 %v2348_v34 }
  0x6a   :  { %404 = vmatmul.mubr.bf16.gmra.mrb[36].mxu0 %v2350_v35 }
  0x6b   :  { %411 = vmatprep.mubr.bf16.mxu0 %v2351_v36 }
  0x72   :  { %412 = vmatmul.mubr.bf16.gmra.mrb[40].mxu0 %v2353_v37 }
  0x73   :  { %419 = vmatprep.mubr.bf16.mxu0 %v2354_v38 }
  0x7a   :  { %420 = vmatmul.mubr.bf16.gmra.mrb[44].mxu0 %v2356_v39 }
  0x7b   :  { %1705 = vmatprep.mubr.bf16.mxu0 %v2323_v11 }
  0xf5   :  { %v2066_v44 = vpop.f32.mrb[0].mxu0 }
  0xf6   :  { %v2067_v46 = vpop.f32.mrb[1].mxu0 }
  0xf7   :  { %v2068_v47 = vadd.f32 %v2067_v46, %v2066_v44  ;;  %v2069_v48 = vpop.f32.mrb[2].mxu0  ;;  %v2357_v46 = vld [vmem:[%s3929_s2] sm:$0xff]  }
  0xf8   :  { %v2070_v49 = vpop.f32.mrb[3].mxu0  ;;  %2246 = vmatprep.subr.bf16.mxu1 %v2357_v46 }
  0xf9   :  { %v2794_v50 = vadd.f32 %v2068_v47, %v2791_v45  ;;  %v2071_v51 = vadd.f32 %v2070_v49, %v2069_v48  ;;  %2247 = vmatpush3.bf16.msra.mxu1 %v2357_v46 }
  0xfb   :  { %v2797_v52 = vadd.f32 %v2071_v51, %v2791_v45  ;;  %428 = vadd.xlane.f32.xlu0 %v2794_v50  ;;  %v476_v61 = vmul.f32 %v2794_v50, %v2794_v50 }
  0xfd   :  { %v2072_v53 = vpop.f32.mrb[4].mxu0  ;;  %v477_v54 = vmul.f32 %v2797_v52, %v2797_v52 }
  0xfe   :  { %v2073_v55 = vpop.f32.mrb[5].mxu0 }
  0xff   :  { %v2074_v56 = vadd.f32 %v2073_v55, %v2072_v53  ;;  %v2075_v57 = vpop.f32.mrb[6].mxu0  ;;  %502 = vadd.xlane.f32.xlu1 %v477_v54  ;;  %430 = vadd.xlane.f32.xlu0 %v2797_v52  ;;  %v2358_v55 = vld [vmem:[%s3929_s2 + $0x8] sm:$0xff]  }
 0x100   :  { %v2076_v58 = vpop.f32.mrb[7].mxu0  ;;  %2248 = vmatprep.subr.bf16.mxu1 %v2358_v55 }
 0x101   :  { %v2804_v59 = vadd.f32 %v2074_v56, %v2791_v45  ;;  %v2077_v60 = vadd.f32 %v2076_v58, %v2075_v57  ;;  %2249 = vmatpush3.bf16.msra.mxu1 %v2358_v55 }
 0x103   :  { %432 = vadd.xlane.f32.xlu1 %v2804_v59  ;;  %500 = vadd.xlane.f32.xlu0 %v476_v61  ;;  %v2810_v62 = vadd.f32 %v2077_v60, %v2791_v45  ;;  %v478_v0 = vmul.f32 %v2804_v59, %v2804_v59  ;;  %v2359_v61 = vld [vmem:[%s3929_s2 + $0x10] sm:$0xff]  }
 0x104   :  { %2250 = vmatprep.subr.bf16.mxu1 %v2359_v61 }
 0x105   :  { %v2078_v63 = vpop.f32.mrb[8].mxu0  ;;  %v479_v7 = vmul.f32 %v2810_v62, %v2810_v62  ;;  %2251 = vmatpush3.bf16.msra.mxu1 %v2359_v61 }
 0x106   :  { %v2079_v1 = vpop.f32.mrb[9].mxu0 }
 0x107   :  { %v2080_v2 = vadd.f32 %v2079_v1, %v2078_v63  ;;  %v2081_v3 = vpop.f32.mrb[10].mxu0  ;;  %434 = vadd.xlane.f32.xlu1 %v2810_v62  ;;  %504 = vadd.xlane.f32.xlu0 %v478_v0 }
 0x108   :  { %v2082_v4 = vpop.f32.mrb[11].mxu0 }
 0x109   :  { %v2816_v5 = vadd.f32 %v2080_v2, %v2791_v45  ;;  %v2083_v6 = vadd.f32 %v2082_v4, %v2081_v3 }
 0x10b   :  { %506 = vadd.xlane.f32.xlu1 %v479_v7  ;;  %436 = vadd.xlane.f32.xlu0 %v2816_v5  ;;  %v480_v8 = vmul.f32 %v2816_v5, %v2816_v5  ;;  %v2824_v9 = vadd.f32 %v2083_v6, %v2791_v45  ;;  %v2360_v6 = vld [vmem:[%s3929_s2 + $0x18] sm:$0xff]  }
 0x10c   :  { %2252 = vmatprep.subr.bf16.mxu1 %v2360_v6 }
 0x10d   :  { %v2084_v10 = vpop.f32.mrb[12].mxu0  ;;  %v481_v21 = vmul.f32 %v2824_v9, %v2824_v9  ;;  %2253 = vmatpush3.bf16.msra.mxu1 %v2360_v6 }
 0x10e   :  { %v2085_v11 = vpop.f32.mrb[13].mxu0 }
 0x10f   :  { %v2086_v12 = vadd.f32 %v2085_v11, %v2084_v10  ;;  %v2087_v13 = vpop.f32.mrb[14].mxu0  ;;  %438 = vadd.xlane.f32.xlu1 %v2824_v9  ;;  %508 = vadd.xlane.f32.xlu0 %v480_v8 }
 0x110   :  { %v2088_v14 = vpop.f32.mrb[15].mxu0 }
 0x111   :  { %v2828_v15 = vadd.f32 %v2086_v12, %v2791_v45  ;;  %v2089_v16 = vadd.f32 %v2088_v14, %v2087_v13  ;;  %v2361_v12 = vld [vmem:[%s3929_s2 + $0x20] sm:$0xff]  }
 0x112   :  { %2254 = vmatprep.subr.bf16.mxu1 %v2361_v12 }
 0x113   :  { %510 = vadd.xlane.f32.xlu1 %v481_v21  ;;  %440 = vadd.xlane.f32.xlu0 %v2828_v15  ;;  %v482_v22 = vmul.f32 %v2828_v15, %v2828_v15  ;;  %v2836_v23 = vadd.f32 %v2089_v16, %v2791_v45 }
 0x114   :  { %2255 = vmatpush3.bf16.msra.mxu1 %v2361_v12 }
 0x115   :  { %v2090_v24 = vpop.f32.mrb[16].mxu0  ;;  %v483_v31 = vmul.f32 %v2836_v23, %v2836_v23 }
 0x116   :  { %v2091_v25 = vpop.f32.mrb[17].mxu0 }
 0x117   :  { %v2092_v26 = vadd.f32 %v2091_v25, %v2090_v24  ;;  %v2093_v27 = vpop.f32.mrb[18].mxu0  ;;  %442 = vadd.xlane.f32.xlu1 %v2836_v23  ;;  %512 = vadd.xlane.f32.xlu0 %v482_v22  ;;  %v2362_v25 = vld [vmem:[%s3929_s2 + $0x28] sm:$0xff]  }
 0x118   :  { %v2094_v28 = vpop.f32.mrb[19].mxu0  ;;  %2256 = vmatprep.subr.bf16.mxu1 %v2362_v25 }
 0x119   :  { %v2840_v29 = vadd.f32 %v2092_v26, %v2791_v45  ;;  %v2095_v30 = vadd.f32 %v2094_v28, %v2093_v27  ;;  %2257 = vmatpush3.bf16.msra.mxu1 %v2362_v25 }
 0x11b   :  { %514 = vadd.xlane.f32.xlu1 %v483_v31  ;;  %444 = vadd.xlane.f32.xlu0 %v2840_v29  ;;  %v484_v32 = vmul.f32 %v2840_v29, %v2840_v29  ;;  %v2848_v33 = vadd.f32 %v2095_v30, %v2791_v45  ;;  %v2363_v31 = vld [vmem:[%s3929_s2 + $0x30] sm:$0xff]  }
 0x11c   :  { %2258 = vmatprep.subr.bf16.mxu1 %v2363_v31 }
 0x11d   :  { %v2096_v34 = vpop.f32.mrb[20].mxu0  ;;  %v485_v42 = vmul.f32 %v2848_v33, %v2848_v33  ;;  %2259 = vmatpush3.bf16.msra.mxu1 %v2363_v31 }
 0x11e   :  { %v2097_v35 = vpop.f32.mrb[21].mxu0 }
 0x11f   :  { %v2098_v36 = vadd.f32 %v2097_v35, %v2096_v34  ;;  %v2099_v37 = vpop.f32.mrb[22].mxu0  ;;  %446 = vadd.xlane.f32.xlu1 %v2848_v33  ;;  %516 = vadd.xlane.f32.xlu0 %v484_v32 }
 0x120   :  { %v2100_v38 = vpop.f32.mrb[23].mxu0 }
 0x121   :  { %v2852_v39 = vadd.f32 %v2098_v36, %v2791_v45  ;;  %v2101_v40 = vadd.f32 %v2100_v38, %v2099_v37 }
 0x123   :  { %518 = vadd.xlane.f32.xlu1 %v485_v42  ;;  %448 = vadd.xlane.f32.xlu0 %v2852_v39  ;;  %v486_v44 = vmul.f32 %v2852_v39, %v2852_v39  ;;  %v2863_v47 = vadd.f32 %v2101_v40, %v2791_v45  ;;  %v2364_v40 = vld [vmem:[%s3929_s2 + $0x38] sm:$0xff]  }
 0x124   :  { %2260 = vmatprep.subr.bf16.mxu1 %v2364_v40 }
 0x125   :  { %v2102_v48 = vpop.f32.mrb[24].mxu0  ;;  %v487_v58 = vmul.f32 %v2863_v47, %v2863_v47  ;;  %2261 = vmatpush3.bf16.msra.mxu1 %v2364_v40 }
 0x126   :  { %v2103_v49 = vpop.f32.mrb[25].mxu0 }
 0x127   :  { %v2104_v51 = vadd.f32 %v2103_v49, %v2102_v48  ;;  %v2105_v53 = vpop.f32.mrb[26].mxu0  ;;  %450 = vadd.xlane.f32.xlu1 %v2863_v47  ;;  %520 = vadd.xlane.f32.xlu0 %v486_v44 }
 0x128   :  { %v2106_v54 = vpop.f32.mrb[27].mxu0 }
 0x129   :  { %v2870_v56 = vadd.f32 %v2104_v51, %v2791_v45  ;;  %v2107_v57 = vadd.f32 %v2106_v54, %v2105_v53 }
 0x12b   :  { %522 = vadd.xlane.f32.xlu1 %v487_v58  ;;  %452 = vadd.xlane.f32.xlu0 %v2870_v56  ;;  %v488_v60 = vmul.f32 %v2870_v56, %v2870_v56  ;;  %v2881_v63 = vadd.f32 %v2107_v57, %v2791_v45 }
 0x12d   :  { %v2108_v0 = vpop.f32.mrb[28].mxu0  ;;  %v489_v10 = vmul.f32 %v2881_v63, %v2881_v63 }
 0x12e   :  { %v2109_v1 = vpop.f32.mrb[29].mxu0 }
 0x12f   :  { %v2110_v2 = vadd.f32 %v2109_v1, %v2108_v0  ;;  %v2111_v3 = vpop.f32.mrb[30].mxu0  ;;  %454 = vadd.xlane.f32.xlu1 %v2881_v63  ;;  %524 = vadd.xlane.f32.xlu0 %v488_v60 }
 0x130   :  { %v2112_v4 = vpop.f32.mrb[31].mxu0 }
 0x131   :  { %v2888_v7 = vadd.f32 %v2110_v2, %v2791_v45  ;;  %v2113_v8 = vadd.f32 %v2112_v4, %v2111_v3 }
 0x133   :  { %526 = vadd.xlane.f32.xlu1 %v489_v10  ;;  %456 = vadd.xlane.f32.xlu0 %v2888_v7  ;;  %v490_v11 = vmul.f32 %v2888_v7, %v2888_v7  ;;  %v2899_v13 = vadd.f32 %v2113_v8, %v2791_v45 }
 0x135   :  { %v2114_v14 = vpop.f32.mrb[32].mxu0  ;;  %v491_v28 = vmul.f32 %v2899_v13, %v2899_v13 }
 0x136   :  { %v2115_v16 = vpop.f32.mrb[33].mxu0 }
 0x137   :  { %v2116_v21 = vadd.f32 %v2115_v16, %v2114_v14  ;;  %v2117_v22 = vpop.f32.mrb[34].mxu0  ;;  %458 = vadd.xlane.f32.xlu1 %v2899_v13  ;;  %528 = vadd.xlane.f32.xlu0 %v490_v11 }
 0x138   :  { %v2118_v24 = vpop.f32.mrb[35].mxu0 }
 0x139   :  { %v2906_v26 = vadd.f32 %v2116_v21, %v2791_v45  ;;  %v2119_v27 = vadd.f32 %v2118_v24, %v2117_v22 }
 0x13b   :  { %530 = vadd.xlane.f32.xlu1 %v491_v28  ;;  %460 = vadd.xlane.f32.xlu0 %v2906_v26  ;;  %v492_v30 = vmul.f32 %v2906_v26, %v2906_v26  ;;  %v2917_v32 = vadd.f32 %v2119_v27, %v2791_v45 }
 0x13d   :  { %v2120_v34 = vpop.f32.mrb[36].mxu0  ;;  %v493_v46 = vmul.f32 %v2917_v32, %v2917_v32 }
 0x13e   :  { %v2121_v35 = vpop.f32.mrb[37].mxu0 }
 0x13f   :  { %v2122_v36 = vadd.f32 %v2121_v35, %v2120_v34  ;;  %v2123_v37 = vpop.f32.mrb[38].mxu0  ;;  %462 = vadd.xlane.f32.xlu1 %v2917_v32  ;;  %532 = vadd.xlane.f32.xlu0 %v492_v30 }
 0x140   :  { %v2124_v38 = vpop.f32.mrb[39].mxu0 }
 0x141   :  { %v2924_v42 = vadd.f32 %v2122_v36, %v2791_v45  ;;  %v2125_v44 = vadd.f32 %v2124_v38, %v2123_v37 }
 0x143   :  { %534 = vadd.xlane.f32.xlu1 %v493_v46  ;;  %464 = vadd.xlane.f32.xlu0 %v2924_v42  ;;  %v494_v48 = vmul.f32 %v2924_v42, %v2924_v42  ;;  %v2932_v49 = vadd.f32 %v2125_v44, %v2791_v45 }
 0x145   :  { %3949 = vst [vmem:[#allocation6_spill] sm:$0xff] %v2932_v49  ;;  %v2126_v51 = vpop.f32.mrb[40].mxu0  ;;  %v495_v61 = vmul.f32 %v2932_v49, %v2932_v49 }
 0x146   :  { %v2127_v53 = vpop.f32.mrb[41].mxu0 }
 0x147   :  { %v2128_v54 = vadd.f32 %v2127_v53, %v2126_v51  ;;  %v2129_v55 = vpop.f32.mrb[42].mxu0  ;;  %466 = vadd.xlane.f32.xlu1 %v2932_v49  ;;  %536 = vadd.xlane.f32.xlu0 %v494_v48 }
 0x148   :  { %v2130_v57 = vpop.f32.mrb[43].mxu0 }
 0x149   :  { %v2936_v58 = vadd.f32 %v2128_v54, %v2791_v45  ;;  %v2131_v60 = vadd.f32 %v2130_v57, %v2129_v55  ;;  %v2365_v57 = vld [vmem:[%s3930_s3 + $0x40] sm:$0xff]  }
 0x14a   :  { %2158 = vmatprep.subr.bf16.mxu0 %v2365_v57  ;;  %2286 = vmatprep.subr.bf16.mxu1 %v2365_v57 }
 0x14b   :  { %3950 = vst [vmem:[#allocation7_spill] sm:$0xff] %v2936_v58  ;;  %538 = vadd.xlane.f32.xlu1 %v495_v61  ;;  %468 = vadd.xlane.f32.xlu0 %v2936_v58  ;;  %v496_v0 = vmul.f32 %v2936_v58, %v2936_v58  ;;  %v2944_v1 = vadd.f32 %v2131_v60, %v2791_v45  ;;  %v2981_v61 = vld [vmem:[%s3930_s3] sm:$0xff]  }
 0x14c   :  { %2159 = vmatpush3.bf16.msra.mxu0 %v2981_v61 }
 0x14d   :  { %3951 = vst [vmem:[#allocation8_spill] sm:$0xff] %v2944_v1  ;;  %v2132_v2 = vpop.f32.mrb[44].mxu0  ;;  %v497_v12 = vmul.f32 %v2944_v1, %v2944_v1 }
 0x14e   :  { %v2133_v3 = vpop.f32.mrb[45].mxu0 }
 0x14f   :  { %v2134_v4 = vadd.f32 %v2133_v3, %v2132_v2  ;;  %v2135_v6 = vpop.f32.mrb[46].mxu0  ;;  %470 = vadd.xlane.f32.xlu1 %v2944_v1  ;;  %540 = vadd.xlane.f32.xlu0 %v496_v0  ;;  %v2986_v0 = vld [vmem:[%s3930_s3 + $0x48] sm:$0xff]  }
 0x150   :  { %v2136_v8 = vpop.f32.mrb[47].mxu0  ;;  %2160 = vmatprep.subr.bf16.mxu0 %v2986_v0 }
 0x151   :  { %v2948_v10 = vadd.f32 %v2134_v4, %v2791_v45  ;;  %v2137_v11 = vadd.f32 %v2136_v8, %v2135_v6  ;;  %v2992_v8 = vld [vmem:[%s3930_s3 + $0x8] sm:$0xff]  }
 0x152   :  { %2161 = vmatpush3.bf16.msra.mxu0 %v2992_v8 }
 0x153   :  { %3952 = vst [vmem:[#allocation9_spill] sm:$0xff] %v2948_v10  ;;  %542 = vadd.xlane.f32.xlu1 %v497_v12  ;;  %472 = vadd.xlane.f32.xlu0 %v2948_v10  ;;  %v498_v14 = vmul.f32 %v2948_v10, %v2948_v10  ;;  %v2956_v16 = vadd.f32 %v2137_v11, %v2791_v45 }
 0x155   :  { %3953 = vst [vmem:[#allocation10_spill] sm:$0xff] %v2956_v16  ;;  %v499_v21 = vmul.f32 %v2956_v16, %v2956_v16 }
 0x157   :  { %474 = vadd.xlane.f32.xlu1 %v2956_v16  ;;  %544 = vadd.xlane.f32.xlu0 %v498_v14 }
 0x15b   :  { %546 = vadd.xlane.f32.xlu1 %v499_v21  ;;  %v3002_v21 = vld [vmem:[%s3930_s3 + $0x50] sm:$0xff]  }
 0x15c   :  { %2162 = vmatprep.subr.bf16.mxu0 %v3002_v21 }
 0x188   :  { %v429_v22 = vpop.xlane.xlu0 %428 }
 0x189   :  { %v2961_v27 = vmul.f32 0.0078125, %v429_v22 }
 0x18b   :  { %v596_v35 = vmul.f32 %v2961_v27, %v2961_v27 }
 0x18c   :  { %v503_v24 = vpop.xlane.xlu1 %502  ;;  %v431_v25 = vpop.xlane.xlu0 %430 }
 0x18d   :  { %v2963_v28 = vmul.f32 0.0078125, %v431_v25  ;;  %v573_v30 = vmul.f32 0.0078125, %v503_v24 }
 0x18f   :  { %v597_v31 = vmul.f32 %v2963_v28, %v2963_v28 }
 0x190   :  { %v433_v45 = vpop.xlane.xlu1 %432  ;;  %v501_v34 = vpop.xlane.xlu0 %500 }
 0x191   :  { %v621_v36 = vsub.f32 %v573_v30, %v597_v31  ;;  %v572_v37 = vmul.f32 0.0078125, %v501_v34  ;;  %v2969_v38 = vmul.f32 0.0078125, %v433_v45  ;;  %v766_v30 = vsub.s32 1, %v2782_v41 }
 0x193   :  { %v645_v40 = vmax.f32 %v621_v36, 0.0  ;;  %v620_v44 = vsub.f32 %v572_v37, %v596_v35  ;;  %v598_v60 = vmul.f32 %v2969_v38, %v2969_v38  ;;  %v3011_v35 = vld [vmem:[%s3930_s3 + $0x10] sm:$0xff]  }
 0x194   :  { %v435_v46 = vpop.xlane.xlu1 %434  ;;  %v505_v48 = vpop.xlane.xlu0 %504  ;;  %2163 = vmatpush3.bf16.msra.mxu0 %v3011_v35 }
 0x195   :  { %v669_v51 = vadd.f32 1e-05, %v645_v40  ;;  %v644_v53 = vmax.f32 %v620_v44, 0.0  ;;  %v2971_v54 = vmul.f32 0.0078125, %v435_v46  ;;  %v574_v55 = vmul.f32 0.0078125, %v505_v48  ;;  %v3019_v44 = vld [vmem:[%s3930_s3 + $0x58] sm:$0xff]  }
 0x196   :  { %v794_v46 = vsub.s32 2, %v2782_v41  ;;  %2164 = vmatprep.subr.bf16.mxu0 %v3019_v44 }
 0x197   :  { %2381 = vrsqrt.f32 %v669_v51  ;;  %v668_v2 = vadd.f32 1e-05, %v644_v53  ;;  %v622_v3 = vsub.f32 %v574_v55, %v598_v60  ;;  %v599_v11 = vmul.f32 %v2971_v54, %v2971_v54 }
 0x198   :  { %v507_v4 = vpop.xlane.xlu1 %506  ;;  %v437_v6 = vpop.xlane.xlu0 %436  ;;  %v3023_v53 = vrot.slane %v2788_v43, %v766_v30  ;;  %v717_v55 = vsub.f32 %v2797_v52, %v2963_v28  ;;  %v3041_v52 = vld [vmem:[%s3930_s3 + $0x60] sm:$0xff]   ;;  %v716_v28 = vsub.f32 %v2794_v50, %v2961_v27 }
 0x199   :  { %2383 = vrsqrt.f32 %v668_v2  ;;  %v575_v12 = vmul.f32 0.0078125, %v507_v4  ;;  %v2996_v14 = vmul.f32 0.0078125, %v437_v6  ;;  %v646_v22 = vmax.f32 %v622_v3, 0.0  ;;  %v3033_v3 = vld [vmem:[%s3930_s3 + $0x18] sm:$0xff]   ;;  %v3055_v50 = vld [vmem:[%s3930_s3 + $0x20] sm:$0xff]  }
 0x19a   :  { %2165 = vmatpush3.bf16.msra.mxu0 %v3033_v3 }
 0x19b   :  { %v623_v24 = vsub.f32 %v575_v12, %v599_v11  ;;  %v600_v25 = vmul.f32 %v2996_v14, %v2996_v14  ;;  %v670_v31 = vadd.f32 1e-05, %v646_v22  ;;  %2166 = vmatprep.subr.bf16.mxu0 %v3041_v52 }
 0x19c   :  { %v439_v45 = vpop.xlane.xlu1 %438  ;;  %v509_v34 = vpop.xlane.xlu0 %508 }
 0x19d   :  { %v647_v36 = vmax.f32 %v623_v24, 0.0  ;;  %v3013_v37 = vmul.f32 0.0078125, %v439_v45  ;;  %v576_v40 = vmul.f32 0.0078125, %v509_v34  ;;  %2385 = vrsqrt.f32 %v670_v31 }
 0x19e   :  { %v3046_v24 = vrot.slane %v2788_v43, %v794_v46  ;;  %2167 = vmatpush3.bf16.msra.mxu0 %v3055_v50 }
 0x19f   :  { %v671_v48 = vadd.f32 1e-05, %v647_v36  ;;  %v624_v51 = vsub.f32 %v576_v40, %v600_v25  ;;  %v601_v57 = vmul.f32 %v3013_v37, %v3013_v37 }
 0x1a0   :  { %v511_v60 = vpop.xlane.xlu1 %510  ;;  %v441_v2 = vpop.xlane.xlu0 %440 }
 0x1a1   :  { %v2382_v4 = vpop.eup %2381  ;;  %2387 = vrsqrt.f32 %v671_v48  ;;  %v648_v6 = vmax.f32 %v624_v51, 0.0  ;;  %v577_v11 = vmul.f32 0.0078125, %v511_v60  ;;  %v3035_v12 = vmul.f32 0.0078125, %v441_v2  ;;  %v3063_v51 = vld [vmem:[%s3930_s3 + $0x68] sm:$0xff]  }
 0x1a2   :  { %v741_v22 = vmul.f32 %v2382_v4, %v717_v55  ;;  %2168 = vmatprep.subr.bf16.mxu0 %v3063_v51 }
 0x1a3   :  { %v2384_v25 = vpop.eup %2383  ;;  %v672_v30 = vadd.f32 1e-05, %v648_v6  ;;  %v625_v31 = vsub.f32 %v577_v11, %v601_v57  ;;  %v602_v45 = vmul.f32 %v3035_v12, %v3035_v12  ;;  %v718_v6 = vsub.f32 %v2804_v59, %v2969_v38 }
 0x1a4   :  { %v769_v34 = vmul.f32 %v3023_v53, %v741_v22  ;;  %v443_v36 = vpop.xlane.xlu1 %442  ;;  %v513_v40 = vpop.xlane.xlu0 %512  ;;  %v740_v48 = vmul.f32 %v2384_v25, %v716_v28 }
 0x1a5   :  { %2389 = vrsqrt.f32 %v672_v30  ;;  %v649_v43 = vmax.f32 %v625_v31, 0.0  ;;  %v3057_v27 = vmul.f32 0.0078125, %v443_v36  ;;  %v578_v46 = vmul.f32 0.0078125, %v513_v40  ;;  %v3081_v31 = vld [vmem:[%s3930_s3 + $0x28] sm:$0xff]  }
 0x1a6   :  { %v768_v55 = vmul.f32 %v3023_v53, %v740_v48  ;;  %v3067_v57 = vadd.f32 %v3046_v24, %v769_v34  ;;  %v3089_v34 = vld [vmem:[%s3930_s3 + $0x70] sm:$0xff]   ;;  %v719_v36 = vsub.f32 %v2810_v62, %v2971_v54  ;;  %2169 = vmatpush3.bf16.msra.mxu0 %v3081_v31 }
 0x1a7   :  { %v673_v60 = vadd.f32 1e-05, %v649_v43  ;;  %v626_v2 = vsub.f32 %v578_v46, %v602_v45  ;;  %v2386_v4 = vpop.eup %2385  ;;  %v603_v11 = vmul.f32 %v3057_v27, %v3057_v27  ;;  %v3101_v62 = vld [vmem:[%s3930_s3 + $0x30] sm:$0xff]   ;;  %2170 = vmatprep.subr.bf16.mxu0 %v3089_v34 }
 0x1a8   :  { %v515_v28 = vpop.xlane.xlu1 %514  ;;  %v445_v22 = vpop.xlane.xlu0 %444  ;;  %v3074_v25 = vadd.f32 %v3046_v24, %v768_v55  ;;  %v845_v30 = vmul.f32 0.70710677, %v3067_v57  ;;  %v742_v48 = vmul.f32 %v2386_v4, %v718_v6 }
 0x1a9   :  { %2391 = vrsqrt.f32 %v673_v60  ;;  %v650_v45 = vmax.f32 %v626_v2, 0.0  ;;  %v579_v59 = vmul.f32 0.0078125, %v515_v28  ;;  %v3083_v38 = vmul.f32 0.0078125, %v445_v22 }
 0x1aa   :  { %v844_v40 = vmul.f32 0.70710677, %v3074_v25  ;;  %2393 = verf.f32 %v845_v30  ;;  %v770_v41 = vmul.f32 %v3023_v53, %v742_v48  ;;  %v720_v30 = vsub.f32 %v2816_v5, %v2996_v14  ;;  %2171 = vmatpush3.bf16.msra.mxu0 %v3101_v62 }
 0x1ab   :  { %v2388_v43 = vpop.eup %2387  ;;  %v674_v46 = vadd.f32 1e-05, %v650_v45  ;;  %v627_v55 = vsub.f32 %v579_v59, %v603_v11  ;;  %v604_v60 = vmul.f32 %v3083_v38, %v3083_v38  ;;  %v3109_v11 = vld [vmem:[%s3930_s3 + $0x78] sm:$0xff]   ;;  %v820_v58 = vmul.f32 0.5, %v3074_v25 }
 0x1ac   :  { %v447_v2 = vpop.xlane.xlu1 %446  ;;  %v517_v28 = vpop.xlane.xlu0 %516  ;;  %2395 = verf.f32 %v844_v40  ;;  %v743_v22 = vmul.f32 %v2388_v43, %v719_v36  ;;  %v3115_v59 = vadd.f32 %v3046_v24, %v770_v41  ;;  %v3127_v41 = vld [vmem:[%s3930_s3 + $0x38] sm:$0xff]   ;;  %2172 = vmatprep.subr.bf16.mxu0 %v3109_v11 }
 0x1ad   :  { %2397 = vrsqrt.f32 %v674_v46  ;;  %v651_v54 = vmax.f32 %v627_v55, 0.0  ;;  %v3103_v4 = vmul.f32 0.0078125, %v447_v2  ;;  %v580_v6 = vmul.f32 0.0078125, %v517_v28  ;;  %3954 = vst [vmem:[#allocation11_spill] sm:$0xff] %v3127_v41 }
 0x1ae   :  { %v771_v45 = vmul.f32 %v3023_v53, %v743_v22  ;;  %v846_v28 = vmul.f32 0.70710677, %v3115_v59  ;;  %v721_v22 = vsub.f32 %v2824_v9, %v3013_v37  ;;  %2173 = vmatpush3.bf16.msra.mxu0 %v3127_v41 }
 0x1af   :  { %v2390_v36 = vpop.eup %2389  ;;  %v675_v40 = vadd.f32 1e-05, %v651_v54  ;;  %v628_v48 = vsub.f32 %v580_v6, %v604_v60  ;;  %v605_v43 = vmul.f32 %v3103_v4, %v3103_v4 }
 0x1b0   :  { %v519_v46 = vpop.xlane.xlu1 %518  ;;  %v449_v55 = vpop.xlane.xlu0 %448  ;;  %v3120_v2 = vadd.f32 %v3046_v24, %v771_v45  ;;  %v744_v16 = vmul.f32 %v2390_v36, %v720_v30 }
 0x1b1   :  { %2399 = vrsqrt.f32 %v675_v40  ;;  %v652_v5 = vmax.f32 %v628_v48, 0.0  ;;  %v581_v14 = vmul.f32 0.0078125, %v519_v46  ;;  %v3129_v60 = vmul.f32 0.0078125, %v449_v55  ;;  %1706 = vmatmul.mubr.bf16.vlgmr.msra.gmra.mrb[48].mxu0 %v2704_v17 }
 0x1b2   :  { %v847_v54 = vmul.f32 0.70710677, %v3120_v2  ;;  %2401 = verf.f32 %v846_v28  ;;  %v772_v6 = vmul.f32 %v3023_v53, %v744_v16  ;;  %v722_v46 = vsub.f32 %v2828_v15, %v3035_v12  ;;  %1713 = vmatprep.mubr.bf16.mxu0 %v2709_v18 }
 0x1b3   :  { %v2392_v30 = vpop.eup %2391  ;;  %v676_v45 = vadd.f32 1e-05, %v652_v5  ;;  %v629_v36 = vsub.f32 %v581_v14, %v605_v43  ;;  %v606_v40 = vmul.f32 %v3129_v60, %v3129_v60  ;;  %v723_v16 = vsub.f32 %v2836_v23, %v3057_v27 }
 0x1b4   :  { %v2394_v48 = vpop.eup %2393  ;;  %v451_v55 = vpop.xlane.xlu1 %450  ;;  %2403 = verf.f32 %v847_v54  ;;  %v745_v1 = vmul.f32 %v2392_v30, %v721_v22  ;;  %v3141_v9 = vadd.f32 %v3046_v24, %v772_v6  ;;  %v821_v14 = vmul.f32 0.5, %v3067_v57 }
 0x1b5   :  { %v521_v10 = vpop.xlane.xlu0 %520  ;;  %v653_v37 = vmax.f32 %v629_v36, 0.0  ;;  %v3146_v43 = vmul.f32 0.0078125, %v451_v55  ;;  %v893_v15 = vadd.f32 1.0, %v2394_v48  ;;  %2405 = vrsqrt.f32 %v676_v45 }
 0x1b6   :  { %v582_v28 = vmul.f32 0.0078125, %v521_v10  ;;  %v2396_v5 = vpop.eup %2395  ;;  %v773_v12 = vmul.f32 %v3023_v53, %v745_v1  ;;  %v848_v22 = vmul.f32 0.70710677, %v3141_v9 }
 0x1b7   :  { %v2398_v54 = vpop.eup %2397  ;;  %v677_v6 = vadd.f32 1e-05, %v653_v37  ;;  %v607_v23 = vmul.f32 %v3146_v43, %v3146_v43  ;;  %v892_v36 = vadd.f32 1.0, %v2396_v5  ;;  %v917_v48 = vmul.f32 %v893_v15, %v821_v14 }
 0x1b8   :  { %v630_v30 = vsub.f32 %v582_v28, %v606_v40  ;;  %v523_v10 = vpop.xlane.xlu1 %522  ;;  %v3156_v57 = vadd.f32 %v3046_v24, %v773_v12  ;;  %2407 = verf.f32 %v848_v22  ;;  %v746_v55 = vmul.f32 %v2398_v54, %v722_v46 }
 0x1b9   :  { %v453_v27 = vpop.xlane.xlu0 %452  ;;  %2409 = vrsqrt.f32 %v677_v6  ;;  %v583_v45 = vmul.f32 0.0078125, %v523_v10  ;;  %v916_v25 = vmul.f32 %v892_v36, %v820_v58  ;;  %v724_v54 = vsub.f32 %v2840_v29, %v3083_v38  ;;  %1714 = vmatmul.mubr.bf16.gmra.mrb[52].mxu0 %v2716_v19 }
 0x1ba   :  { %v654_v1 = vmax.f32 %v630_v30, 0.0  ;;  %v3159_v40 = vmul.f32 0.0078125, %v453_v27  ;;  %v849_v17 = vmul.f32 0.70710677, %v3156_v57  ;;  %v774_v30 = vmul.f32 %v3023_v53, %v746_v55  ;;  %1721 = vmatprep.mubr.bf16.mxu0 %v2721_v20 }
 0x1bb   :  { %v2400_v37 = vpop.eup %2399  ;;  %v631_v49 = vsub.f32 %v583_v45, %v607_v23  ;;  %v940_v18 = vpack.c.bf16 %v917_v48, %v916_v25  ;;  %v823_v45 = vmul.f32 0.5, %v3120_v2  ;;  %v824_v20 = vmul.f32 0.5, %v3141_v9 }
 0x1bc   :  { %v678_v28 = vadd.f32 1e-05, %v654_v1  ;;  %v608_v5 = vmul.f32 %v3159_v40, %v3159_v40  ;;  %v2402_v12 = vpop.eup %2401  ;;  %v455_v22 = vpop.xlane.xlu1 %454  ;;  %2411 = verf.f32 %v849_v17  ;;  %v747_v6 = vmul.f32 %v2400_v37, %v723_v16 }
 0x1bd   :  { %v525_v41 = vpop.xlane.xlu0 %524  ;;  %v655_v58 = vmax.f32 %v631_v49, 0.0  ;;  %v3165_v14 = vmul.f32 0.0078125, %v455_v22  ;;  %2262 = vmatprep.mubr.bf16.mxu1 %v940_v18  ;;  %v894_v23 = vadd.f32 1.0, %v2402_v12  ;;  %v3171_v27 = vadd.f32 %v3046_v24, %v774_v30 }
 0x1be   :  { %2413 = vrsqrt.f32 %v678_v28  ;;  %v584_v15 = vmul.f32 0.0078125, %v525_v41  ;;  %v2404_v46 = vpop.eup %2403  ;;  %v775_v10 = vmul.f32 %v3023_v53, %v747_v6  ;;  %v725_v16 = vsub.f32 %v2848_v33, %v3103_v4 }
 0x1bf   :  { %v679_v36 = vadd.f32 1e-05, %v655_v58  ;;  %v822_v49 = vmul.f32 0.5, %v3115_v59  ;;  %v609_v41 = vmul.f32 %v3165_v14, %v3165_v14  ;;  %v895_v25 = vadd.f32 1.0, %v2404_v46  ;;  %v2406_v33 = vpop.eup %2405 }
 0x1c0   :  { %v632_v1 = vsub.f32 %v584_v15, %v608_v5  ;;  %v527_v29 = vpop.xlane.xlu1 %526  ;;  %v3181_v48 = vadd.f32 %v3046_v24, %v775_v10  ;;  %v850_v28 = vmul.f32 0.70710677, %v3171_v27  ;;  %v748_v46 = vmul.f32 %v2406_v33, %v724_v54  ;;  %v2573_v33 = vld [vmem:[%s3927_s0 + $0x20] ss:$8 sps:$4 sm:$0xff]  }
 0x1c1   :  { %v457_v38 = vpop.xlane.xlu0 %456  ;;  %2415 = vrsqrt.f32 %v679_v36  ;;  %v585_v17 = vmul.f32 0.0078125, %v527_v29  ;;  %v918_v55 = vmul.f32 %v894_v23, %v822_v49  ;;  %v919_v37 = vmul.f32 %v895_v25, %v823_v45  ;;  %1722 = vmatmul.mubr.bf16.gmra.mrb[56].mxu0 %v2573_v33 }
 0x1c2   :  { %v656_v4 = vmax.f32 %v632_v1, 0.0  ;;  %v3184_v59 = vmul.f32 0.0078125, %v457_v38  ;;  %v2408_v19 = vpop.eup %2407  ;;  %v851_v5 = vmul.f32 0.70710677, %v3181_v48  ;;  %2417 = verf.f32 %v850_v28 }
 0x1c3   :  { %v2410_v2 = vpop.eup %2409  ;;  %v633_v22 = vsub.f32 %v585_v17, %v609_v41  ;;  %v941_v58 = vpack.c.bf16 %v919_v37, %v918_v55  ;;  %v896_v15 = vadd.f32 1.0, %v2408_v19  ;;  %v726_v49 = vsub.f32 %v2852_v39, %v3129_v60 }
 0x1c4   :  { %v680_v12 = vadd.f32 1e-05, %v656_v4  ;;  %v610_v18 = vmul.f32 %v3184_v59, %v3184_v59  ;;  %v459_v6 = vpop.xlane.xlu1 %458  ;;  %v749_v41 = vmul.f32 %v2410_v2, %v725_v16  ;;  %v776_v9 = vmul.f32 %v3023_v53, %v748_v46 }
 0x1c5   :  { %v529_v30 = vpop.xlane.xlu0 %528  ;;  %v657_v23 = vmax.f32 %v633_v22, 0.0  ;;  %v3191_v10 = vmul.f32 0.0078125, %v459_v6  ;;  %2263 = vmatmul.mubr.bf16.vlgmr.msra.gmra.mrb[0].mxu1 %v941_v58  ;;  %v825_v25 = vmul.f32 0.5, %v3156_v57  ;;  %v920_v54 = vmul.f32 %v896_v15, %v824_v20 }
 0x1c6   :  { %2419 = vrsqrt.f32 %v680_v12  ;;  %v586_v36 = vmul.f32 0.0078125, %v529_v30  ;;  %v2412_v1 = vpop.eup %2411  ;;  %2294 = vmatpush3.bf16.msra.mxu1 %v2981_v61  ;;  %v777_v17 = vmul.f32 %v3023_v53, %v749_v41  ;;  %v3205_v19 = vadd.f32 %v3046_v24, %v776_v9 }
 0x1c7   :  { %2421 = verf.f32 %v851_v5  ;;  %v681_v38 = vadd.f32 1e-05, %v657_v23  ;;  %v611_v39 = vmul.f32 %v3191_v10, %v3191_v10  ;;  %v897_v4 = vadd.f32 1.0, %v2412_v1  ;;  %2287 = vmatprep.subr.bf16.mxu1 %v2986_v0 }
 0x1c8   :  { %v2414_v29 = vpop.eup %2413  ;;  %v634_v45 = vsub.f32 %v586_v36, %v610_v18  ;;  %v531_v60 = vpop.xlane.xlu1 %530  ;;  %v3211_v28 = vadd.f32 %v3046_v24, %v777_v17  ;;  %v852_v5 = vmul.f32 0.70710677, %v3205_v19  ;;  %v727_v0 = vsub.f32 %v2863_v47, %v3146_v43 }
 0x1c9   :  { %v461_v16 = vpop.xlane.xlu0 %460  ;;  %2423 = vrsqrt.f32 %v681_v38  ;;  %v587_v57 = vmul.f32 0.0078125, %v531_v60  ;;  %v921_v37 = vmul.f32 %v897_v4, %v825_v25  ;;  %v750_v2 = vmul.f32 %v2414_v29, %v726_v49 }
 0x1ca   :  { %v658_v61 = vmax.f32 %v634_v45, 0.0  ;;  %v3208_v55 = vmul.f32 0.0078125, %v461_v16  ;;  %2295 = vmatpush3.bf16.msra.mxu1 %v2992_v8  ;;  %v853_v15 = vmul.f32 0.70710677, %v3211_v28  ;;  %2425 = verf.f32 %v852_v5 }
 0x1cb   :  { %v2416_v12 = vpop.eup %2415  ;;  %v635_v18 = vsub.f32 %v587_v57, %v611_v39  ;;  %v942_v58 = vpack.c.bf16 %v921_v37, %v920_v54  ;;  %2288 = vmatprep.subr.bf16.mxu1 %v3002_v21  ;;  %v728_v46 = vsub.f32 %v2870_v56, %v3159_v40  ;;  %v729_v8 = vsub.f32 %v2881_v63, %v3165_v14 }
 0x1cc   :  { %v682_v22 = vadd.f32 1e-05, %v658_v61  ;;  %v612_v20 = vmul.f32 %v3208_v55, %v3208_v55  ;;  %v463_v6 = vpop.xlane.xlu1 %462  ;;  %v2418_v49 = vpop.eup %2417  ;;  %2427 = verf.f32 %v853_v15  ;;  %v751_v47 = vmul.f32 %v2416_v12, %v727_v0 }
 0x1cd   :  { %v533_v30 = vpop.xlane.xlu0 %532  ;;  %v659_v23 = vmax.f32 %v635_v18, 0.0  ;;  %v3223_v36 = vmul.f32 0.0078125, %v463_v6  ;;  %2266 = vmatprep.mubr.bf16.mxu1 %v942_v58  ;;  %v778_v43 = vmul.f32 %v3023_v53, %v750_v2  ;;  %v826_v29 = vmul.f32 0.5, %v3171_v27 }
 0x1ce   :  { %v588_v1 = vmul.f32 0.0078125, %v533_v30  ;;  %2429 = vrsqrt.f32 %v682_v22  ;;  %2296 = vmatpush3.bf16.msra.mxu1 %v3011_v35  ;;  %v898_v63 = vadd.f32 1.0, %v2418_v49  ;;  %v779_v14 = vmul.f32 %v3023_v53, %v751_v47 }
 0x1cf   :  { %v683_v9 = vadd.f32 1e-05, %v659_v23  ;;  %v613_v40 = vmul.f32 %v3223_v36, %v3223_v36  ;;  %v3234_v25 = vadd.f32 %v3046_v24, %v778_v43  ;;  %2289 = vmatprep.subr.bf16.mxu1 %v3019_v44  ;;  %v827_v35 = vmul.f32 0.5, %v3181_v48 }
 0x1d0   :  { %v2420_v41 = vpop.eup %2419  ;;  %v636_v21 = vsub.f32 %v588_v1, %v612_v20  ;;  %v535_v38 = vpop.xlane.xlu1 %534  ;;  %v3241_v60 = vadd.f32 %v3046_v24, %v779_v14  ;;  %v730_v17 = vsub.f32 %v2888_v7, %v3184_v59  ;;  %v922_v2 = vmul.f32 %v898_v63, %v826_v29 }
 0x1d1   :  { %v2422_v56 = vpop.eup %2421  ;;  %v465_v45 = vpop.xlane.xlu0 %464  ;;  %2431 = vrsqrt.f32 %v683_v9  ;;  %v589_v33 = vmul.f32 0.0078125, %v535_v38  ;;  %v752_v16 = vmul.f32 %v2420_v41, %v728_v46  ;;  %v854_v12 = vmul.f32 0.70710677, %v3234_v25 }
 0x1d2   :  { %v660_v54 = vmax.f32 %v636_v21, 0.0  ;;  %v3237_v27 = vmul.f32 0.0078125, %v465_v45  ;;  %v899_v39 = vadd.f32 1.0, %v2422_v56  ;;  %2297 = vmatpush3.bf16.msra.mxu1 %v3033_v3  ;;  %v855_v22 = vmul.f32 0.70710677, %v3241_v60 }
 0x1d3   :  { %v2424_v4 = vpop.eup %2423  ;;  %v637_v57 = vsub.f32 %v589_v33, %v613_v40  ;;  %2290 = vmatprep.subr.bf16.mxu1 %v3041_v52  ;;  %v780_v3 = vmul.f32 %v3023_v53, %v752_v16  ;;  %v731_v15 = vsub.f32 %v2899_v13, %v3191_v10  ;;  %v829_v29 = vmul.f32 0.5, %v3211_v28 }
 0x1d4   :  { %v684_v61 = vadd.f32 1e-05, %v660_v54  ;;  %v614_v44 = vmul.f32 %v3237_v27, %v3237_v27  ;;  %v467_v37 = vpop.xlane.xlu1 %466  ;;  %v923_v48 = vmul.f32 %v899_v39, %v827_v35  ;;  %v2426_v6 = vpop.eup %2425  ;;  %v753_v58 = vmul.f32 %v2424_v4, %v729_v8 }
 0x1d5   :  { %v537_v5 = vpop.xlane.xlu0 %536  ;;  %v661_v18 = vmax.f32 %v637_v57, 0.0  ;;  %v3251_v20 = vmul.f32 0.0078125, %v467_v37  ;;  %v900_v43 = vadd.f32 1.0, %v2426_v6  ;;  %v3261_v41 = vadd.f32 %v3046_v24, %v780_v3 }
 0x1d6   :  { %2433 = vrsqrt.f32 %v684_v61  ;;  %v590_v0 = vmul.f32 0.0078125, %v537_v5  ;;  %v943_v30 = vpack.c.bf16 %v923_v48, %v922_v2  ;;  %2298 = vmatpush3.bf16.msra.mxu1 %v3055_v50  ;;  %v2428_v52 = vpop.eup %2427  ;;  %v781_v8 = vmul.f32 %v3023_v53, %v753_v58 }
 0x1d7   :  { %2435 = verf.f32 %v854_v12  ;;  %v685_v46 = vadd.f32 1e-05, %v661_v18  ;;  %v615_v23 = vmul.f32 %v3251_v20, %v3251_v20  ;;  %2291 = vmatprep.subr.bf16.mxu1 %v3063_v51  ;;  %v828_v50 = vmul.f32 0.5, %v3205_v19 }
 0x1d8   :  { %v638_v1 = vsub.f32 %v590_v0, %v614_v44  ;;  %2267 = vmatmul.mubr.bf16.gmra.mrb[4].mxu1 %v943_v30  ;;  %v539_v49 = vpop.xlane.xlu1 %538  ;;  %2437 = verf.f32 %v855_v22  ;;  %v2430_v13 = vpop.eup %2429  ;;  %v901_v56 = vadd.f32 1.0, %v2428_v52  ;;  %v3269_v40 = vadd.f32 %v3046_v24, %v781_v8 }
 0x1d9   :  { %v469_v47 = vpop.xlane.xlu0 %468  ;;  %2439 = vrsqrt.f32 %v685_v46  ;;  %v591_v9 = vmul.f32 0.0078125, %v539_v49  ;;  %v732_v45 = vsub.f32 %v2906_v26, %v3208_v55  ;;  %v924_v19 = vmul.f32 %v900_v43, %v828_v50 }
 0x1da   :  { %v662_v10 = vmax.f32 %v638_v1, 0.0  ;;  %v3264_v21 = vmul.f32 0.0078125, %v469_v47  ;;  %2299 = vmatpush3.bf16.msra.mxu1 %v3081_v31  ;;  %v925_v35 = vmul.f32 %v901_v56, %v829_v29  ;;  %v856_v28 = vmul.f32 0.70710677, %v3261_v41  ;;  %v3956_v29 = vld [vmem:[#allocation6_spill] sm:$0xff] }
 0x1db   :  { %v2432_v38 = vpop.eup %2431  ;;  %v639_v51 = vsub.f32 %v591_v9, %v615_v23  ;;  %v857_v39 = vmul.f32 0.70710677, %v3269_v40  ;;  %2292 = vmatprep.subr.bf16.mxu1 %v3089_v34  ;;  %v733_v26 = vsub.f32 %v2917_v32, %v3223_v36  ;;  %v754_v31 = vmul.f32 %v2430_v13, %v730_v17  ;;  %v3955_v23 = vld [vmem:[#allocation11_spill] sm:$0xff] }
 0x1dc   :  { %v686_v63 = vadd.f32 1e-05, %v662_v10  ;;  %v616_v14 = vmul.f32 %v3264_v21, %v3264_v21  ;;  %v471_v54 = vpop.xlane.xlu1 %470  ;;  %v944_v61 = vpack.c.bf16 %v925_v35, %v924_v19  ;;  %2441 = verf.f32 %v856_v28 }
 0x1dd   :  { %v541_v33 = vpop.xlane.xlu0 %540  ;;  %v663_v55 = vmax.f32 %v639_v51, 0.0  ;;  %v3281_v16 = vmul.f32 0.0078125, %v471_v54  ;;  %v755_v57 = vmul.f32 %v2432_v38, %v731_v15  ;;  %v782_v48 = vmul.f32 %v3023_v53, %v754_v31 }
 0x1de   :  { %v592_v4 = vmul.f32 0.0078125, %v541_v33  ;;  %2443 = vrsqrt.f32 %v686_v63  ;;  %2300 = vmatpush3.bf16.msra.mxu1 %v3101_v62  ;;  %2270 = vmatprep.mubr.bf16.mxu1 %v944_v61  ;;  %v830_v62 = vmul.f32 0.5, %v3234_v25  ;;  %v734_v3 = vsub.f32 %v2924_v42, %v3237_v27 }
 0x1df   :  { %v687_v37 = vadd.f32 1e-05, %v663_v55  ;;  %v617_v34 = vmul.f32 %v3281_v16, %v3281_v16  ;;  %2445 = verf.f32 %v857_v39  ;;  %v783_v7 = vmul.f32 %v3023_v53, %v755_v57  ;;  %2293 = vmatprep.subr.bf16.mxu1 %v3109_v11 }
 0x1e0   :  { %v2434_v44 = vpop.eup %2433  ;;  %v640_v5 = vsub.f32 %v592_v4, %v616_v14  ;;  %v543_v36 = vpop.xlane.xlu1 %542  ;;  %v3296_v6 = vadd.f32 %v3046_v24, %v782_v48  ;;  %v831_v52 = vmul.f32 0.5, %v3241_v60  ;;  %v735_v56 = vsub.f32 %v3956_v29, %v3251_v20 }
 0x1e1   :  { %v2436_v32 = vpop.eup %2435  ;;  %v473_v2 = vpop.xlane.xlu0 %472  ;;  %v756_v59 = vmul.f32 %v2434_v44, %v732_v45  ;;  %2447 = vrsqrt.f32 %v687_v37  ;;  %v593_v12 = vmul.f32 0.0078125, %v543_v36  ;;  %v3299_v30 = vadd.f32 %v3046_v24, %v783_v7 }
 0x1e2   :  { %v664_v17 = vmax.f32 %v640_v5, 0.0  ;;  %v3292_v22 = vmul.f32 0.0078125, %v473_v2  ;;  %v2438_v18 = vpop.eup %2437  ;;  %v902_v0 = vadd.f32 1.0, %v2436_v32  ;;  %2301 = vmatpush3.bf16.msra.mxu1 %v3955_v23  ;;  %v858_v10 = vmul.f32 0.70710677, %v3296_v6 }
 0x1e3   :  { %v2440_v58 = vpop.eup %2439  ;;  %v641_v15 = vsub.f32 %v593_v12, %v617_v34  ;;  %v903_v49 = vadd.f32 1.0, %v2438_v18  ;;  %v784_v43 = vmul.f32 %v3023_v53, %v756_v59  ;;  %v859_v9 = vmul.f32 0.70710677, %v3299_v30 }
 0x1e4   :  { %v688_v11 = vadd.f32 1e-05, %v664_v17  ;;  %v618_v46 = vmul.f32 %v3292_v22, %v3292_v22  ;;  %v475_v1 = vpop.xlane.xlu1 %474  ;;  %v926_v47 = vmul.f32 %v902_v0, %v830_v62  ;;  %v757_v50 = vmul.f32 %v2440_v58, %v733_v26 }
 0x1e5   :  { %v545_v25 = vpop.xlane.xlu0 %544  ;;  %v665_v8 = vmax.f32 %v641_v15, 0.0  ;;  %v3308_v13 = vmul.f32 0.0078125, %v475_v1  ;;  %v927_v27 = vmul.f32 %v903_v49, %v831_v52  ;;  %v3318_v33 = vadd.f32 %v3046_v24, %v784_v43 }
 0x1e6   :  { %2449 = vrsqrt.f32 %v688_v11  ;;  %v594_v42 = vmul.f32 0.0078125, %v545_v25  ;;  %v2442_v63 = vpop.eup %2441  ;;  %v785_v54 = vmul.f32 %v3023_v53, %v757_v50  ;;  %v832_v26 = vmul.f32 0.5, %v3261_v41  ;;  %v3957_v41 = vld [vmem:[#allocation7_spill] sm:$0xff]  ;;  %v3958_v11 = vld [vmem:[#allocation8_spill] sm:$0xff] }
 0x1e7   :  { %v689_v38 = vadd.f32 1e-05, %v665_v8  ;;  %v619_v60 = vmul.f32 %v3308_v13, %v3308_v13  ;;  %v945_v51 = vpack.c.bf16 %v927_v27, %v926_v47  ;;  %2451 = verf.f32 %v858_v10 }
 0x1e8   :  { %v642_v45 = vsub.f32 %v594_v42, %v618_v46  ;;  %v547_v14 = vpop.xlane.xlu1 %546  ;;  %v2444_v19 = vpop.eup %2443  ;;  %v904_v39 = vadd.f32 1.0, %v2442_v63  ;;  %v813_v55 = vadd.f32 %v3046_v24, %v785_v54  ;;  %v860_v4 = vmul.f32 0.70710677, %v3318_v33 }
 0x1e9   :  { %2453 = vrsqrt.f32 %v689_v38  ;;  %v595_v28 = vmul.f32 0.0078125, %v547_v14  ;;  %v2446_v20 = vpop.eup %2445  ;;  %2271 = vmatmul.mubr.bf16.gmra.mrb[8].mxu1 %v945_v51  ;;  %v833_v44 = vmul.f32 0.5, %v3269_v40  ;;  %v758_v32 = vmul.f32 %v2444_v19, %v734_v3  ;;  %v3960_v19 = vld [vmem:[#allocation10_spill] sm:$0xff] }
 0x1ea   :  { %v666_v35 = vmax.f32 %v642_v45, 0.0  ;;  %2455 = verf.f32 %v859_v9  ;;  %v905_v37 = vadd.f32 1.0, %v2446_v20  ;;  %v928_v34 = vmul.f32 %v904_v39, %v832_v26 }
 0x1eb   :  { %v2448_v61 = vpop.eup %2447  ;;  %v643_v57 = vsub.f32 %v595_v28, %v619_v60  ;;  %v861_v5 = vmul.f32 0.70710677, %v813_v55  ;;  %2457 = verf.f32 %v860_v4  ;;  %v736_v7 = vsub.f32 %v3957_v41, %v3264_v21 }
 0x1ec   :  { %v690_v31 = vadd.f32 1e-05, %v666_v35  ;;  %v929_v2 = vmul.f32 %v905_v37, %v833_v44  ;;  %v759_v48 = vmul.f32 %v2448_v61, %v735_v56  ;;  %v786_v59 = vmul.f32 %v3023_v53, %v758_v32 }
 0x1ed   :  { %v667_v36 = vmax.f32 %v643_v57, 0.0  ;;  %v737_v15 = vsub.f32 %v3958_v11, %v3281_v16  ;;  %v834_v43 = vmul.f32 0.5, %v3296_v6  ;;  %v835_v8 = vmul.f32 0.5, %v3299_v30  ;;  %v3959_v16 = vld [vmem:[#allocation9_spill] sm:$0xff] }
 0x1ee   :  { %2459 = vrsqrt.f32 %v690_v31  ;;  %v946_v18 = vpack.c.bf16 %v929_v2, %v928_v34  ;;  %v787_v40 = vmul.f32 %v3023_v53, %v759_v48  ;;  %v814_v62 = vadd.f32 %v3046_v24, %v786_v59 }
 0x1ef   :  { %2461 = verf.f32 %v861_v5  ;;  %v691_v12 = vadd.f32 1e-05, %v667_v36  ;;  %v738_v10 = vsub.f32 %v3959_v16, %v3292_v22  ;;  %v836_v30 = vmul.f32 0.5, %v3318_v33  ;;  %v2582_v16 = vld [vmem:[%s3927_s0 + $0x74] ss:$8 sps:$4 sm:$0xff]  }
 0x1f0   :  { %v2450_v17 = vpop.eup %2449  ;;  %2274 = vmatprep.mubr.bf16.mxu1 %v946_v18  ;;  %v815_v58 = vadd.f32 %v3046_v24, %v787_v40  ;;  %v862_v21 = vmul.f32 0.70710677, %v814_v62  ;;  %v837_v14 = vmul.f32 0.5, %v813_v55  ;;  %v739_v22 = vsub.f32 %v3960_v19, %v3308_v13 }
 0x1f1   :  { %v760_v0 = vmul.f32 %v2450_v17, %v736_v7  ;;  %2463 = vrsqrt.f32 %v691_v12  ;;  %v2452_v3 = vpop.eup %2451  ;;  %v838_v37 = vmul.f32 0.5, %v814_v62 }
 0x1f2   :  { %v906_v1 = vadd.f32 1.0, %v2452_v3  ;;  %v863_v25 = vmul.f32 0.70710677, %v815_v58  ;;  %2465 = verf.f32 %v862_v21  ;;  %v839_v34 = vmul.f32 0.5, %v815_v58 }
 0x1f3   :  { %v788_v46 = vmul.f32 %v3023_v53, %v760_v0  ;;  %v2454_v23 = vpop.eup %2453 }
 0x1f4   :  { %v2456_v52 = vpop.eup %2455  ;;  %v761_v49 = vmul.f32 %v2454_v23, %v737_v15  ;;  %2467 = verf.f32 %v863_v25  ;;  %v930_v56 = vmul.f32 %v906_v1, %v834_v43  ;;  %v2574_v25 = vld [vmem:[%s3927_s0 + $0x34] ss:$8 sps:$4 sm:$0xff]  }
 0x1f5   :  { %v816_v47 = vadd.f32 %v3046_v24, %v788_v46  ;;  %v907_v42 = vadd.f32 1.0, %v2456_v52  ;;  %v2458_v27 = vpop.eup %2457  ;;  %v2575_v52 = vld [vmem:[%s3927_s0 + $0x30] ss:$8 sps:$4 sm:$0xff]   ;;  %v2578_v43 = vld [vmem:[%s3927_s0 + $0x54] ss:$8 sps:$4 sm:$0xff]  }
 0x1f6   :  { %v789_v9 = vmul.f32 %v3023_v53, %v761_v49  ;;  %v908_v60 = vadd.f32 1.0, %v2458_v27  ;;  %v2576_v49 = vld [vmem:[%s3927_s0 + $0x44] ss:$8 sps:$4 sm:$0xff]   ;;  %v2581_v27 = vld [vmem:[%s3927_s0 + $0x60] ss:$8 sps:$4 sm:$0xff]  }
 0x1f7   :  { %v864_v50 = vmul.f32 0.70710677, %v816_v47  ;;  %v931_v38 = vmul.f32 %v907_v42, %v835_v8  ;;  %v2579_v8 = vld [vmem:[%s3927_s0 + $0x50] ss:$8 sps:$4 sm:$0xff]   ;;  %v2580_v42 = vld [vmem:[%s3927_s0 + $0x64] ss:$8 sps:$4 sm:$0xff]  }
 0x1f8   :  { %v2460_v29 = vpop.eup %2459  ;;  %v817_v63 = vadd.f32 %v3046_v24, %v789_v9  ;;  %v932_v20 = vmul.f32 %v908_v60, %v836_v30  ;;  %v2584_v9 = vld [vmem:[%s3927_s0 + $0x84] ss:$8 sps:$4 sm:$0xff]   ;;  %v2589_v60 = vld [vmem:[%s3927_s0 + $0xa0] ss:$8 sps:$4 sm:$0xff]  }
 0x1f9   :  { %v2462_v45 = vpop.eup %2461  ;;  %2469 = verf.f32 %v864_v50  ;;  %v762_v6 = vmul.f32 %v2460_v29, %v738_v10  ;;  %v947_v51 = vpack.c.bf16 %v931_v38, %v930_v56  ;;  %v2583_v10 = vld [vmem:[%s3927_s0 + $0x70] ss:$8 sps:$4 sm:$0xff]   ;;  %v2585_v50 = vld [vmem:[%s3927_s0 + $0x80] ss:$8 sps:$4 sm:$0xff]   ;;  %v2586_v29 = vld [vmem:[%s3927_s0 + $0x94] ss:$8 sps:$4 sm:$0xff]  }
 0x1fa   :  { %v909_v54 = vadd.f32 1.0, %v2462_v45  ;;  %v865_v35 = vmul.f32 0.70710677, %v817_v63  ;;  %v841_v12 = vmul.f32 0.5, %v817_v63  ;;  %v2587_v56 = vld [vmem:[%s3927_s0 + $0x90] ss:$8 sps:$4 sm:$0xff]  }
 0x1fb   :  { %v790_v28 = vmul.f32 %v3023_v53, %v762_v6  ;;  %v2464_v39 = vpop.eup %2463  ;;  %2275 = vmatmul.mubr.bf16.gmra.mrb[12].mxu1 %v947_v51  ;;  %v2588_v38 = vld [vmem:[%s3927_s0 + $0xa4] ss:$8 sps:$4 sm:$0xff]   ;;  %v2590_v45 = vld [vmem:[%s3927_s0 + $0xb4] ss:$8 sps:$4 sm:$0xff]   ;;  %v2591_v63 = vld [vmem:[%s3927_s0 + $0xb0] ss:$8 sps:$4 sm:$0xff]  }
 0x1fc   :  { %v933_v26 = vmul.f32 %v909_v54, %v837_v14  ;;  %2471 = verf.f32 %v865_v35  ;;  %v763_v4 = vmul.f32 %v2464_v39, %v739_v22  ;;  %v2466_v57 = vpop.eup %2465  ;;  %v3961_v6 = vld [vmem:[#allocation5_spill] sm:$0xff] }
 0x1fd   :  { %v818_v61 = vadd.f32 %v3046_v24, %v790_v28  ;;  %v910_v13 = vadd.f32 1.0, %v2466_v57  ;;  %v970_v51 = vsub.s32 3, %v3961_v6  ;;  %v3405_v30 = vld [vmem:[%s3931_s4] sm:$0xff] }
 0x1fe   :  { %v948_v31 = vpack.c.bf16 %v933_v26, %v932_v20  ;;  %v791_v33 = vmul.f32 %v3023_v53, %v763_v4  ;;  %v2468_v44 = vpop.eup %2467  ;;  %v840_v53 = vmul.f32 0.5, %v816_v47  ;;  %v2577_v47 = vld [vmem:[%s3927_s0 + $0x40] ss:$8 sps:$4 sm:$0xff]   ;;  %s2617_s0 = smov [#allocation2]  }
 0x1ff   :  { %v866_v55 = vmul.f32 0.70710677, %v818_v61  ;;  %v911_v5 = vadd.f32 1.0, %v2468_v44  ;;  %v934_v2 = vmul.f32 %v910_v13, %v838_v37  ;;  %v842_v11 = vmul.f32 0.5, %v818_v61  ;;  %s1975_s4 = sshll.u32 %s2617_s0, 4  ;;  %s1976_s4 = int_to_ptr.vmem [resolvable:$true] %s1975_s4 }
 0x200   :  { %2278 = vmatprep.mubr.bf16.mxu1 %v948_v31  ;;  %v819_v32 = vadd.f32 %v3046_v24, %v791_v33  ;;  %v3408_v14 = vrot.slane %v3405_v30, %v970_v51  ;;  %s2593_s28 = scalar_lea.vmem %s1976_s4, 3072  ;;  %p2598_p1 = scmp.lt.s32.totalorder %s1976_s4, %s1976_s4 }
 0x201   :  { %2473 = verf.f32 %v866_v55  ;;  %v935_v48 = vmul.f32 %v911_v5, %v839_v34  ;;  %p2594_p0 = scmp.ne.s32.totalorder %s1976_s4, %s2593_s28  ;;  %p2599_p2 = scmp.lt.s32.totalorder %s2593_s28, %s2593_s28 }
 0x202   :  { %v867_v41 = vmul.f32 0.70710677, %v819_v32  ;;  %v843_v15 = vmul.f32 0.5, %v819_v32 }
 0x203   :  { %v2470_v36 = vpop.eup %2469  ;;  %v949_v7 = vpack.c.bf16 %v935_v48, %v934_v2  ;;  %p2600_p3 = por %p2599_p2, %p2598_p1 }
 0x204   :  { %2475 = verf.f32 %v867_v41  ;;  %v912_v59 = vadd.f32 1.0, %v2470_v36 }
 0x205   :  { %2279 = vmatmul.mubr.bf16.gmra.mrb[16].mxu1 %v949_v7  ;;  %p2601_p4 = pnand %p2600_p3, %p2594_p0 }
 0x206   :  { %v2472_v17 = vpop.eup %2471  ;;  %v936_v40 = vmul.f32 %v912_v59, %v840_v53 }
 0x207   :  { %v913_v18 = vadd.f32 1.0, %v2472_v17 }
 0x209   :  { %v937_v62 = vmul.f32 %v913_v18, %v841_v12 }
 0x20b   :  { %v2474_v0 = vpop.eup %2473  ;;  %v950_v58 = vpack.c.bf16 %v937_v62, %v936_v40 }
 0x20c   :  { %v914_v3 = vadd.f32 1.0, %v2474_v0 }
 0x20d   :  { %2282 = vmatprep.mubr.bf16.mxu1 %v950_v58 }
 0x20e   :  { %v2476_v24 = vpop.eup %2475  ;;  %v938_v46 = vmul.f32 %v914_v3, %v842_v11 }
 0x20f   :  { %v915_v21 = vadd.f32 1.0, %v2476_v24 }
 0x211   :  { %v939_v23 = vmul.f32 %v915_v21, %v843_v15 }
 0x213   :  { %v951_v1 = vpack.c.bf16 %v939_v23, %v938_v46 }
 0x215   :  { %2283 = vmatmul.mubr.bf16.gmra.mrb[20].mxu1 %v951_v1 }
 0x216   :  { %1729 = vmatprep.mubr.bf16.mxu1 %v2574_v25 }
 0x21d   :  { %1730 = vmatmul.mubr.bf16.vlgmr.msra.gmra.mrb[24].mxu1 %v2575_v52 }
 0x21e   :  { %1737 = vmatprep.mubr.bf16.mxu1 %v2576_v49 }
 0x225   :  { %1738 = vmatmul.mubr.bf16.gmra.mrb[28].mxu1 %v2577_v47 }
 0x226   :  { %1745 = vmatprep.mubr.bf16.mxu1 %v2578_v43 }
 0x22d   :  { %1746 = vmatmul.mubr.bf16.gmra.mrb[32].mxu1 %v2579_v8 }
 0x22e   :  { %1753 = vmatprep.mubr.bf16.mxu1 %v2580_v42 }
 0x235   :  { %1754 = vmatmul.mubr.bf16.gmra.mrb[36].mxu1 %v2581_v27 }
 0x236   :  { %1761 = vmatprep.mubr.bf16.mxu1 %v2582_v16 }
 0x23d   :  { %1762 = vmatmul.mubr.bf16.gmra.mrb[40].mxu1 %v2583_v10 }
 0x23e   :  { %1769 = vmatprep.mubr.bf16.mxu1 %v2584_v9 }
 0x245   :  { %1770 = vmatmul.mubr.bf16.gmra.mrb[44].mxu1 %v2585_v50 }
 0x246   :  { %1777 = vmatprep.mubr.bf16.mxu1 %v2586_v29 }
 0x24d   :  { %1778 = vmatmul.mubr.bf16.gmra.mrb[48].mxu1 %v2587_v56 }
 0x24e   :  { %1785 = vmatprep.mubr.bf16.mxu1 %v2588_v38 }
 0x255   :  { %1786 = vmatmul.mubr.bf16.gmra.mrb[52].mxu1 %v2589_v60 }
 0x256   :  { %1793 = vmatprep.mubr.bf16.mxu1 %v2590_v45 }
 0x25d   :  { %1794 = vmatmul.mubr.bf16.gmra.mrb[56].mxu1 %v2591_v63 }
 0x284   :  { %v2174_v0 = vpop.f32.mrb[48].mxu0 }
 0x285   :  { %v2175_v24 = vpop.f32.mrb[49].mxu0 }
 0x286   :  { %v2177_v15 = vpop.f32.mrb[50].mxu0  ;;  %v3482_v1 = vadd.f32 %v2175_v24, %v2174_v0 }
 0x287   :  { %v2178_v21 = vpop.f32.mrb[51].mxu0 }
 0x288   :  { %v3499_v29 = vadd.f32 %v2178_v21, %v2177_v15 }
 0x28c   :  { %v2180_v23 = vpop.f32.mrb[52].mxu0 }
 0x28d   :  { %v2181_v25 = vpop.f32.mrb[53].mxu0 }
 0x28e   :  { %v3484_v49 = vadd.f32 %v2181_v25, %v2180_v23  ;;  %v2183_v47 = vpop.f32.mrb[54].mxu0 }
 0x28f   :  { %v2184_v42 = vpop.f32.mrb[55].mxu0 }
 0x290   :  { %v3489_v16 = vadd.f32 %v2184_v42, %v2183_v47 }
 0x298   :  { %v2264_v54 = vpop.f32.mrb[0].mxu1 }
 0x299   :  { %v3411_v19 = vadd.f32 %v2264_v54, %v3408_v14  ;;  %v1054_v22 = vpop.f32.mrb[1].mxu1 }
 0x29a   :  { %v2265_v35 = vpop.f32.mrb[2].mxu1  ;;  %v3418_v20 = vadd.f32 %v1054_v22, %v3408_v14 }
 0x29b   :  { %v3414_v28 = vadd.f32 %v2265_v35, %v3408_v14  ;;  %1153 = vadd.xlane.f32.xlu0 %v3411_v19  ;;  %v1057_v39 = vpop.f32.mrb[3].mxu1  ;;  %v1199_v4 = vmul.f32 %v3411_v19, %v3411_v19 }
 0x29c   :  { %v3422_v26 = vadd.f32 %v1057_v39, %v3408_v14  ;;  %v1197_v31 = vmul.f32 %v3418_v20, %v3418_v20 }
 0x29d   :  { %1155 = vadd.xlane.f32.xlu1 %v3414_v28  ;;  %v1200_v61 = vmul.f32 %v3414_v28, %v3414_v28 }
 0x29e   :  { %v1198_v57 = vmul.f32 %v3422_v26, %v3422_v26 }
 0x29f   :  { %1149 = vadd.xlane.f32.xlu0 %v3418_v20 }
 0x2a1   :  { %1151 = vadd.xlane.f32.xlu1 %v3422_v26 }
 0x2a3   :  { %1225 = vadd.xlane.f32.xlu0 %v1199_v4 }
 0x2a5   :  { %1227 = vadd.xlane.f32.xlu1 %v1200_v61  ;;  %v2186_v61 = vpop.f32.mrb[56].mxu0 }
 0x2a7   :  { %1221 = vadd.xlane.f32.xlu0 %v1197_v31  ;;  %v2187_v31 = vpop.f32.mrb[57].mxu0 }
 0x2a9   :  { %1223 = vadd.xlane.f32.xlu1 %v1198_v57 }
 0x2ab   :  { %v2268_v33 = vpop.f32.mrb[4].mxu1 }
 0x2ac   :  { %v3435_v55 = vadd.f32 %v2268_v33, %v3408_v14  ;;  %v1070_v44 = vpop.f32.mrb[5].mxu1  ;;  %v3525_v33 = vadd.f32 %v2187_v31, %v2186_v61 }
 0x2ad   :  { %v2269_v37 = vpop.f32.mrb[6].mxu1  ;;  %v3442_v5 = vadd.f32 %v1070_v44, %v3408_v14  ;;  %v2189_v44 = vpop.f32.mrb[58].mxu0 }
 0x2ae   :  { %v3438_v13 = vadd.f32 %v2269_v37, %v3408_v14  ;;  %1161 = vadd.xlane.f32.xlu0 %v3435_v55  ;;  %v1073_v34 = vpop.f32.mrb[7].mxu1  ;;  %v1203_v36 = vmul.f32 %v3435_v55, %v3435_v55 }
 0x2af   :  { %v3446_v32 = vadd.f32 %v1073_v34, %v3408_v14  ;;  %v1201_v48 = vmul.f32 %v3442_v5, %v3442_v5  ;;  %v2190_v34 = vpop.f32.mrb[59].mxu0 }
 0x2b0   :  { %1163 = vadd.xlane.f32.xlu1 %v3438_v13  ;;  %v1204_v2 = vmul.f32 %v3438_v13, %v3438_v13 }
 0x2b1   :  { %v1202_v41 = vmul.f32 %v3446_v32, %v3446_v32 }
 0x2b2   :  { %1157 = vadd.xlane.f32.xlu0 %v3442_v5 }
 0x2b4   :  { %1159 = vadd.xlane.f32.xlu1 %v3446_v32 }
 0x2b6   :  { %1233 = vadd.xlane.f32.xlu0 %v1203_v36  ;;  %v3531_v36 = vadd.f32 %v2190_v34, %v2189_v44 }
 0x2b8   :  { %1235 = vadd.xlane.f32.xlu1 %v1204_v2 }
 0x2ba   :  { %1229 = vadd.xlane.f32.xlu0 %v1201_v48 }
 0x2bc   :  { %1231 = vadd.xlane.f32.xlu1 %v1202_v41  ;;  %v2272_v7 = vpop.f32.mrb[8].mxu1 }
 0x2bd   :  { %v3459_v59 = vadd.f32 %v2272_v7, %v3408_v14  ;;  %v1086_v17 = vpop.f32.mrb[9].mxu1 }
 0x2be   :  { %v2273_v53 = vpop.f32.mrb[10].mxu1  ;;  %v3466_v40 = vadd.f32 %v1086_v17, %v3408_v14 }
 0x2bf   :  { %v3462_v12 = vadd.f32 %v2273_v53, %v3408_v14  ;;  %1169 = vadd.xlane.f32.xlu0 %v3459_v59  ;;  %v1089_v18 = vpop.f32.mrb[11].mxu1  ;;  %v1207_v58 = vmul.f32 %v3459_v59, %v3459_v59 }
 0x2c0   :  { %v3470_v62 = vadd.f32 %v1089_v18, %v3408_v14  ;;  %v1205_v11 = vmul.f32 %v3466_v40, %v3466_v40 }
 0x2c1   :  { %1171 = vadd.xlane.f32.xlu1 %v3462_v12  ;;  %v1208_v3 = vmul.f32 %v3462_v12, %v3462_v12 }
 0x2c2   :  { %v1206_v46 = vmul.f32 %v3470_v62, %v3470_v62 }
 0x2c3   :  { %1165 = vadd.xlane.f32.xlu0 %v3466_v40 }
 0x2c5   :  { %1167 = vadd.xlane.f32.xlu1 %v3470_v62 }
 0x2c7   :  { %1241 = vadd.xlane.f32.xlu0 %v1207_v58 }
 0x2c9   :  { %1243 = vadd.xlane.f32.xlu1 %v1208_v3 }
 0x2cb   :  { %1237 = vadd.xlane.f32.xlu0 %v1205_v11 }
 0x2cd   :  { %1239 = vadd.xlane.f32.xlu1 %v1206_v46 }
 0x2ce   :  { %v2276_v52 = vpop.f32.mrb[12].mxu1 }
 0x2cf   :  { %v3487_v43 = vadd.f32 %v2276_v52, %v3408_v14  ;;  %v1102_v8 = vpop.f32.mrb[13].mxu1 }
 0x2d0   :  { %v2277_v27 = vpop.f32.mrb[14].mxu1  ;;  %v3496_v50 = vadd.f32 %v1102_v8, %v3408_v14 }
 0x2d1   :  { %v3492_v10 = vadd.f32 %v2277_v27, %v3408_v14  ;;  %1177 = vadd.xlane.f32.xlu0 %v3487_v43  ;;  %v1105_v9 = vpop.f32.mrb[15].mxu1  ;;  %v1211_v38 = vmul.f32 %v3487_v43, %v3487_v43 }
 0x2d2   :  { %v3502_v56 = vadd.f32 %v1105_v9, %v3408_v14  ;;  %v1209_v51 = vmul.f32 %v3496_v50, %v3496_v50 }
 0x2d3   :  { %1179 = vadd.xlane.f32.xlu1 %v3492_v10  ;;  %v1212_v60 = vmul.f32 %v3492_v10, %v3492_v10 }
 0x2d4   :  { %v1210_v39 = vmul.f32 %v3502_v56, %v3502_v56 }
 0x2d5   :  { %1173 = vadd.xlane.f32.xlu0 %v3496_v50 }
 0x2d7   :  { %1175 = vadd.xlane.f32.xlu1 %v3502_v56 }
 0x2d8   :  { %v2280_v45 = vpop.f32.mrb[16].mxu1 }
 0x2d9   :  { %1249 = vadd.xlane.f32.xlu0 %v1211_v38  ;;  %v1118_v63 = vpop.f32.mrb[17].mxu1  ;;  %v3513_v35 = vadd.f32 %v2280_v45, %v3408_v14 }
 0x2da   :  { %v2281_v54 = vpop.f32.mrb[18].mxu1  ;;  %v3522_v57 = vadd.f32 %v1118_v63, %v3408_v14 }
 0x2db   :  { %1251 = vadd.xlane.f32.xlu1 %v1212_v60  ;;  %v1121_v22 = vpop.f32.mrb[19].mxu1  ;;  %v3518_v4 = vadd.f32 %v2281_v54, %v3408_v14  ;;  %v1215_v2 = vmul.f32 %v3513_v35, %v3513_v35 }
 0x2dc   :  { %3963 = vst [vmem:[#allocation6_spill] sm:$0xff] %v3522_v57  ;;  %v3528_v37 = vadd.f32 %v1121_v22, %v3408_v14  ;;  %v1213_v53 = vmul.f32 %v3522_v57, %v3522_v57 }
 0x2dd   :  { %1245 = vadd.xlane.f32.xlu0 %v1209_v51  ;;  %3962 = vst [vmem:[#allocation11_spill] sm:$0xff] %v3518_v4  ;;  %v1216_v41 = vmul.f32 %v3518_v4, %v3518_v4 }
 0x2de   :  { %3964 = vst [vmem:[#allocation7_spill] sm:$0xff] %v3528_v37  ;;  %v1214_v58 = vmul.f32 %v3528_v37, %v3528_v37 }
 0x2df   :  { %1247 = vadd.xlane.f32.xlu1 %v1210_v39 }
 0x2e1   :  { %1185 = vadd.xlane.f32.xlu0 %v3513_v35 }
 0x2e3   :  { %1187 = vadd.xlane.f32.xlu1 %v3518_v4 }
 0x2e5   :  { %1181 = vadd.xlane.f32.xlu0 %v3522_v57 }
 0x2e7   :  { %1183 = vadd.xlane.f32.xlu1 %v3528_v37 }
 0x2e8   :  { %v2284_v48 = vpop.f32.mrb[20].mxu1 }
 0x2e9   :  { %1257 = vadd.xlane.f32.xlu0 %v1215_v2  ;;  %v1134_v7 = vpop.f32.mrb[21].mxu1  ;;  %v3541_v0 = vadd.f32 %v2284_v48, %v3408_v14 }
 0x2ea   :  { %v2285_v17 = vpop.f32.mrb[22].mxu1  ;;  %v3552_v46 = vadd.f32 %v1134_v7, %v3408_v14 }
 0x2eb   :  { %1259 = vadd.xlane.f32.xlu1 %v1216_v41  ;;  %v1137_v18 = vpop.f32.mrb[23].mxu1  ;;  %3965 = vst [vmem:[#allocation8_spill] sm:$0xff] %v3541_v0  ;;  %v3546_v3 = vadd.f32 %v2285_v17, %v3408_v14 }
 0x2ec   :  { %3967 = vst [vmem:[#allocation10_spill] sm:$0xff] %v3552_v46  ;;  %v3558_v52 = vadd.f32 %v1137_v18, %v3408_v14  ;;  %v1217_v47 = vmul.f32 %v3552_v46, %v3552_v46  ;;  %v1219_v14 = vmul.f32 %v3541_v0, %v3541_v0 }
 0x2ed   :  { %1253 = vadd.xlane.f32.xlu0 %v1213_v53  ;;  %3966 = vst [vmem:[#allocation9_spill] sm:$0xff] %v3546_v3  ;;  %v1220_v63 = vmul.f32 %v3546_v3, %v3546_v3 }
 0x2ee   :  { %3968 = vst [vmem:[#allocation5_spill] sm:$0xff] %v3558_v52  ;;  %v1218_v42 = vmul.f32 %v3558_v52, %v3558_v52 }
 0x2ef   :  { %1255 = vadd.xlane.f32.xlu1 %v1214_v58 }
 0x2f0   :  { %v2192_v24 = vpop.f32.mrb[24].mxu1 }
 0x2f1   :  { %1193 = vadd.xlane.f32.xlu0 %v3541_v0  ;;  %v2193_v11 = vpop.f32.mrb[25].mxu1 }
 0x2f2   :  { %v3549_v15 = vadd.f32 %v2193_v11, %v2192_v24  ;;  %v2195_v21 = vpop.f32.mrb[26].mxu1 }
 0x2f3   :  { %1195 = vadd.xlane.f32.xlu1 %v3546_v3  ;;  %v2196_v23 = vpop.f32.mrb[27].mxu1 }
 0x2f4   :  { %v3555_v25 = vadd.f32 %v2196_v23, %v2195_v21 }
 0x2f5   :  { %1189 = vadd.xlane.f32.xlu0 %v3552_v46 }
 0x2f7   :  { %1191 = vadd.xlane.f32.xlu1 %v3558_v52 }
 0x2f8   :  { %v2198_v8 = vpop.f32.mrb[28].mxu1 }
 0x2f9   :  { %1261 = vadd.xlane.f32.xlu0 %v1217_v47  ;;  %v2199_v27 = vpop.f32.mrb[29].mxu1 }
 0x2fa   :  { %v3566_v9 = vadd.f32 %v2199_v27, %v2198_v8  ;;  %v2201_v38 = vpop.f32.mrb[30].mxu1 }
 0x2fb   :  { %1263 = vadd.xlane.f32.xlu1 %v1218_v42  ;;  %v2202_v60 = vpop.f32.mrb[31].mxu1 }
 0x2fc   :  { %v3570_v45 = vadd.f32 %v2202_v60, %v2201_v38 }
 0x2fd   :  { %1265 = vadd.xlane.f32.xlu0 %v1219_v14 }
 0x2ff   :  { %1267 = vadd.xlane.f32.xlu1 %v1220_v63 }
 0x300   :  { %v2204_v51 = vpop.f32.mrb[32].mxu1 }
 0x301   :  { %v2205_v54 = vpop.f32.mrb[33].mxu1 }
 0x302   :  { %v3574_v22 = vadd.f32 %v2205_v54, %v2204_v51  ;;  %v2207_v39 = vpop.f32.mrb[34].mxu1 }
 0x303   :  { %v2208_v61 = vpop.f32.mrb[35].mxu1 }
 0x304   :  { %v3576_v31 = vadd.f32 %v2208_v61, %v2207_v39 }
 0x308   :  { %v2210_v44 = vpop.f32.mrb[36].mxu1 }
 0x309   :  { %v2211_v34 = vpop.f32.mrb[37].mxu1 }
 0x30a   :  { %v3578_v2 = vadd.f32 %v2211_v34, %v2210_v44  ;;  %v2213_v48 = vpop.f32.mrb[38].mxu1 }
 0x30b   :  { %v2214_v41 = vpop.f32.mrb[39].mxu1 }
 0x30c   :  { %v3580_v7 = vadd.f32 %v2214_v41, %v2213_v48 }
 0x310   :  { %v2216_v17 = vpop.f32.mrb[40].mxu1 }
 0x311   :  { %v2217_v53 = vpop.f32.mrb[41].mxu1 }
 0x312   :  { %v3582_v18 = vadd.f32 %v2217_v53, %v2216_v17  ;;  %v2219_v58 = vpop.f32.mrb[42].mxu1 }
 0x313   :  { %v2220_v24 = vpop.f32.mrb[43].mxu1 }
 0x314   :  { %v3584_v11 = vadd.f32 %v2220_v24, %v2219_v58 }
 0x318   :  { %v2222_v21 = vpop.f32.mrb[44].mxu1 }
 0x319   :  { %v2223_v23 = vpop.f32.mrb[45].mxu1 }
 0x31a   :  { %v3586_v47 = vadd.f32 %v2223_v23, %v2222_v21  ;;  %v2225_v8 = vpop.f32.mrb[46].mxu1 }
 0x31b   :  { %v2226_v42 = vpop.f32.mrb[47].mxu1 }
 0x31c   :  { %v3588_v27 = vadd.f32 %v2226_v42, %v2225_v8 }
 0x31e   :  { %3969 = vst [vmem:[#allocation12_spill] sm:$0xff] %v3588_v27 }
 0x320   :  { %v2228_v38 = vpop.f32.mrb[48].mxu1 }
 0x321   :  { %v2229_v14 = vpop.f32.mrb[49].mxu1 }
 0x322   :  { %v3590_v60 = vadd.f32 %v2229_v14, %v2228_v38  ;;  %v2231_v63 = vpop.f32.mrb[50].mxu1 }
 0x323   :  { %v2232_v51 = vpop.f32.mrb[51].mxu1 }
 0x324   :  { %v3592_v54 = vadd.f32 %v2232_v51, %v2231_v63 }
 0x328   :  { %v2234_v39 = vpop.f32.mrb[52].mxu1  ;;  %v1154_v61 = vpop.xlane.xlu0 %1153 }
 0x329   :  { %v2235_v44 = vpop.f32.mrb[53].mxu1  ;;  %v1271_v24 = vmul.f32 0.0078125, %v1154_v61 }
 0x32a   :  { %v3594_v34 = vadd.f32 %v2235_v44, %v2234_v39  ;;  %v2237_v48 = vpop.f32.mrb[54].mxu1  ;;  %v1156_v41 = vpop.xlane.xlu1 %1155 }
 0x32b   :  { %v2238_v17 = vpop.f32.mrb[55].mxu1  ;;  %v3598_v23 = vmul.f32 0.0078125, %v1156_v41  ;;  %v1319_v14 = vmul.f32 %v1271_v24, %v1271_v24 }
 0x32c   :  { %3970 = vst [vmem:[#allocation13_spill] sm:$0xff] %v3594_v34  ;;  %v1150_v53 = vpop.xlane.xlu0 %1149  ;;  %v3596_v58 = vadd.f32 %v2238_v17, %v2237_v48 }
 0x32d   :  { %v3600_v63 = vmul.f32 0.0078125, %v1150_v53  ;;  %v1320_v61 = vmul.f32 %v3598_v23, %v3598_v23 }
 0x32e   :  { %3971 = vst [vmem:[#allocation14_spill] sm:$0xff] %v3596_v58  ;;  %v1152_v21 = vpop.xlane.xlu1 %1151 }
 0x32f   :  { %v3604_v44 = vmul.f32 0.0078125, %v1152_v21  ;;  %v1317_v53 = vmul.f32 %v3600_v63, %v3600_v63 }
 0x330   :  { %v2240_v8 = vpop.f32.mrb[56].mxu1  ;;  %v1226_v42 = vpop.xlane.xlu0 %1225 }
 0x331   :  { %v2241_v38 = vpop.f32.mrb[57].mxu1  ;;  %v1295_v51 = vmul.f32 0.0078125, %v1226_v42  ;;  %v1318_v21 = vmul.f32 %v3604_v44, %v3604_v44 }
 0x332   :  { %v3602_v3 = vadd.f32 %v2241_v38, %v2240_v8  ;;  %v2243_v39 = vpop.f32.mrb[58].mxu1  ;;  %v1228_v34 = vpop.xlane.xlu1 %1227 }
 0x333   :  { %v2244_v0 = vpop.f32.mrb[59].mxu1  ;;  %v1343_v48 = vsub.f32 %v1295_v51, %v1319_v14  ;;  %v1296_v41 = vmul.f32 0.0078125, %v1228_v34 }
 0x334   :  { %3972 = vst [vmem:[#allocation15_spill] sm:$0xff] %v3602_v3  ;;  %v3608_v17 = vadd.f32 %v2244_v0, %v2243_v39  ;;  %v1222_v58 = vpop.xlane.xlu0 %1221 }
 0x335   :  { %v1367_v52 = vmax.f32 %v1343_v48, 0.0  ;;  %v1344_v42 = vsub.f32 %v1296_v41, %v1320_v61  ;;  %v1293_v8 = vmul.f32 0.0078125, %v1222_v58  ;;  %v1575_v61 = vsub.s32 6, %v3961_v6 }
 0x336   :  { %3973 = vst [vmem:[#allocation16_spill] sm:$0xff] %v3608_v17  ;;  %v1224_v38 = vpop.xlane.xlu1 %1223  ;;  %v1487_v41 = vsub.s32 4, %v3961_v6 }
 0x337   :  { %v1391_v3 = vadd.f32 1e-05, %v1367_v52  ;;  %v1368_v46 = vmax.f32 %v1344_v42, 0.0  ;;  %v1341_v27 = vsub.f32 %v1293_v8, %v1317_v53  ;;  %v1294_v37 = vmul.f32 0.0078125, %v1224_v38 }
 0x338   :  { %v1515_v52 = vsub.s32 5, %v3961_v6  ;;  %v3626_v8 = vrot.slane %v3405_v30, %v1487_v41 }
 0x339   :  { %2477 = vrsqrt.f32 %v1391_v3  ;;  %v1392_v14 = vadd.f32 1e-05, %v1368_v46  ;;  %v1365_v34 = vmax.f32 %v1341_v27, 0.0  ;;  %v1342_v0 = vsub.f32 %v1294_v37, %v1318_v21 }
 0x33a   :  { %v3620_v37 = vrot.slane %v3405_v30, %v1575_v61  ;;  %v1439_v27 = vsub.f32 %v3411_v19, %v1271_v24  ;;  %v1440_v19 = vsub.f32 %v3414_v28, %v3598_v23  ;;  %v1438_v28 = vsub.f32 %v3422_v26, %v3604_v44 }
 0x33b   :  { %v1162_v51 = vpop.xlane.xlu0 %1161  ;;  %2479 = vrsqrt.f32 %v1392_v14  ;;  %v1389_v39 = vadd.f32 1e-05, %v1365_v34  ;;  %v1366_v17 = vmax.f32 %v1342_v0, 0.0 }
 0x33c   :  { %v3617_v53 = vmul.f32 0.0078125, %v1162_v51 }
 0x33d   :  { %v1164_v57 = vpop.xlane.xlu1 %1163  ;;  %2481 = vrsqrt.f32 %v1389_v39  ;;  %v1390_v58 = vadd.f32 1e-05, %v1366_v17  ;;  %v3629_v17 = vrot.slane %v3405_v30, %v1515_v52  ;;  %v1716_v30 = vadd.f32 %v3484_v49, %v3620_v37 }
 0x33e   :  { %v3622_v46 = vmul.f32 0.0078125, %v1164_v57  ;;  %v1323_v6 = vmul.f32 %v3617_v53, %v3617_v53  ;;  %v1708_v57 = vadd.f32 %v3482_v1, %v3620_v37  ;;  %v1437_v1 = vsub.f32 %v3418_v20, %v3600_v63 }
 0x33f   :  { %v1158_v48 = vpop.xlane.xlu0 %1157  ;;  %2483 = vrsqrt.f32 %v1390_v58 }
 0x340   :  { %v3633_v38 = vmul.f32 0.0078125, %v1158_v48  ;;  %v1324_v39 = vmul.f32 %v3622_v46, %v3622_v46  ;;  %v1719_v48 = vadd.f32 %v3489_v16, %v3620_v37 }
 0x341   :  { %v1160_v3 = vpop.xlane.xlu1 %1159 }
 0x342   :  { %v3639_v24 = vmul.f32 0.0078125, %v1160_v3  ;;  %v1321_v3 = vmul.f32 %v3633_v38, %v3633_v38 }
 0x343   :  { %v1234_v42 = vpop.xlane.xlu0 %1233  ;;  %v2478_v21 = vpop.eup %2477 }
 0x344   :  { %v1299_v14 = vmul.f32 0.0078125, %v1234_v42  ;;  %v1463_v0 = vmul.f32 %v2478_v21, %v1439_v27  ;;  %v1322_v16 = vmul.f32 %v3639_v24, %v3639_v24 }
 0x345   :  { %v1236_v34 = vpop.xlane.xlu1 %1235  ;;  %v2480_v51 = vpop.eup %2479 }
 0x346   :  { %v1347_v61 = vsub.f32 %v1299_v14, %v1323_v6  ;;  %v1300_v58 = vmul.f32 0.0078125, %v1236_v34  ;;  %v1491_v41 = vmul.f32 %v3626_v8, %v1463_v0  ;;  %v1464_v52 = vmul.f32 %v2480_v51, %v1440_v19 }
 0x347   :  { %v1230_v23 = vpop.xlane.xlu0 %1229  ;;  %v2482_v49 = vpop.eup %2481 }
 0x348   :  { %v1371_v27 = vmax.f32 %v1347_v61, 0.0  ;;  %v1348_v42 = vsub.f32 %v1300_v58, %v1324_v39  ;;  %v1297_v21 = vmul.f32 0.0078125, %v1230_v23  ;;  %v1461_v6 = vmul.f32 %v2482_v49, %v1437_v1 }
 0x349   :  { %v1519_v20 = vadd.f32 %v3629_v17, %v1491_v41  ;;  %v1232_v63 = vpop.xlane.xlu1 %1231  ;;  %v1492_v26 = vmul.f32 %v3626_v8, %v1464_v52  ;;  %v2484_v44 = vpop.eup %2483  ;;  %v1711_v52 = vadd.f32 %v3499_v29, %v3620_v37  ;;  %v3669_v29 = vadd.f32 %v3525_v33, %v3620_v37 }
 0x34a   :  { %v1395_v14 = vadd.f32 1e-05, %v1371_v27  ;;  %v1372_v34 = vmax.f32 %v1348_v42, 0.0  ;;  %v1345_v19 = vsub.f32 %v1297_v21, %v1321_v3  ;;  %v1298_v0 = vmul.f32 0.0078125, %v1232_v63 }
 0x34b   :  { %v1489_v51 = vmul.f32 %v3626_v8, %v1461_v6  ;;  %v1462_v4 = vmul.f32 %v2484_v44, %v1438_v28  ;;  %v1804_v61 = vadd.f32 %v1716_v30, %v1519_v20  ;;  %v1520_v39 = vadd.f32 %v3629_v17, %v1492_v26 }
 0x34c   :  { %2485 = vrsqrt.f32 %v1395_v14  ;;  %v1396_v58 = vadd.f32 1e-05, %v1372_v34  ;;  %v1369_v23 = vmax.f32 %v1345_v19, 0.0  ;;  %v1346_v1 = vsub.f32 %v1298_v0, %v1322_v16  ;;  %v1170_v3 = vpop.xlane.xlu0 %1169 }
 0x34d   :  { %v1517_v41 = vadd.f32 %v3629_v17, %v1489_v51  ;;  %v1490_v49 = vmul.f32 %v3626_v8, %v1462_v4  ;;  %v1852_v27 = vmul.f32 0.70710677, %v1804_v61  ;;  %v1805_v21 = vadd.f32 %v1719_v48, %v1520_v39 }
 0x34e   :  { %2487 = vrsqrt.f32 %v1396_v58  ;;  %v1393_v42 = vadd.f32 1e-05, %v1369_v23  ;;  %v1370_v6 = vmax.f32 %v1346_v1, 0.0  ;;  %v1172_v20 = vpop.xlane.xlu1 %1171  ;;  %v3673_v44 = vadd.f32 %v3531_v36, %v3620_v37 }
 0x34f   :  { %v1802_v28 = vadd.f32 %v1708_v57, %v1517_v41  ;;  %v1518_v30 = vadd.f32 %v3629_v17, %v1490_v49  ;;  %2489 = verf.f32 %v1852_v27  ;;  %v1853_v16 = vmul.f32 0.70710677, %v1805_v21 }
 0x350   :  { %2491 = vrsqrt.f32 %v1393_v42  ;;  %v1166_v4 = vpop.xlane.xlu0 %1165  ;;  %v3675_v57 = vmul.f32 0.0078125, %v1170_v3  ;;  %v1732_v48 = vadd.f32 %v3549_v15, %v3620_v37  ;;  %v3681_v14 = vadd.f32 %v3555_v25, %v3620_v37 }
 0x351   :  { %v1850_v63 = vmul.f32 0.70710677, %v1802_v28  ;;  %v3665_v26 = vadd.f32 %v1711_v52, %v1518_v30  ;;  %v3685_v34 = vadd.f32 %v3566_v9, %v3620_v37  ;;  %v1394_v19 = vadd.f32 1e-05, %v1370_v6 }
 0x352   :  { %v1168_v0 = vpop.xlane.xlu1 %1167  ;;  %v3690_v36 = vadd.f32 %v3570_v45, %v3620_v37  ;;  %v3692_v51 = vmul.f32 0.0078125, %v1172_v20  ;;  %v3696_v15 = vadd.f32 %v3574_v22, %v3620_v37  ;;  %v3700_v25 = vadd.f32 %v3576_v31, %v3620_v37 }
 0x353   :  { %2493 = verf.f32 %v1850_v63  ;;  %v1851_v33 = vmul.f32 0.70710677, %v3665_v26  ;;  %v1443_v9 = vsub.f32 %v3435_v55, %v3617_v53  ;;  %v3704_v39 = vmul.f32 0.0078125, %v1166_v4 }
 0x354   :  { %2495 = verf.f32 %v1853_v16  ;;  %v1242_v58 = vpop.xlane.xlu0 %1241  ;;  %v3708_v45 = vadd.f32 %v3578_v2, %v3620_v37  ;;  %v1444_v22 = vsub.f32 %v3438_v13, %v3622_v46  ;;  %v1441_v1 = vsub.f32 %v3442_v5, %v3633_v38 }
 0x355   :  { %2497 = verf.f32 %v1851_v33  ;;  %v1327_v31 = vmul.f32 %v3675_v57, %v3675_v57  ;;  %v1303_v41 = vmul.f32 0.0078125, %v1242_v58  ;;  %v1828_v55 = vmul.f32 0.5, %v1804_v61 }
 0x356   :  { %v2486_v23 = vpop.eup %2485  ;;  %2499 = vrsqrt.f32 %v1394_v19  ;;  %v3716_v53 = vmul.f32 0.0078125, %v1168_v0  ;;  %v1244_v49 = vpop.xlane.xlu1 %1243  ;;  %v1829_v2 = vmul.f32 0.5, %v1805_v21  ;;  %v1328_v3 = vmul.f32 %v3692_v51, %v3692_v51 }
 0x357   :  { %v1467_v52 = vmul.f32 %v2486_v23, %v1443_v9  ;;  %v1351_v42 = vsub.f32 %v1303_v41, %v1327_v31  ;;  %v1304_v13 = vmul.f32 0.0078125, %v1244_v49  ;;  %v1826_v30 = vmul.f32 0.5, %v1802_v28 }
 0x358   :  { %v2488_v27 = vpop.eup %2487  ;;  %v1325_v5 = vmul.f32 %v3704_v39, %v3704_v39  ;;  %v1238_v38 = vpop.xlane.xlu0 %1237  ;;  %v1326_v21 = vmul.f32 %v3716_v53, %v3716_v53 }
 0x359   :  { %v2490_v46 = vpop.eup %2489  ;;  %v1495_v61 = vmul.f32 %v3626_v8, %v1467_v52  ;;  %v1468_v6 = vmul.f32 %v2488_v27, %v1444_v22  ;;  %v1375_v63 = vmax.f32 %v1351_v42, 0.0  ;;  %v1352_v4 = vsub.f32 %v1304_v13, %v1328_v3 }
 0x35a   :  { %v2492_v20 = vpop.eup %2491  ;;  %v1900_v16 = vadd.f32 1.0, %v2490_v46  ;;  %v1301_v33 = vmul.f32 0.0078125, %v1238_v38  ;;  %v1240_v0 = vpop.xlane.xlu1 %1239 }
 0x35b   :  { %v1523_v19 = vadd.f32 %v3629_v17, %v1495_v61  ;;  %v1496_v28 = vmul.f32 %v3626_v8, %v1468_v6  ;;  %v1465_v9 = vmul.f32 %v2492_v20, %v1441_v1  ;;  %v1399_v23 = vadd.f32 1e-05, %v1375_v63 }
 0x35c   :  { %v1924_v58 = vmul.f32 %v1900_v16, %v1828_v55  ;;  %v1376_v31 = vmax.f32 %v1352_v4, 0.0  ;;  %v1349_v41 = vsub.f32 %v1301_v33, %v1325_v5  ;;  %v1302_v52 = vmul.f32 0.0078125, %v1240_v0 }
 0x35d   :  { %v2494_v49 = vpop.eup %2493  ;;  %v1808_v22 = vadd.f32 %v1732_v48, %v1523_v19  ;;  %v1524_v27 = vadd.f32 %v3629_v17, %v1496_v28  ;;  %v1493_v3 = vmul.f32 %v3626_v8, %v1465_v9  ;;  %2501 = vrsqrt.f32 %v1399_v23 }
 0x35e   :  { %v2496_v42 = vpop.eup %2495  ;;  %v1898_v13 = vadd.f32 1.0, %v2494_v49  ;;  %1948 = vst [vmem:[#allocation2 + $0x10] sm:$0xff] %v1924_v58  ;;  %v1400_v46 = vadd.f32 1e-05, %v1376_v31  ;;  %v1373_v38 = vmax.f32 %v1349_v41, 0.0  ;;  %v1178_v61 = vpop.xlane.xlu0 %1177  ;;  %v1827_v1 = vmul.f32 0.5, %v3665_v26 }
 0x35f   :  { %v2498_v6 = vpop.eup %2497  ;;  %v1901_v55 = vadd.f32 1.0, %v2496_v42  ;;  %v1856_v20 = vmul.f32 0.70710677, %v1808_v22  ;;  %v1350_v5 = vsub.f32 %v1302_v52, %v1326_v21  ;;  %v1809_v28 = vadd.f32 %v3681_v14, %v1524_v27 }
 0x360   :  { %v1922_v16 = vmul.f32 %v1898_v13, %v1826_v30  ;;  %v1899_v48 = vadd.f32 1.0, %v2498_v6  ;;  %2503 = vrsqrt.f32 %v1400_v46  ;;  %v1397_v63 = vadd.f32 1e-05, %v1373_v38  ;;  %v1180_v4 = vpop.xlane.xlu1 %1179  ;;  %v2500_v33 = vpop.eup %2499 }
 0x361   :  { %v1925_v19 = vmul.f32 %v1901_v55, %v1829_v2  ;;  %2505 = verf.f32 %v1856_v20  ;;  %v1374_v0 = vmax.f32 %v1350_v5, 0.0  ;;  %v1442_v9 = vsub.f32 %v3446_v32, %v3639_v24 }
 0x362   :  { %1946 = vst [vmem:[#allocation2] sm:$0xff] %v1922_v16  ;;  %v1923_v58 = vmul.f32 %v1899_v48, %v1827_v1  ;;  %2507 = vrsqrt.f32 %v1397_v63  ;;  %v1521_v26 = vadd.f32 %v3629_v17, %v1493_v3  ;;  %v1174_v21 = vpop.xlane.xlu0 %1173  ;;  %v1857_v23 = vmul.f32 0.70710677, %v1809_v28 }
 0x363   :  { %1949 = vst [vmem:[#allocation2 + $0x18] sm:$0xff] %v1925_v19  ;;  %v1398_v30 = vadd.f32 1e-05, %v1374_v0  ;;  %v3734_v31 = vmul.f32 0.0078125, %v1178_v61  ;;  %v3738_v2 = vadd.f32 %v3580_v7, %v3620_v37  ;;  %v1466_v32 = vmul.f32 %v2500_v33, %v1442_v9 }
 0x364   :  { %1947 = vst [vmem:[#allocation2 + $0x8] sm:$0xff] %v1923_v58  ;;  %v3741_v14 = vadd.f32 %v3669_v29, %v1521_v26  ;;  %v1176_v24 = vpop.xlane.xlu1 %1175  ;;  %v3745_v41 = vadd.f32 %v3582_v18, %v3620_v37  ;;  %v3749_v49 = vadd.f32 %v3584_v11, %v3620_v37  ;;  %v1447_v52 = vsub.f32 %v3459_v59, %v3675_v57 }
 0x365   :  { %2509 = vrsqrt.f32 %v1398_v30  ;;  %v3753_v7 = vmul.f32 0.0078125, %v1180_v4  ;;  %v3757_v29 = vadd.f32 %v3586_v47, %v3620_v37  ;;  %v1494_v18 = vmul.f32 %v3626_v8, %v1466_v32 }
 0x366   :  { %2511 = verf.f32 %v1857_v23  ;;  %v1854_v27 = vmul.f32 0.70710677, %v3741_v14  ;;  %v3761_v3 = vmul.f32 0.0078125, %v1174_v21  ;;  %v1250_v42 = vpop.xlane.xlu0 %1249  ;;  %v1448_v11 = vsub.f32 %v3462_v12, %v3692_v51 }
 0x367   :  { %v1331_v59 = vmul.f32 %v3734_v31, %v3734_v31  ;;  %v3767_v57 = vmul.f32 0.0078125, %v1176_v24  ;;  %v1307_v13 = vmul.f32 0.0078125, %v1250_v42  ;;  %v2502_v46 = vpop.eup %2501  ;;  %v1445_v47 = vsub.f32 %v3466_v40, %v3704_v39 }
 0x368   :  { %v1446_v38 = vsub.f32 %v3470_v62, %v3716_v53  ;;  %2513 = verf.f32 %v1854_v27  ;;  %v1522_v61 = vadd.f32 %v3629_v17, %v1494_v18  ;;  %v1252_v6 = vpop.xlane.xlu1 %1251  ;;  %v1832_v1 = vmul.f32 0.5, %v1808_v22 }
 0x369   :  { %v1332_v12 = vmul.f32 %v3753_v7, %v3753_v7  ;;  %v1355_v51 = vsub.f32 %v1307_v13, %v1331_v59  ;;  %v1308_v55 = vmul.f32 0.0078125, %v1252_v6  ;;  %v1833_v5 = vmul.f32 0.5, %v1809_v28 }
 0x36a   :  { %v2504_v20 = vpop.eup %2503  ;;  %v3777_v16 = vadd.f32 %v3673_v44, %v1522_v61  ;;  %v1329_v40 = vmul.f32 %v3761_v3, %v3761_v3  ;;  %v1246_v39 = vpop.xlane.xlu0 %1245  ;;  %v1471_v62 = vmul.f32 %v2502_v46, %v1447_v52  ;;  %v1330_v48 = vmul.f32 %v3767_v57, %v3767_v57 }
 0x36b   :  { %v2506_v53 = vpop.eup %2505  ;;  %v1379_v22 = vmax.f32 %v1355_v51, 0.0  ;;  %v1356_v63 = vsub.f32 %v1308_v55, %v1332_v12  ;;  %v1305_v4 = vmul.f32 0.0078125, %v1246_v39  ;;  %v1472_v9 = vmul.f32 %v2504_v20, %v1448_v11 }
 0x36c   :  { %v2508_v33 = vpop.eup %2507  ;;  %v1904_v19 = vadd.f32 1.0, %v2506_v53  ;;  %v1855_v0 = vmul.f32 0.70710677, %v3777_v16  ;;  %v1499_v28 = vmul.f32 %v3626_v8, %v1471_v62  ;;  %v1248_v44 = vpop.xlane.xlu1 %1247  ;;  %v1830_v20 = vmul.f32 0.5, %v3741_v14 }
 0x36d   :  { %v1469_v58 = vmul.f32 %v2508_v33, %v1445_v47  ;;  %v1403_v26 = vadd.f32 1e-05, %v1379_v22  ;;  %v1380_v21 = vmax.f32 %v1356_v63, 0.0  ;;  %v1353_v30 = vsub.f32 %v1305_v4, %v1329_v40 }
 0x36e   :  { %v1928_v23 = vmul.f32 %v1904_v19, %v1832_v1  ;;  %2515 = verf.f32 %v1855_v0  ;;  %v1527_v32 = vadd.f32 %v3629_v17, %v1499_v28  ;;  %v1306_v24 = vmul.f32 0.0078125, %v1248_v44  ;;  %v1186_v52 = vpop.xlane.xlu0 %1185 }
 0x36f   :  { %v2510_v27 = vpop.eup %2509  ;;  %v1497_v18 = vmul.f32 %v3626_v8, %v1469_v58  ;;  %2517 = vrsqrt.f32 %v1403_v26  ;;  %v1404_v42 = vadd.f32 1e-05, %v1380_v21  ;;  %v1377_v59 = vmax.f32 %v1353_v30, 0.0 }
 0x370   :  { %v2512_v13 = vpop.eup %2511  ;;  %1952 = vst [vmem:[#allocation2 + $0x30] sm:$0xff] %v1928_v23  ;;  %v1470_v46 = vmul.f32 %v2510_v27, %v1446_v38  ;;  %v1812_v11 = vadd.f32 %v3696_v15, %v1527_v32  ;;  %v1354_v47 = vsub.f32 %v1306_v24, %v1330_v48  ;;  %v1500_v61 = vmul.f32 %v3626_v8, %v1472_v9  ;;  %v1188_v6 = vpop.xlane.xlu1 %1187 }
 0x371   :  { %v1905_v1 = vadd.f32 1.0, %v2512_v13  ;;  %v1525_v12 = vadd.f32 %v3629_v17, %v1497_v18  ;;  %2519 = vrsqrt.f32 %v1404_v42  ;;  %v1401_v51 = vadd.f32 1e-05, %v1377_v59 }
 0x372   :  { %v2514_v55 = vpop.eup %2513  ;;  %v1498_v40 = vmul.f32 %v3626_v8, %v1470_v46  ;;  %v1860_v39 = vmul.f32 0.70710677, %v1812_v11  ;;  %v1378_v62 = vmax.f32 %v1354_v47, 0.0  ;;  %v1182_v53 = vpop.xlane.xlu0 %1181  ;;  %v1528_v4 = vadd.f32 %v3629_v17, %v1500_v61 }
 0x373   :  { %v1929_v38 = vmul.f32 %v1905_v1, %v1833_v5  ;;  %v1902_v22 = vadd.f32 1.0, %v2514_v55  ;;  %v1810_v15 = vadd.f32 %v3685_v34, %v1525_v12  ;;  %2521 = vrsqrt.f32 %v1401_v51 }
 0x374   :  { %v1526_v48 = vadd.f32 %v3629_v17, %v1498_v40  ;;  %2523 = verf.f32 %v1860_v39  ;;  %v1402_v63 = vadd.f32 1e-05, %v1378_v62  ;;  %v1184_v33 = vpop.xlane.xlu1 %1183  ;;  %v3795_v0 = vmul.f32 0.0078125, %v1186_v52 }
 0x375   :  { %1953 = vst [vmem:[#allocation2 + $0x38] sm:$0xff] %v1929_v38  ;;  %v1926_v19 = vmul.f32 %v1902_v22, %v1830_v20  ;;  %v1858_v14 = vmul.f32 0.70710677, %v1810_v15  ;;  %v3799_v28 = vadd.f32 %v3590_v60, %v3620_v37  ;;  %v3805_v34 = vadd.f32 %v3700_v25, %v1528_v4 }
 0x376   :  { %v3802_v5 = vadd.f32 %v3690_v36, %v1526_v48  ;;  %2525 = vrsqrt.f32 %v1402_v63  ;;  %v3807_v44 = vmul.f32 0.0078125, %v1188_v6  ;;  %v1258_v9 = vpop.xlane.xlu0 %1257  ;;  %v1451_v58 = vsub.f32 %v3487_v43, %v3734_v31 }
 0x377   :  { %1950 = vst [vmem:[#allocation2 + $0x20] sm:$0xff] %v1926_v19  ;;  %v1452_v26 = vsub.f32 %v3492_v10, %v3753_v7  ;;  %2527 = verf.f32 %v1858_v14  ;;  %v3813_v60 = vmul.f32 0.0078125, %v1182_v53  ;;  %v1449_v36 = vsub.f32 %v3496_v50, %v3761_v3 }
 0x378   :  { %v2516_v21 = vpop.eup %2515  ;;  %v1450_v25 = vsub.f32 %v3502_v56, %v3767_v57  ;;  %v1859_v30 = vmul.f32 0.70710677, %v3802_v5  ;;  %v1861_v23 = vmul.f32 0.70710677, %v3805_v34  ;;  %v1260_v32 = vpop.xlane.xlu1 %1259  ;;  %v1831_v31 = vmul.f32 0.5, %v3777_v16 }
 0x379   :  { %v2518_v43 = vpop.eup %2517  ;;  %v1903_v24 = vadd.f32 1.0, %v2516_v21  ;;  %v1335_v10 = vmul.f32 %v3795_v0, %v3795_v0  ;;  %v1336_v7 = vmul.f32 %v3807_v44, %v3807_v44  ;;  %v1333_v50 = vmul.f32 %v3813_v60, %v3813_v60 }
 0x37a   :  { %2529 = verf.f32 %v1859_v30  ;;  %v3828_v56 = vmul.f32 0.0078125, %v1184_v33  ;;  %v1311_v3 = vmul.f32 0.0078125, %v1258_v9  ;;  %v1254_v57 = vpop.xlane.xlu0 %1253  ;;  %v1312_v18 = vmul.f32 0.0078125, %v1260_v32 }
 0x37b   :  { %v2520_v52 = vpop.eup %2519  ;;  %v1927_v27 = vmul.f32 %v1903_v24, %v1831_v31  ;;  %2531 = verf.f32 %v1861_v23  ;;  %v1309_v16 = vmul.f32 0.0078125, %v1254_v57  ;;  %v1836_v42 = vmul.f32 0.5, %v1812_v11 }
 0x37c   :  { %v1334_v59 = vmul.f32 %v3828_v56, %v3828_v56  ;;  %v1359_v13 = vsub.f32 %v1311_v3, %v1335_v10  ;;  %v1475_v46 = vmul.f32 %v2518_v43, %v1451_v58  ;;  %v1256_v47 = vpop.xlane.xlu1 %1255  ;;  %v1360_v6 = vsub.f32 %v1312_v18, %v1336_v7 }
 0x37d   :  { %v2522_v61 = vpop.eup %2521  ;;  %1951 = vst [vmem:[#allocation2 + $0x28] sm:$0xff] %v1927_v27  ;;  %v1357_v1 = vsub.f32 %v1309_v16, %v1333_v50  ;;  %v1310_v12 = vmul.f32 0.0078125, %v1256_v47  ;;  %v1476_v51 = vmul.f32 %v2520_v52, %v1452_v26  ;;  %v1834_v20 = vmul.f32 0.5, %v1810_v15 }
 0x37e   :  { %v2524_v55 = vpop.eup %2523  ;;  %v1473_v40 = vmul.f32 %v2522_v61, %v1449_v36  ;;  %v1383_v39 = vmax.f32 %v1359_v13, 0.0  ;;  %v1503_v62 = vmul.f32 %v3626_v8, %v1475_v46  ;;  %v1194_v53 = vpop.xlane.xlu0 %1193  ;;  %v1384_v38 = vmax.f32 %v1360_v6, 0.0 }
 0x37f   :  { %v1908_v11 = vadd.f32 1.0, %v2524_v55  ;;  %v1381_v22 = vmax.f32 %v1357_v1, 0.0  ;;  %v1358_v48 = vsub.f32 %v1310_v12, %v1334_v59  ;;  %v1504_v14 = vmul.f32 %v3626_v8, %v1476_v51 }
 0x380   :  { %v2526_v63 = vpop.eup %2525  ;;  %v1501_v4 = vmul.f32 %v3626_v8, %v1473_v40  ;;  %v1407_v33 = vadd.f32 1e-05, %v1383_v39  ;;  %v1531_v19 = vadd.f32 %v3629_v17, %v1503_v62  ;;  %v1196_v9 = vpop.xlane.xlu1 %1195  ;;  %v1408_v21 = vadd.f32 1e-05, %v1384_v38  ;;  %v3976_v38 = vld [vmem:[#allocation7_spill] sm:$0xff] }
 0x381   :  { %v2528_v58 = vpop.eup %2527  ;;  %v1932_v15 = vmul.f32 %v1908_v11, %v1836_v42  ;;  %v1474_v26 = vmul.f32 %v2526_v63, %v1450_v25  ;;  %v1405_v36 = vadd.f32 1e-05, %v1381_v22  ;;  %v1382_v24 = vmax.f32 %v1358_v48, 0.0 }
 0x382   :  { %v1906_v30 = vadd.f32 1.0, %v2528_v58  ;;  %v1529_v23 = vadd.f32 %v3629_v17, %v1501_v4  ;;  %2533 = vrsqrt.f32 %v1407_v33  ;;  %v1816_v32 = vadd.f32 %v3745_v41, %v1531_v19  ;;  %v1190_v43 = vpop.xlane.xlu0 %1189 }
 0x383   :  { %1956 = vst [vmem:[#allocation2 + $0x50] sm:$0xff] %v1932_v15  ;;  %v1502_v31 = vmul.f32 %v3626_v8, %v1474_v26  ;;  %2535 = vrsqrt.f32 %v1408_v21  ;;  %v1532_v10 = vadd.f32 %v3629_v17, %v1504_v14  ;;  %v1835_v25 = vmul.f32 0.5, %v3802_v5 }
 0x384   :  { %v2530_v7 = vpop.eup %2529  ;;  %v1930_v50 = vmul.f32 %v1906_v30, %v1834_v20  ;;  %v1814_v3 = vadd.f32 %v3708_v45, %v1529_v23  ;;  %2537 = vrsqrt.f32 %v1405_v36  ;;  %v1192_v57 = vpop.xlane.xlu1 %1191  ;;  %v1864_v18 = vmul.f32 0.70710677, %v1816_v32 }
 0x385   :  { %v2532_v52 = vpop.eup %2531  ;;  %v1907_v27 = vadd.f32 1.0, %v2530_v7  ;;  %v1530_v41 = vadd.f32 %v3629_v17, %v1502_v31  ;;  %v1406_v16 = vadd.f32 1e-05, %v1382_v24  ;;  %v1837_v42 = vmul.f32 0.5, %v3805_v34 }
 0x386   :  { %1954 = vst [vmem:[#allocation2 + $0x40] sm:$0xff] %v1930_v50  ;;  %v1909_v59 = vadd.f32 1.0, %v2532_v52  ;;  %v1862_v13 = vmul.f32 0.70710677, %v1814_v3  ;;  %v1817_v46 = vadd.f32 %v3749_v49, %v1532_v10  ;;  %v1262_v47 = vpop.xlane.xlu0 %1261  ;;  %2539 = verf.f32 %v1864_v18  ;;  %v3974_v49 = vld [vmem:[#allocation11_spill] sm:$0xff] }
 0x387   :  { %v1931_v61 = vmul.f32 %v1907_v27, %v1835_v25  ;;  %v3846_v5 = vadd.f32 %v3738_v2, %v1530_v41  ;;  %v3850_v45 = vadd.f32 %v3592_v54, %v3620_v37  ;;  %v1455_v1 = vsub.f32 %v3513_v35, %v3795_v0  ;;  %v3975_v54 = vld [vmem:[#allocation6_spill] sm:$0xff] }
 0x388   :  { %v1933_v6 = vmul.f32 %v1909_v59, %v1837_v42  ;;  %2541 = verf.f32 %v1862_v13  ;;  %v1865_v34 = vmul.f32 0.70710677, %v1817_v46  ;;  %v1264_v12 = vpop.xlane.xlu1 %1263  ;;  %v1456_v51 = vsub.f32 %v3974_v49, %v3807_v44 }
 0x389   :  { %1955 = vst [vmem:[#allocation2 + $0x48] sm:$0xff] %v1931_v61  ;;  %v1863_v55 = vmul.f32 0.70710677, %v3846_v5  ;;  %2543 = vrsqrt.f32 %v1406_v16  ;;  %v3857_v2 = vmul.f32 0.0078125, %v1194_v53  ;;  %v1453_v20 = vsub.f32 %v3975_v54, %v3813_v60 }
 0x38a   :  { %1957 = vst [vmem:[#allocation2 + $0x58] sm:$0xff] %v1933_v6  ;;  %2545 = verf.f32 %v1865_v34  ;;  %v3861_v40 = vmul.f32 0.0078125, %v1196_v9  ;;  %v3863_v35 = vmul.f32 0.0078125, %v1190_v43  ;;  %v1266_v0 = vpop.xlane.xlu0 %1265  ;;  %v3865_v39 = vmul.f32 0.0078125, %v1192_v57 }
 0x38b   :  { %2547 = verf.f32 %v1863_v55  ;;  %v1313_v62 = vmul.f32 0.0078125, %v1262_v47  ;;  %v1314_v44 = vmul.f32 0.0078125, %v1264_v12  ;;  %v1454_v53 = vsub.f32 %v3976_v38, %v3828_v56 }
 0x38c   :  { %v2534_v11 = vpop.eup %2533  ;;  %v1838_v22 = vmul.f32 0.5, %v1814_v3  ;;  %v1840_v48 = vmul.f32 0.5, %v1816_v32  ;;  %v1337_v60 = vmul.f32 %v3863_v35, %v3863_v35  ;;  %v1268_v63 = vpop.xlane.xlu1 %1267  ;;  %v1339_v33 = vmul.f32 %v3857_v2, %v3857_v2 }
 0x38d   :  { %v2536_v4 = vpop.eup %2535  ;;  %v1338_v19 = vmul.f32 %v3865_v39, %v3865_v39  ;;  %v1315_v14 = vmul.f32 0.0078125, %v1266_v0  ;;  %v1479_v9 = vmul.f32 %v2534_v11, %v1455_v1  ;;  %v1340_v15 = vmul.f32 %v3861_v40, %v3861_v40  ;;  %v3977_v11 = vld [vmem:[#allocation12_spill] sm:$0xff] }
 0x38e   :  { %v2538_v58 = vpop.eup %2537  ;;  %v1361_v56 = vsub.f32 %v1313_v62, %v1337_v60  ;;  %v1316_v26 = vmul.f32 0.0078125, %v1268_v63  ;;  %v1480_v21 = vmul.f32 %v2536_v4, %v1456_v51  ;;  %v1841_v43 = vmul.f32 0.5, %v1817_v46  ;;  %v3978_v4 = vld [vmem:[#allocation10_spill] sm:$0xff] }
 0x38f   :  { %v1477_v36 = vmul.f32 %v2538_v58, %v1453_v20  ;;  %v1362_v30 = vsub.f32 %v1314_v44, %v1338_v19  ;;  %v1363_v23 = vsub.f32 %v1315_v14, %v1339_v33  ;;  %v1507_v32 = vmul.f32 %v3626_v8, %v1479_v9  ;;  %v3979_v14 = vld [vmem:[#allocation5_spill] sm:$0xff] }
 0x390   :  { %v1385_v31 = vmax.f32 %v1361_v56, 0.0  ;;  %v1364_v24 = vsub.f32 %v1316_v26, %v1340_v15  ;;  %v1508_v10 = vmul.f32 %v3626_v8, %v1480_v21  ;;  %v2540_v7 = vpop.eup %2539  ;;  %v1839_v54 = vmul.f32 0.5, %v3846_v5 }
 0x391   :  { %v1505_v50 = vmul.f32 %v3626_v8, %v1477_v36  ;;  %v1386_v25 = vmax.f32 %v1362_v30, 0.0  ;;  %v1387_v3 = vmax.f32 %v1363_v23, 0.0  ;;  %v1535_v57 = vadd.f32 %v3629_v17, %v1507_v32  ;;  %v3981_v23 = vld [vmem:[#allocation13_spill] sm:$0xff] }
 0x392   :  { %v2542_v52 = vpop.eup %2541  ;;  %v1912_v27 = vadd.f32 1.0, %v2540_v7  ;;  %v1409_v41 = vadd.f32 1e-05, %v1385_v31  ;;  %v1388_v18 = vmax.f32 %v1364_v24, 0.0  ;;  %v1536_v16 = vadd.f32 %v3629_v17, %v1508_v10 }
 0x393   :  { %v2544_v42 = vpop.eup %2543  ;;  %v1910_v59 = vadd.f32 1.0, %v2542_v52  ;;  %v1533_v13 = vadd.f32 %v3629_v17, %v1505_v50  ;;  %v1410_v46 = vadd.f32 1e-05, %v1386_v25  ;;  %v1411_v47 = vadd.f32 1e-05, %v1387_v3  ;;  %v3984_v25 = vld [vmem:[#allocation9_spill] sm:$0xff] }
 0x394   :  { %v2546_v61 = vpop.eup %2545  ;;  %v1936_v6 = vmul.f32 %v1912_v27, %v1840_v48  ;;  %v1478_v1 = vmul.f32 %v2544_v42, %v1454_v53  ;;  %2549 = vrsqrt.f32 %v1409_v41  ;;  %v1820_v34 = vadd.f32 %v3799_v28, %v1535_v57 }
 0x395   :  { %v2548_v12 = vpop.eup %2547  ;;  %v1934_v49 = vmul.f32 %v1910_v59, %v1838_v22  ;;  %v1913_v51 = vadd.f32 1.0, %v2546_v61  ;;  %v1818_v55 = vadd.f32 %v3757_v29, %v1533_v13  ;;  %2551 = vrsqrt.f32 %v1410_v46 }
 0x396   :  { %v1911_v20 = vadd.f32 1.0, %v2548_v12  ;;  %1960 = vst [vmem:[#allocation2 + $0x70] sm:$0xff] %v1936_v6  ;;  %v1506_v0 = vmul.f32 %v3626_v8, %v1478_v1  ;;  %2553 = vrsqrt.f32 %v1411_v47  ;;  %v1775_v38 = vadd.f32 %v3977_v11, %v3620_v37  ;;  %v3985_v11 = vld [vmem:[#allocation16_spill] sm:$0xff] }
 0x397   :  { %1958 = vst [vmem:[#allocation2 + $0x60] sm:$0xff] %v1934_v49  ;;  %v1937_v62 = vmul.f32 %v1913_v51, %v1841_v43  ;;  %v1866_v44 = vmul.f32 0.70710677, %v1818_v55  ;;  %v1868_v28 = vmul.f32 0.70710677, %v1820_v34  ;;  %v1821_v29 = vadd.f32 %v3850_v45, %v1536_v16  ;;  %v3980_v45 = vld [vmem:[#allocation8_spill] sm:$0xff] }
 0x398   :  { %v1935_v53 = vmul.f32 %v1911_v20, %v1839_v54  ;;  %v1534_v22 = vadd.f32 %v3629_v17, %v1506_v0  ;;  %v1412_v48 = vadd.f32 1e-05, %v1388_v18  ;;  %v1457_v33 = vsub.f32 %v3978_v4, %v3863_v35 }
 0x399   :  { %1961 = vst [vmem:[#allocation2 + $0x78] sm:$0xff] %v1937_v62  ;;  %2555 = verf.f32 %v1866_v44  ;;  %v1869_v60 = vmul.f32 0.70710677, %v1821_v29  ;;  %v1458_v9 = vsub.f32 %v3979_v14, %v3865_v39  ;;  %v1459_v15 = vsub.f32 %v3980_v45, %v3857_v2  ;;  %v3982_v39 = vld [vmem:[#allocation14_spill] sm:$0xff]  ;;  %v3983_v2 = vld [vmem:[#allocation15_spill] sm:$0xff] }
 0x39a   :  { %1959 = vst [vmem:[#allocation2 + $0x68] sm:$0xff] %v1935_v53  ;;  %v1819_v5 = vadd.f32 %v1775_v38, %v1534_v22  ;;  %2557 = verf.f32 %v1868_v28  ;;  %v1788_v32 = vadd.f32 %v3981_v23, %v3620_v37  ;;  %v1791_v24 = vadd.f32 %v3982_v39, %v3620_v37 }
 0x39b   :  { %2559 = vrsqrt.f32 %v1412_v48  ;;  %v1796_v7 = vadd.f32 %v3983_v2, %v3620_v37  ;;  %v1460_v3 = vsub.f32 %v3984_v25, %v3861_v40  ;;  %v1842_v57 = vmul.f32 0.5, %v1818_v55 }
 0x39c   :  { %v1867_v63 = vmul.f32 0.70710677, %v1819_v5  ;;  %2561 = verf.f32 %v1869_v60  ;;  %v1844_v18 = vmul.f32 0.5, %v1820_v34  ;;  %v1845_v1 = vmul.f32 0.5, %v1821_v29 }
 0x39d   :  { %v1843_v20 = vmul.f32 0.5, %v1819_v5  ;;  %v1799_v38 = vadd.f32 %v3985_v11, %v3620_v37 }
 0x39e   :  { %v2550_v19 = vpop.eup %2549  ;;  %2563 = verf.f32 %v1867_v63 }
 0x39f   :  { %v2552_v58 = vpop.eup %2551  ;;  %v1481_v56 = vmul.f32 %v2550_v19, %v1457_v33 }
 0x3a0   :  { %v2554_v26 = vpop.eup %2553  ;;  %v1482_v21 = vmul.f32 %v2552_v58, %v1458_v9 }
 0x3a1   :  { %v1509_v36 = vmul.f32 %v3626_v8, %v1481_v56  ;;  %v1483_v30 = vmul.f32 %v2554_v26, %v1459_v15 }
 0x3a2   :  { %v1510_v35 = vmul.f32 %v3626_v8, %v1482_v21 }
 0x3a3   :  { %v2556_v43 = vpop.eup %2555  ;;  %v1537_v31 = vadd.f32 %v3629_v17, %v1509_v36  ;;  %v1511_v10 = vmul.f32 %v3626_v8, %v1483_v30 }
 0x3a4   :  { %v2558_v50 = vpop.eup %2557  ;;  %v1914_v52 = vadd.f32 1.0, %v2556_v43  ;;  %v1538_v27 = vadd.f32 %v3629_v17, %v1510_v35 }
 0x3a5   :  { %v2560_v41 = vpop.eup %2559  ;;  %v1916_v16 = vadd.f32 1.0, %v2558_v50  ;;  %v1822_v42 = vadd.f32 %v1788_v32, %v1537_v31  ;;  %v1539_v59 = vadd.f32 %v3629_v17, %v1511_v10 }
 0x3a6   :  { %v2562_v13 = vpop.eup %2561  ;;  %v1938_v46 = vmul.f32 %v1914_v52, %v1842_v57  ;;  %v1823_v47 = vadd.f32 %v1791_v24, %v1538_v27  ;;  %v1484_v61 = vmul.f32 %v2560_v41, %v1460_v3 }
 0x3a7   :  { %v1940_v6 = vmul.f32 %v1916_v16, %v1844_v18  ;;  %v1917_v12 = vadd.f32 1.0, %v2562_v13  ;;  %v1870_v49 = vmul.f32 0.70710677, %v1822_v42  ;;  %v1824_v55 = vadd.f32 %v1796_v7, %v1539_v59 }
 0x3a8   :  { %v2564_v51 = vpop.eup %2563  ;;  %1962 = vst [vmem:[#allocation2 + $0x80] sm:$0xff] %v1938_v46  ;;  %v1871_v40 = vmul.f32 0.70710677, %v1823_v47  ;;  %v1512_v54 = vmul.f32 %v3626_v8, %v1484_v61  ;;  %v1846_v29 = vmul.f32 0.5, %v1822_v42  ;;  %v1847_v60 = vmul.f32 0.5, %v1823_v47 }
 0x3a9   :  { %v1915_v34 = vadd.f32 1.0, %v2564_v51  ;;  %1964 = vst [vmem:[#allocation2 + $0x90] sm:$0xff] %v1940_v6  ;;  %v1941_v0 = vmul.f32 %v1917_v12, %v1845_v1  ;;  %2565 = verf.f32 %v1870_v49  ;;  %v1872_v62 = vmul.f32 0.70710677, %v1824_v55 }
 0x3aa   :  { %2567 = verf.f32 %v1871_v40  ;;  %v1540_v44 = vadd.f32 %v3629_v17, %v1512_v54  ;;  %v1848_v17 = vmul.f32 0.5, %v1824_v55 }
 0x3ab   :  { %v1939_v28 = vmul.f32 %v1915_v34, %v1843_v20  ;;  %1965 = vst [vmem:[#allocation2 + $0x98] sm:$0xff] %v1941_v0  ;;  %2569 = verf.f32 %v1872_v62 }
 0x3ac   :  { %v1825_v53 = vadd.f32 %v1799_v38, %v1540_v44 }
 0x3ad   :  { %1963 = vst [vmem:[#allocation2 + $0x88] sm:$0xff] %v1939_v28 }
 0x3ae   :  { %v1873_v22 = vmul.f32 0.70710677, %v1825_v53  ;;  %v1849_v58 = vmul.f32 0.5, %v1825_v53 }
 0x3b0   :  { %2571 = verf.f32 %v1873_v22 }
 0x3b3   :  { %v2566_v8 = vpop.eup %2565 }
 0x3b4   :  { %v2568_v48 = vpop.eup %2567  ;;  %v1918_v5 = vadd.f32 1.0, %v2566_v8 }
 0x3b5   :  { %v1919_v63 = vadd.f32 1.0, %v2568_v48  ;;  %v2570_v4 = vpop.eup %2569 }
 0x3b6   :  { %v1942_v33 = vmul.f32 %v1918_v5, %v1846_v29  ;;  %v1920_v14 = vadd.f32 1.0, %v2570_v4 }
 0x3b7   :  { %v1943_v19 = vmul.f32 %v1919_v63, %v1847_v60 }
 0x3b8   :  { %1966 = vst [vmem:[#allocation2 + $0xa0] sm:$0xff] %v1942_v33  ;;  %v1944_v37 = vmul.f32 %v1920_v14, %v1848_v17 }
 0x3b9   :  { %1967 = vst [vmem:[#allocation2 + $0xa8] sm:$0xff] %v1943_v19 }
 0x3ba   :  { %v2572_v9 = vpop.eup %2571  ;;  %1968 = vst [vmem:[#allocation2 + $0xb0] sm:$0xff] %v1944_v37 }
 0x3bb   :  { %v1921_v45 = vadd.f32 1.0, %v2572_v9 }
 0x3bd   :  { %v1945_v15 = vmul.f32 %v1921_v45, %v1849_v58 }
 0x3bf   :  { %1969 = vst [vmem:[#allocation2 + $0xb8] sm:$0xff] %v1945_v15 }
 0x3c0   :  { %2604 = shalt.err (!%p2601_p4)
}
 0x3c1   :  { %s2605_s6 = scalar_lea.hbm %s3932_s5, 3072 }
 0x3c2   :  { %p2606_p5 = scmp.ne.s32.totalorder %s3932_s5, %s2605_s6  ;;  %p2609_p6 = scmp.lt.u32.totalorder %s2605_s6, %s3932_s5 }
 0x3c4   :  { %p2611_p7 = pnand %p2609_p6, %p2606_p5 }
 0x3c6   :  { %2614 = shalt.err (!%p2611_p7)
}
 0x3c7   :  { %s2618_s10 = smov 128   ;;  %s2619_s11 = smov 8  }
 0x3c8   :  { %1981 = dma.vmem_to_hbm [thread:$0]  %s1976_s4, 3072, %s3932_s5, [#allocation3], %s2618_s10, %s2618_s10, %s2619_s11  }
 0x3c9   :  { %2615 = dma.done.wait [#allocation3], 3072  }
 0x3ca   :  { %2616 = vsyncadd [#allocation3], 4294964224 }
 0x3cb   :  { %1985 = vsyncpa [#allocation3], 1 }

// kernel: _residual_block_impl.1
= control target key start
LH: loop header
LB: loop body
LE: loop exit
PB: predicated region body
PF: predicated region fallthrough
CT: control target
= control target key end

     0   :  { %s3927_s0 = inlined_call_operand.vmem [shape: bf16[192,256], index: 0, kind: input, shape index: {}]   ;;  %s3928_s1 = inlined_call_operand.vmem [shape: bf16[256,128], index: 1, kind: input, shape index: {}]   ;;  %s3929_s2 = inlined_call_operand.vmem [shape: bf16[128,128], index: 2, kind: input, shape index: {}]   ;;  %s3930_s3 = inlined_call_operand.vmem [shape: bf16[256,128], index: 3, kind: input, shape index: {}]   ;;  %s3931_s4 = inlined_call_operand.vmem [shape: f32[8,128], index: 4, kind: input, shape index: {}]   ;;  %s3932_s5 = inlined_call_operand.hbm [shape: f32[192,128], index: 5, kind: output, shape index: {}]  }
   0x1   :  { %v2305_v0 = vld [vmem:[%s3928_s1 + $0x40] sm:$0xff]   ;;  %v2307_v2 = vld [vmem:[%s3928_s1 + $0x48] sm:$0xff]   ;;  %v2309_v4 = vld [vmem:[%s3928_s1 + $0x50] sm:$0xff]  }
   0x2   :  { %v2306_v1 = vld [vmem:[%s3928_s1] sm:$0xff]   ;;  %2050 = vmatprep.subr.bf16.mxu0 %v2305_v0  ;;  %v2308_v3 = vld [vmem:[%s3928_s1 + $0x8] sm:$0xff]   ;;  %v2310_v5 = vld [vmem:[%s3928_s1 + $0x10] sm:$0xff]  }
   0x3   :  { %2051 = vmatpush3.bf16.msra.mxu0 %v2306_v1  ;;  %v2311_v6 = vld [vmem:[%s3928_s1 + $0x58] sm:$0xff]   ;;  %v2313_v8 = vld [vmem:[%s3928_s1 + $0x60] sm:$0xff]   ;;  %v2315_v10 = vld [vmem:[%s3928_s1 + $0x68] sm:$0xff]  }
   0x4   :  { %2052 = vmatprep.subr.bf16.mxu0 %v2307_v2  ;;  %v2312_v7 = vld [vmem:[%s3928_s1 + $0x18] sm:$0xff]   ;;  %v2314_v9 = vld [vmem:[%s3928_s1 + $0x20] sm:$0xff]   ;;  %v2316_v12 = vld [vmem:[%s3928_s1 + $0x28] sm:$0xff]  }
   0x5   :  { %v2323_v11 = vld [vmem:[%s3927_s0 + $0x4] ss:$8 sps:$4 sm:$0xff]   ;;  %v2317_v13 = vld [vmem:[%s3928_s1 + $0x70] sm:$0xff]   ;;  %v2319_v15 = vld [vmem:[%s3928_s1 + $0x78] sm:$0xff]  }
   0x6   :  { %331 = vmatprep.mubr.bf16.mxu0 %v2323_v11  ;;  %v2318_v14 = vld [vmem:[%s3928_s1 + $0x30] sm:$0xff]   ;;  %v2320_v16 = vld [vmem:[%s3928_s1 + $0x38] sm:$0xff]   ;;  %v2704_v17 = vld [vmem:[%s3927_s0] ss:$8 sps:$4 sm:$0xff]  }
   0x7   :  { %2053 = vmatpush3.bf16.msra.mxu0 %v2308_v3  ;;  %v2709_v18 = vld [vmem:[%s3927_s0 + $0x14] ss:$8 sps:$4 sm:$0xff]   ;;  %v2716_v19 = vld [vmem:[%s3927_s0 + $0x10] ss:$8 sps:$4 sm:$0xff]   ;;  %v2721_v20 = vld [vmem:[%s3927_s0 + $0x24] ss:$8 sps:$4 sm:$0xff]  }
   0x8   :  { %2054 = vmatprep.subr.bf16.mxu0 %v2309_v4  ;;  %v2329_v21 = vld [vmem:[%s3927_s0 + $0x20] ss:$8 sps:$4 sm:$0xff]   ;;  %v2330_v22 = vld [vmem:[%s3927_s0 + $0x34] ss:$8 sps:$4 sm:$0xff]  }
   0xb   :  { %2055 = vmatpush3.bf16.msra.mxu0 %v2310_v5 }
   0xc   :  { %2056 = vmatprep.subr.bf16.mxu0 %v2311_v6 }
   0xf   :  { %2057 = vmatpush3.bf16.msra.mxu0 %v2312_v7 }
  0x10   :  { %2058 = vmatprep.subr.bf16.mxu0 %v2313_v8 }
  0x13   :  { %2059 = vmatpush3.bf16.msra.mxu0 %v2314_v9 }
  0x14   :  { %2060 = vmatprep.subr.bf16.mxu0 %v2315_v10 }
  0x17   :  { %2061 = vmatpush3.bf16.msra.mxu0 %v2316_v12 }
  0x18   :  { %2062 = vmatprep.subr.bf16.mxu0 %v2317_v13 }
  0x1b   :  { %2063 = vmatpush3.bf16.msra.mxu0 %v2318_v14 }
  0x1c   :  { %2064 = vmatprep.subr.bf16.mxu0 %v2319_v15 }
  0x1f   :  { %2065 = vmatpush3.bf16.msra.mxu0 %v2320_v16 }
  0x22   :  { %332 = vmatmul.mubr.bf16.vlgmr.msra.gmra.mrb[0].mxu0 %v2704_v17 }
  0x23   :  { %339 = vmatprep.mubr.bf16.mxu0 %v2709_v18 }
  0x2a   :  { %340 = vmatmul.mubr.bf16.gmra.mrb[4].mxu0 %v2716_v19 }
  0x2b   :  { %347 = vmatprep.mubr.bf16.mxu0 %v2721_v20 }
  0x2c   :  { %10 = vsyncpa [#allocation3], 0  ;;  %v2332_v23 = vld [vmem:[%s3927_s0 + $0x30] ss:$8 sps:$4 sm:$0xff]   ;;  %v2333_v24 = vld [vmem:[%s3927_s0 + $0x44] ss:$8 sps:$4 sm:$0xff]   ;;  %v79_v40 = vlaneseq }
  0x2d   :  { %v2335_v25 = vld [vmem:[%s3927_s0 + $0x40] ss:$8 sps:$4 sm:$0xff]   ;;  %v2336_v26 = vld [vmem:[%s3927_s0 + $0x54] ss:$8 sps:$4 sm:$0xff]   ;;  %v2338_v27 = vld [vmem:[%s3927_s0 + $0x50] ss:$8 sps:$4 sm:$0xff]  }
  0x2e   :  { %v2339_v28 = vld [vmem:[%s3927_s0 + $0x64] ss:$8 sps:$4 sm:$0xff]   ;;  %v2341_v29 = vld [vmem:[%s3927_s0 + $0x60] ss:$8 sps:$4 sm:$0xff]   ;;  %v2342_v30 = vld [vmem:[%s3927_s0 + $0x74] ss:$8 sps:$4 sm:$0xff]  }
  0x2f   :  { %v2344_v31 = vld [vmem:[%s3927_s0 + $0x70] ss:$8 sps:$4 sm:$0xff]   ;;  %v2345_v32 = vld [vmem:[%s3927_s0 + $0x84] ss:$8 sps:$4 sm:$0xff]   ;;  %v2347_v33 = vld [vmem:[%s3927_s0 + $0x80] ss:$8 sps:$4 sm:$0xff]  }
  0x30   :  { %v2348_v34 = vld [vmem:[%s3927_s0 + $0x94] ss:$8 sps:$4 sm:$0xff]   ;;  %v2350_v35 = vld [vmem:[%s3927_s0 + $0x90] ss:$8 sps:$4 sm:$0xff]   ;;  %v2351_v36 = vld [vmem:[%s3927_s0 + $0xa4] ss:$8 sps:$4 sm:$0xff]  }
  0x31   :  { %v2353_v37 = vld [vmem:[%s3927_s0 + $0xa0] ss:$8 sps:$4 sm:$0xff]   ;;  %v2354_v38 = vld [vmem:[%s3927_s0 + $0xb4] ss:$8 sps:$4 sm:$0xff]   ;;  %v2356_v39 = vld [vmem:[%s3927_s0 + $0xb0] ss:$8 sps:$4 sm:$0xff]  }
  0x32   :  { %348 = vmatmul.mubr.bf16.gmra.mrb[8].mxu0 %v2329_v21  ;;  %v2782_v41 = vshrl.u32 %v79_v40, 7  ;;  %v2788_v43 = vld [vmem:[%s3931_s4] sm:$0xff] }
  0x33   :  { %355 = vmatprep.mubr.bf16.mxu0 %v2330_v22 }
  0x34   :  { %3948 = vst [vmem:[#allocation5_spill] sm:$0xff] %v2782_v41  ;;  %v81_v42 = vsub.s32 0, %v2782_v41 }
  0x36   :  { %v2791_v45 = vrot.slane %v2788_v43, %v81_v42 }
  0x3a   :  { %356 = vmatmul.mubr.bf16.gmra.mrb[12].mxu0 %v2332_v23 }
  0x3b   :  { %363 = vmatprep.mubr.bf16.mxu0 %v2333_v24 }
  0x42   :  { %364 = vmatmul.mubr.bf16.gmra.mrb[16].mxu0 %v2335_v25 }
  0x43   :  { %371 = vmatprep.mubr.bf16.mxu0 %v2336_v26 }
  0x4a   :  { %372 = vmatmul.mubr.bf16.gmra.mrb[20].mxu0 %v2338_v27 }
  0x4b   :  { %379 = vmatprep.mubr.bf16.mxu0 %v2339_v28 }
  0x52   :  { %380 = vmatmul.mubr.bf16.gmra.mrb[24].mxu0 %v2341_v29 }
  0x53   :  { %387 = vmatprep.mubr.bf16.mxu0 %v2342_v30 }
  0x5a   :  { %388 = vmatmul.mubr.bf16.gmra.mrb[28].mxu0 %v2344_v31 }
  0x5b   :  { %395 = vmatprep.mubr.bf16.mxu0 %v2345_v32 }
  0x62   :  { %396 = vmatmul.mubr.bf16.gmra.mrb[32].mxu0 %v2347_v33 }
  0x63   :  { %403 = vmatprep.mubr.bf16.mxu0 %v2348_v34 }
  0x6a   :  { %404 = vmatmul.mubr.bf16.gmra.mrb[36].mxu0 %v2350_v35 }
  0x6b   :  { %411 = vmatprep.mubr.bf16.mxu0 %v2351_v36 }
  0x72   :  { %412 = vmatmul.mubr.bf16.gmra.mrb[40].mxu0 %v2353_v37 }
  0x73   :  { %419 = vmatprep.mubr.bf16.mxu0 %v2354_v38 }
  0x7a   :  { %420 = vmatmul.mubr.bf16.gmra.mrb[44].mxu0 %v2356_v39 }
  0x7b   :  { %1705 = vmatprep.mubr.bf16.mxu0 %v2323_v11 }
  0xf5   :  { %v2066_v44 = vpop.f32.mrb[0].mxu0 }
  0xf6   :  { %v2067_v46 = vpop.f32.mrb[1].mxu0 }
  0xf7   :  { %v2068_v47 = vadd.f32 %v2067_v46, %v2066_v44  ;;  %v2069_v48 = vpop.f32.mrb[2].mxu0  ;;  %v2357_v46 = vld [vmem:[%s3929_s2] sm:$0xff]  }
  0xf8   :  { %v2070_v49 = vpop.f32.mrb[3].mxu0  ;;  %2246 = vmatprep.subr.bf16.mxu1 %v2357_v46 }
  0xf9   :  { %v2794_v50 = vadd.f32 %v2068_v47, %v2791_v45  ;;  %v2071_v51 = vadd.f32 %v2070_v49, %v2069_v48  ;;  %2247 = vmatpush3.bf16.msra.mxu1 %v2357_v46 }
  0xfb   :  { %v2797_v52 = vadd.f32 %v2071_v51, %v2791_v45  ;;  %428 = vadd.xlane.f32.xlu0 %v2794_v50  ;;  %v476_v61 = vmul.f32 %v2794_v50, %v2794_v50 }
  0xfd   :  { %v2072_v53 = vpop.f32.mrb[4].mxu0  ;;  %v477_v54 = vmul.f32 %v2797_v52, %v2797_v52 }
  0xfe   :  { %v2073_v55 = vpop.f32.mrb[5].mxu0 }
  0xff   :  { %v2074_v56 = vadd.f32 %v2073_v55, %v2072_v53  ;;  %v2075_v57 = vpop.f32.mrb[6].mxu0  ;;  %502 = vadd.xlane.f32.xlu1 %v477_v54  ;;  %430 = vadd.xlane.f32.xlu0 %v2797_v52  ;;  %v2358_v55 = vld [vmem:[%s3929_s2 + $0x8] sm:$0xff]  }
 0x100   :  { %v2076_v58 = vpop.f32.mrb[7].mxu0  ;;  %2248 = vmatprep.subr.bf16.mxu1 %v2358_v55 }
 0x101   :  { %v2804_v59 = vadd.f32 %v2074_v56, %v2791_v45  ;;  %v2077_v60 = vadd.f32 %v2076_v58, %v2075_v57  ;;  %2249 = vmatpush3.bf16.msra.mxu1 %v2358_v55 }
 0x103   :  { %432 = vadd.xlane.f32.xlu1 %v2804_v59  ;;  %500 = vadd.xlane.f32.xlu0 %v476_v61  ;;  %v2810_v62 = vadd.f32 %v2077_v60, %v2791_v45  ;;  %v478_v0 = vmul.f32 %v2804_v59, %v2804_v59  ;;  %v2359_v61 = vld [vmem:[%s3929_s2 + $0x10] sm:$0xff]  }
 0x104   :  { %2250 = vmatprep.subr.bf16.mxu1 %v2359_v61 }
 0x105   :  { %v2078_v63 = vpop.f32.mrb[8].mxu0  ;;  %v479_v7 = vmul.f32 %v2810_v62, %v2810_v62  ;;  %2251 = vmatpush3.bf16.msra.mxu1 %v2359_v61 }
 0x106   :  { %v2079_v1 = vpop.f32.mrb[9].mxu0 }
 0x107   :  { %v2080_v2 = vadd.f32 %v2079_v1, %v2078_v63  ;;  %v2081_v3 = vpop.f32.mrb[10].mxu0  ;;  %434 = vadd.xlane.f32.xlu1 %v2810_v62  ;;  %504 = vadd.xlane.f32.xlu0 %v478_v0 }
 0x108   :  { %v2082_v4 = vpop.f32.mrb[11].mxu0 }
 0x109   :  { %v2816_v5 = vadd.f32 %v2080_v2, %v2791_v45  ;;  %v2083_v6 = vadd.f32 %v2082_v4, %v2081_v3 }
 0x10b   :  { %506 = vadd.xlane.f32.xlu1 %v479_v7  ;;  %436 = vadd.xlane.f32.xlu0 %v2816_v5  ;;  %v480_v8 = vmul.f32 %v2816_v5, %v2816_v5  ;;  %v2824_v9 = vadd.f32 %v2083_v6, %v2791_v45  ;;  %v2360_v6 = vld [vmem:[%s3929_s2 + $0x18] sm:$0xff]  }
 0x10c   :  { %2252 = vmatprep.subr.bf16.mxu1 %v2360_v6 }
 0x10d   :  { %v2084_v10 = vpop.f32.mrb[12].mxu0  ;;  %v481_v21 = vmul.f32 %v2824_v9, %v2824_v9  ;;  %2253 = vmatpush3.bf16.msra.mxu1 %v2360_v6 }
 0x10e   :  { %v2085_v11 = vpop.f32.mrb[13].mxu0 }
 0x10f   :  { %v2086_v12 = vadd.f32 %v2085_v11, %v2084_v10  ;;  %v2087_v13 = vpop.f32.mrb[14].mxu0  ;;  %438 = vadd.xlane.f32.xlu1 %v2824_v9  ;;  %508 = vadd.xlane.f32.xlu0 %v480_v8 }
 0x110   :  { %v2088_v14 = vpop.f32.mrb[15].mxu0 }
 0x111   :  { %v2828_v15 = vadd.f32 %v2086_v12, %v2791_v45  ;;  %v2089_v16 = vadd.f32 %v2088_v14, %v2087_v13  ;;  %v2361_v12 = vld [vmem:[%s3929_s2 + $0x20] sm:$0xff]  }
 0x112   :  { %2254 = vmatprep.subr.bf16.mxu1 %v2361_v12 }
 0x113   :  { %510 = vadd.xlane.f32.xlu1 %v481_v21  ;;  %440 = vadd.xlane.f32.xlu0 %v2828_v15  ;;  %v482_v22 = vmul.f32 %v2828_v15, %v2828_v15  ;;  %v2836_v23 = vadd.f32 %v2089_v16, %v2791_v45 }
 0x114   :  { %2255 = vmatpush3.bf16.msra.mxu1 %v2361_v12 }
 0x115   :  { %v2090_v24 = vpop.f32.mrb[16].mxu0  ;;  %v483_v31 = vmul.f32 %v2836_v23, %v2836_v23 }
 0x116   :  { %v2091_v25 = vpop.f32.mrb[17].mxu0 }
 0x117   :  { %v2092_v26 = vadd.f32 %v2091_v25, %v2090_v24  ;;  %v2093_v27 = vpop.f32.mrb[18].mxu0  ;;  %442 = vadd.xlane.f32.xlu1 %v2836_v23  ;;  %512 = vadd.xlane.f32.xlu0 %v482_v22  ;;  %v2362_v25 = vld [vmem:[%s3929_s2 + $0x28] sm:$0xff]  }
 0x118   :  { %v2094_v28 = vpop.f32.mrb[19].mxu0  ;;  %2256 = vmatprep.subr.bf16.mxu1 %v2362_v25 }
 0x119   :  { %v2840_v29 = vadd.f32 %v2092_v26, %v2791_v45  ;;  %v2095_v30 = vadd.f32 %v2094_v28, %v2093_v27  ;;  %2257 = vmatpush3.bf16.msra.mxu1 %v2362_v25 }
 0x11b   :  { %514 = vadd.xlane.f32.xlu1 %v483_v31  ;;  %444 = vadd.xlane.f32.xlu0 %v2840_v29  ;;  %v484_v32 = vmul.f32 %v2840_v29, %v2840_v29  ;;  %v2848_v33 = vadd.f32 %v2095_v30, %v2791_v45  ;;  %v2363_v31 = vld [vmem:[%s3929_s2 + $0x30] sm:$0xff]  }
 0x11c   :  { %2258 = vmatprep.subr.bf16.mxu1 %v2363_v31 }
 0x11d   :  { %v2096_v34 = vpop.f32.mrb[20].mxu0  ;;  %v485_v42 = vmul.f32 %v2848_v33, %v2848_v33  ;;  %2259 = vmatpush3.bf16.msra.mxu1 %v2363_v31 }
 0x11e   :  { %v2097_v35 = vpop.f32.mrb[21].mxu0 }
 0x11f   :  { %v2098_v36 = vadd.f32 %v2097_v35, %v2096_v34  ;;  %v2099_v37 = vpop.f32.mrb[22].mxu0  ;;  %446 = vadd.xlane.f32.xlu1 %v2848_v33  ;;  %516 = vadd.xlane.f32.xlu0 %v484_v32 }
 0x120   :  { %v2100_v38 = vpop.f32.mrb[23].mxu0 }
 0x121   :  { %v2852_v39 = vadd.f32 %v2098_v36, %v2791_v45  ;;  %v2101_v40 = vadd.f32 %v2100_v38, %v2099_v37 }
 0x123   :  { %518 = vadd.xlane.f32.xlu1 %v485_v42  ;;  %448 = vadd.xlane.f32.xlu0 %v2852_v39  ;;  %v486_v44 = vmul.f32 %v2852_v39, %v2852_v39  ;;  %v2863_v47 = vadd.f32 %v2101_v40, %v2791_v45  ;;  %v2364_v40 = vld [vmem:[%s3929_s2 + $0x38] sm:$0xff]  }
 0x124   :  { %2260 = vmatprep.subr.bf16.mxu1 %v2364_v40 }
 0x125   :  { %v2102_v48 = vpop.f32.mrb[24].mxu0  ;;  %v487_v58 = vmul.f32 %v2863_v47, %v2863_v47  ;;  %2261 = vmatpush3.bf16.msra.mxu1 %v2364_v40 }
 0x126   :  { %v2103_v49 = vpop.f32.mrb[25].mxu0 }
 0x127   :  { %v2104_v51 = vadd.f32 %v2103_v49, %v2102_v48  ;;  %v2105_v53 = vpop.f32.mrb[26].mxu0  ;;  %450 = vadd.xlane.f32.xlu1 %v2863_v47  ;;  %520 = vadd.xlane.f32.xlu0 %v486_v44 }
 0x128   :  { %v2106_v54 = vpop.f32.mrb[27].mxu0 }
 0x129   :  { %v2870_v56 = vadd.f32 %v2104_v51, %v2791_v45  ;;  %v2107_v57 = vadd.f32 %v2106_v54, %v2105_v53 }
 0x12b   :  { %522 = vadd.xlane.f32.xlu1 %v487_v58  ;;  %452 = vadd.xlane.f32.xlu0 %v2870_v56  ;;  %v488_v60 = vmul.f32 %v2870_v56, %v2870_v56  ;;  %v2881_v63 = vadd.f32 %v2107_v57, %v2791_v45 }
 0x12d   :  { %v2108_v0 = vpop.f32.mrb[28].mxu0  ;;  %v489_v10 = vmul.f32 %v2881_v63, %v2881_v63 }
 0x12e   :  { %v2109_v1 = vpop.f32.mrb[29].mxu0 }
 0x12f   :  { %v2110_v2 = vadd.f32 %v2109_v1, %v2108_v0  ;;  %v2111_v3 = vpop.f32.mrb[30].mxu0  ;;  %454 = vadd.xlane.f32.xlu1 %v2881_v63  ;;  %524 = vadd.xlane.f32.xlu0 %v488_v60 }
 0x130   :  { %v2112_v4 = vpop.f32.mrb[31].mxu0 }
 0x131   :  { %v2888_v7 = vadd.f32 %v2110_v2, %v2791_v45  ;;  %v2113_v8 = vadd.f32 %v2112_v4, %v2111_v3 }
 0x133   :  { %526 = vadd.xlane.f32.xlu1 %v489_v10  ;;  %456 = vadd.xlane.f32.xlu0 %v2888_v7  ;;  %v490_v11 = vmul.f32 %v2888_v7, %v2888_v7  ;;  %v2899_v13 = vadd.f32 %v2113_v8, %v2791_v45 }
 0x135   :  { %v2114_v14 = vpop.f32.mrb[32].mxu0  ;;  %v491_v28 = vmul.f32 %v2899_v13, %v2899_v13 }
 0x136   :  { %v2115_v16 = vpop.f32.mrb[33].mxu0 }
 0x137   :  { %v2116_v21 = vadd.f32 %v2115_v16, %v2114_v14  ;;  %v2117_v22 = vpop.f32.mrb[34].mxu0  ;;  %458 = vadd.xlane.f32.xlu1 %v2899_v13  ;;  %528 = vadd.xlane.f32.xlu0 %v490_v11 }
 0x138   :  { %v2118_v24 = vpop.f32.mrb[35].mxu0 }
 0x139   :  { %v2906_v26 = vadd.f32 %v2116_v21, %v2791_v45  ;;  %v2119_v27 = vadd.f32 %v2118_v24, %v2117_v22 }
 0x13b   :  { %530 = vadd.xlane.f32.xlu1 %v491_v28  ;;  %460 = vadd.xlane.f32.xlu0 %v2906_v26  ;;  %v492_v30 = vmul.f32 %v2906_v26, %v2906_v26  ;;  %v2917_v32 = vadd.f32 %v2119_v27, %v2791_v45 }
 0x13d   :  { %v2120_v34 = vpop.f32.mrb[36].mxu0  ;;  %v493_v46 = vmul.f32 %v2917_v32, %v2917_v32 }
 0x13e   :  { %v2121_v35 = vpop.f32.mrb[37].mxu0 }
 0x13f   :  { %v2122_v36 = vadd.f32 %v2121_v35, %v2120_v34  ;;  %v2123_v37 = vpop.f32.mrb[38].mxu0  ;;  %462 = vadd.xlane.f32.xlu1 %v2917_v32  ;;  %532 = vadd.xlane.f32.xlu0 %v492_v30 }
 0x140   :  { %v2124_v38 = vpop.f32.mrb[39].mxu0 }
 0x141   :  { %v2924_v42 = vadd.f32 %v2122_v36, %v2791_v45  ;;  %v2125_v44 = vadd.f32 %v2124_v38, %v2123_v37 }
 0x143   :  { %534 = vadd.xlane.f32.xlu1 %v493_v46  ;;  %464 = vadd.xlane.f32.xlu0 %v2924_v42  ;;  %v494_v48 = vmul.f32 %v2924_v42, %v2924_v42  ;;  %v2932_v49 = vadd.f32 %v2125_v44, %v2791_v45 }
 0x145   :  { %3949 = vst [vmem:[#allocation6_spill] sm:$0xff] %v2932_v49  ;;  %v2126_v51 = vpop.f32.mrb[40].mxu0  ;;  %v495_v61 = vmul.f32 %v2932_v49, %v2932_v49 }
 0x146   :  { %v2127_v53 = vpop.f32.mrb[41].mxu0 }
 0x147   :  { %v2128_v54 = vadd.f32 %v2127_v53, %v2126_v51  ;;  %v2129_v55 = vpop.f32.mrb[42].mxu0  ;;  %466 = vadd.xlane.f32.xlu1 %v2932_v49  ;;  %536 = vadd.xlane.f32.xlu0 %v494_v48 }
 0x148   :  { %v2130_v57 = vpop.f32.mrb[43].mxu0 }
 0x149   :  { %v2936_v58 = vadd.f32 %v2128_v54, %v2791_v45  ;;  %v2131_v60 = vadd.f32 %v2130_v57, %v2129_v55  ;;  %v2365_v57 = vld [vmem:[%s3930_s3 + $0x40] sm:$0xff]  }
 0x14a   :  { %2158 = vmatprep.subr.bf16.mxu0 %v2365_v57  ;;  %2286 = vmatprep.subr.bf16.mxu1 %v2365_v57 }
 0x14b   :  { %3950 = vst [vmem:[#allocation7_spill] sm:$0xff] %v2936_v58  ;;  %538 = vadd.xlane.f32.xlu1 %v495_v61  ;;  %468 = vadd.xlane.f32.xlu0 %v2936_v58  ;;  %v496_v0 = vmul.f32 %v2936_v58, %v2936_v58  ;;  %v2944_v1 = vadd.f32 %v2131_v60, %v2791_v45  ;;  %v2981_v61 = vld [vmem:[%s3930_s3] sm:$0xff]  }
 0x14c   :  { %2159 = vmatpush3.bf16.msra.mxu0 %v2981_v61 }
 0x14d   :  { %3951 = vst [vmem:[#allocation8_spill] sm:$0xff] %v2944_v1  ;;  %v2132_v2 = vpop.f32.mrb[44].mxu0  ;;  %v497_v12 = vmul.f32 %v2944_v1, %v2944_v1 }
 0x14e   :  { %v2133_v3 = vpop.f32.mrb[45].mxu0 }
 0x14f   :  { %v2134_v4 = vadd.f32 %v2133_v3, %v2132_v2  ;;  %v2135_v6 = vpop.f32.mrb[46].mxu0  ;;  %470 = vadd.xlane.f32.xlu1 %v2944_v1  ;;  %540 = vadd.xlane.f32.xlu0 %v496_v0  ;;  %v2986_v0 = vld [vmem:[%s3930_s3 + $0x48] sm:$0xff]  }
 0x150   :  { %v2136_v8 = vpop.f32.mrb[47].mxu0  ;;  %2160 = vmatprep.subr.bf16.mxu0 %v2986_v0 }
 0x151   :  { %v2948_v10 = vadd.f32 %v2134_v4, %v2791_v45  ;;  %v2137_v11 = vadd.f32 %v2136_v8, %v2135_v6  ;;  %v2992_v8 = vld [vmem:[%s3930_s3 + $0x8] sm:$0xff]  }
 0x152   :  { %2161 = vmatpush3.bf16.msra.mxu0 %v2992_v8 }
 0x153   :  { %3952 = vst [vmem:[#allocation9_spill] sm:$0xff] %v2948_v10  ;;  %542 = vadd.xlane.f32.xlu1 %v497_v12  ;;  %472 = vadd.xlane.f32.xlu0 %v2948_v10  ;;  %v498_v14 = vmul.f32 %v2948_v10, %v2948_v10  ;;  %v2956_v16 = vadd.f32 %v2137_v11, %v2791_v45 }
 0x155   :  { %3953 = vst [vmem:[#allocation10_spill] sm:$0xff] %v2956_v16  ;;  %v499_v21 = vmul.f32 %v2956_v16, %v2956_v16 }
 0x157   :  { %474 = vadd.xlane.f32.xlu1 %v2956_v16  ;;  %544 = vadd.xlane.f32.xlu0 %v498_v14 }
 0x15b   :  { %546 = vadd.xlane.f32.xlu1 %v499_v21  ;;  %v3002_v21 = vld [vmem:[%s3930_s3 + $0x50] sm:$0xff]  }
 0x15c   :  { %2162 = vmatprep.subr.bf16.mxu0 %v3002_v21 }
 0x188   :  { %v429_v22 = vpop.xlane.xlu0 %428 }
 0x189   :  { %v2961_v27 = vmul.f32 0.0078125, %v429_v22 }
 0x18b   :  { %v596_v35 = vmul.f32 %v2961_v27, %v2961_v27 }
 0x18c   :  { %v503_v24 = vpop.xlane.xlu1 %502  ;;  %v431_v25 = vpop.xlane.xlu0 %430 }
 0x18d   :  { %v2963_v28 = vmul.f32 0.0078125, %v431_v25  ;;  %v573_v30 = vmul.f32 0.0078125, %v503_v24 }
 0x18f   :  { %v597_v31 = vmul.f32 %v2963_v28, %v2963_v28 }
 0x190   :  { %v433_v45 = vpop.xlane.xlu1 %432  ;;  %v501_v34 = vpop.xlane.xlu0 %500 }
 0x191   :  { %v621_v36 = vsub.f32 %v573_v30, %v597_v31  ;;  %v572_v37 = vmul.f32 0.0078125, %v501_v34  ;;  %v2969_v38 = vmul.f32 0.0078125, %v433_v45  ;;  %v766_v30 = vsub.s32 1, %v2782_v41 }
 0x193   :  { %v645_v40 = vmax.f32 %v621_v36, 0.0  ;;  %v620_v44 = vsub.f32 %v572_v37, %v596_v35  ;;  %v598_v60 = vmul.f32 %v2969_v38, %v2969_v38  ;;  %v3011_v35 = vld [vmem:[%s3930_s3 + $0x10] sm:$0xff]  }
 0x194   :  { %v435_v46 = vpop.xlane.xlu1 %434  ;;  %v505_v48 = vpop.xlane.xlu0 %504  ;;  %2163 = vmatpush3.bf16.msra.mxu0 %v3011_v35 }
 0x195   :  { %v669_v51 = vadd.f32 1e-05, %v645_v40  ;;  %v644_v53 = vmax.f32 %v620_v44, 0.0  ;;  %v2971_v54 = vmul.f32 0.0078125, %v435_v46  ;;  %v574_v55 = vmul.f32 0.0078125, %v505_v48  ;;  %v3019_v44 = vld [vmem:[%s3930_s3 + $0x58] sm:$0xff]  }
 0x196   :  { %v794_v46 = vsub.s32 2, %v2782_v41  ;;  %2164 = vmatprep.subr.bf16.mxu0 %v3019_v44 }
 0x197   :  { %2381 = vrsqrt.f32 %v669_v51  ;;  %v668_v2 = vadd.f32 1e-05, %v644_v53  ;;  %v622_v3 = vsub.f32 %v574_v55, %v598_v60  ;;  %v599_v11 = vmul.f32 %v2971_v54, %v2971_v54 }
 0x198   :  { %v507_v4 = vpop.xlane.xlu1 %506  ;;  %v437_v6 = vpop.xlane.xlu0 %436  ;;  %v3023_v53 = vrot.slane %v2788_v43, %v766_v30  ;;  %v717_v55 = vsub.f32 %v2797_v52, %v2963_v28  ;;  %v3041_v52 = vld [vmem:[%s3930_s3 + $0x60] sm:$0xff]   ;;  %v716_v28 = vsub.f32 %v2794_v50, %v2961_v27 }
 0x199   :  { %2383 = vrsqrt.f32 %v668_v2  ;;  %v575_v12 = vmul.f32 0.0078125, %v507_v4  ;;  %v2996_v14 = vmul.f32 0.0078125, %v437_v6  ;;  %v646_v22 = vmax.f32 %v622_v3, 0.0  ;;  %v3033_v3 = vld [vmem:[%s3930_s3 + $0x18] sm:$0xff]   ;;  %v3055_v50 = vld [vmem:[%s3930_s3 + $0x20] sm:$0xff]  }
 0x19a   :  { %2165 = vmatpush3.bf16.msra.mxu0 %v3033_v3 }
 0x19b   :  { %v623_v24 = vsub.f32 %v575_v12, %v599_v11  ;;  %v600_v25 = vmul.f32 %v2996_v14, %v2996_v14  ;;  %v670_v31 = vadd.f32 1e-05, %v646_v22  ;;  %2166 = vmatprep.subr.bf16.mxu0 %v3041_v52 }
 0x19c   :  { %v439_v45 = vpop.xlane.xlu1 %438  ;;  %v509_v34 = vpop.xlane.xlu0 %508 }
 0x19d   :  { %v647_v36 = vmax.f32 %v623_v24, 0.0  ;;  %v3013_v37 = vmul.f32 0.0078125, %v439_v45  ;;  %v576_v40 = vmul.f32 0.0078125, %v509_v34  ;;  %2385 = vrsqrt.f32 %v670_v31 }
 0x19e   :  { %v3046_v24 = vrot.slane %v2788_v43, %v794_v46  ;;  %2167 = vmatpush3.bf16.msra.mxu0 %v3055_v50 }
 0x19f   :  { %v671_v48 = vadd.f32 1e-05, %v647_v36  ;;  %v624_v51 = vsub.f32 %v576_v40, %v600_v25  ;;  %v601_v57 = vmul.f32 %v3013_v37, %v3013_v37 }
 0x1a0   :  { %v511_v60 = vpop.xlane.xlu1 %510  ;;  %v441_v2 = vpop.xlane.xlu0 %440 }
 0x1a1   :  { %v2382_v4 = vpop.eup %2381  ;;  %2387 = vrsqrt.f32 %v671_v48  ;;  %v648_v6 = vmax.f32 %v624_v51, 0.0  ;;  %v577_v11 = vmul.f32 0.0078125, %v511_v60  ;;  %v3035_v12 = vmul.f32 0.0078125, %v441_v2  ;;  %v3063_v51 = vld [vmem:[%s3930_s3 + $0x68] sm:$0xff]  }
 0x1a2   :  { %v741_v22 = vmul.f32 %v2382_v4, %v717_v55  ;;  %2168 = vmatprep.subr.bf16.mxu0 %v3063_v51 }
 0x1a3   :  { %v2384_v25 = vpop.eup %2383  ;;  %v672_v30 = vadd.f32 1e-05, %v648_v6  ;;  %v625_v31 = vsub.f32 %v577_v11, %v601_v57  ;;  %v602_v45 = vmul.f32 %v3035_v12, %v3035_v12  ;;  %v718_v6 = vsub.f32 %v2804_v59, %v2969_v38 }
 0x1a4   :  { %v769_v34 = vmul.f32 %v3023_v53, %v741_v22  ;;  %v443_v36 = vpop.xlane.xlu1 %442  ;;  %v513_v40 = vpop.xlane.xlu0 %512  ;;  %v740_v48 = vmul.f32 %v2384_v25, %v716_v28 }
 0x1a5   :  { %2389 = vrsqrt.f32 %v672_v30  ;;  %v649_v43 = vmax.f32 %v625_v31, 0.0  ;;  %v3057_v27 = vmul.f32 0.0078125, %v443_v36  ;;  %v578_v46 = vmul.f32 0.0078125, %v513_v40  ;;  %v3081_v31 = vld [vmem:[%s3930_s3 + $0x28] sm:$0xff]  }
 0x1a6   :  { %v768_v55 = vmul.f32 %v3023_v53, %v740_v48  ;;  %v3067_v57 = vadd.f32 %v3046_v24, %v769_v34  ;;  %v3089_v34 = vld [vmem:[%s3930_s3 + $0x70] sm:$0xff]   ;;  %v719_v36 = vsub.f32 %v2810_v62, %v2971_v54  ;;  %2169 = vmatpush3.bf16.msra.mxu0 %v3081_v31 }
 0x1a7   :  { %v673_v60 = vadd.f32 1e-05, %v649_v43  ;;  %v626_v2 = vsub.f32 %v578_v46, %v602_v45  ;;  %v2386_v4 = vpop.eup %2385  ;;  %v603_v11 = vmul.f32 %v3057_v27, %v3057_v27  ;;  %v3101_v62 = vld [vmem:[%s3930_s3 + $0x30] sm:$0xff]   ;;  %2170 = vmatprep.subr.bf16.mxu0 %v3089_v34 }
 0x1a8   :  { %v515_v28 = vpop.xlane.xlu1 %514  ;;  %v445_v22 = vpop.xlane.xlu0 %444  ;;  %v3074_v25 = vadd.f32 %v3046_v24, %v768_v55  ;;  %v845_v30 = vmul.f32 0.70710677, %v3067_v57  ;;  %v742_v48 = vmul.f32 %v2386_v4, %v718_v6 }
 0x1a9   :  { %2391 = vrsqrt.f32 %v673_v60  ;;  %v650_v45 = vmax.f32 %v626_v2, 0.0  ;;  %v579_v59 = vmul.f32 0.0078125, %v515_v28  ;;  %v3083_v38 = vmul.f32 0.0078125, %v445_v22 }
 0x1aa   :  { %v844_v40 = vmul.f32 0.70710677, %v3074_v25  ;;  %2393 = verf.f32 %v845_v30  ;;  %v770_v41 = vmul.f32 %v3023_v53, %v742_v48  ;;  %v720_v30 = vsub.f32 %v2816_v5, %v2996_v14  ;;  %2171 = vmatpush3.bf16.msra.mxu0 %v3101_v62 }
 0x1ab   :  { %v2388_v43 = vpop.eup %2387  ;;  %v674_v46 = vadd.f32 1e-05, %v650_v45  ;;  %v627_v55 = vsub.f32 %v579_v59, %v603_v11  ;;  %v604_v60 = vmul.f32 %v3083_v38, %v3083_v38  ;;  %v3109_v11 = vld [vmem:[%s3930_s3 + $0x78] sm:$0xff]   ;;  %v820_v58 = vmul.f32 0.5, %v3074_v25 }
 0x1ac   :  { %v447_v2 = vpop.xlane.xlu1 %446  ;;  %v517_v28 = vpop.xlane.xlu0 %516  ;;  %2395 = verf.f32 %v844_v40  ;;  %v743_v22 = vmul.f32 %v2388_v43, %v719_v36  ;;  %v3115_v59 = vadd.f32 %v3046_v24, %v770_v41  ;;  %v3127_v41 = vld [vmem:[%s3930_s3 + $0x38] sm:$0xff]   ;;  %2172 = vmatprep.subr.bf16.mxu0 %v3109_v11 }
 0x1ad   :  { %2397 = vrsqrt.f32 %v674_v46  ;;  %v651_v54 = vmax.f32 %v627_v55, 0.0  ;;  %v3103_v4 = vmul.f32 0.0078125, %v447_v2  ;;  %v580_v6 = vmul.f32 0.0078125, %v517_v28  ;;  %3954 = vst [vmem:[#allocation11_spill] sm:$0xff] %v3127_v41 }
 0x1ae   :  { %v771_v45 = vmul.f32 %v3023_v53, %v743_v22  ;;  %v846_v28 = vmul.f32 0.70710677, %v3115_v59  ;;  %v721_v22 = vsub.f32 %v2824_v9, %v3013_v37  ;;  %2173 = vmatpush3.bf16.msra.mxu0 %v3127_v41 }
 0x1af   :  { %v2390_v36 = vpop.eup %2389  ;;  %v675_v40 = vadd.f32 1e-05, %v651_v54  ;;  %v628_v48 = vsub.f32 %v580_v6, %v604_v60  ;;  %v605_v43 = vmul.f32 %v3103_v4, %v3103_v4 }
 0x1b0   :  { %v519_v46 = vpop.xlane.xlu1 %518  ;;  %v449_v55 = vpop.xlane.xlu0 %448  ;;  %v3120_v2 = vadd.f32 %v3046_v24, %v771_v45  ;;  %v744_v16 = vmul.f32 %v2390_v36, %v720_v30 }
 0x1b1   :  { %2399 = vrsqrt.f32 %v675_v40  ;;  %v652_v5 = vmax.f32 %v628_v48, 0.0  ;;  %v581_v14 = vmul.f32 0.0078125, %v519_v46  ;;  %v3129_v60 = vmul.f32 0.0078125, %v449_v55  ;;  %1706 = vmatmul.mubr.bf16.vlgmr.msra.gmra.mrb[48].mxu0 %v2704_v17 }
 0x1b2   :  { %v847_v54 = vmul.f32 0.70710677, %v3120_v2  ;;  %2401 = verf.f32 %v846_v28  ;;  %v772_v6 = vmul.f32 %v3023_v53, %v744_v16  ;;  %v722_v46 = vsub.f32 %v2828_v15, %v3035_v12  ;;  %1713 = vmatprep.mubr.bf16.mxu0 %v2709_v18 }
 0x1b3   :  { %v2392_v30 = vpop.eup %2391  ;;  %v676_v45 = vadd.f32 1e-05, %v652_v5  ;;  %v629_v36 = vsub.f32 %v581_v14, %v605_v43  ;;  %v606_v40 = vmul.f32 %v3129_v60, %v3129_v60  ;;  %v723_v16 = vsub.f32 %v2836_v23, %v3057_v27 }
 0x1b4   :  { %v2394_v48 = vpop.eup %2393  ;;  %v451_v55 = vpop.xlane.xlu1 %450  ;;  %2403 = verf.f32 %v847_v54  ;;  %v745_v1 = vmul.f32 %v2392_v30, %v721_v22  ;;  %v3141_v9 = vadd.f32 %v3046_v24, %v772_v6  ;;  %v821_v14 = vmul.f32 0.5, %v3067_v57 }
 0x1b5   :  { %v521_v10 = vpop.xlane.xlu0 %520  ;;  %v653_v37 = vmax.f32 %v629_v36, 0.0  ;;  %v3146_v43 = vmul.f32 0.0078125, %v451_v55  ;;  %v893_v15 = vadd.f32 1.0, %v2394_v48  ;;  %2405 = vrsqrt.f32 %v676_v45 }
 0x1b6   :  { %v582_v28 = vmul.f32 0.0078125, %v521_v10  ;;  %v2396_v5 = vpop.eup %2395  ;;  %v773_v12 = vmul.f32 %v3023_v53, %v745_v1  ;;  %v848_v22 = vmul.f32 0.70710677, %v3141_v9 }
 0x1b7   :  { %v2398_v54 = vpop.eup %2397  ;;  %v677_v6 = vadd.f32 1e-05, %v653_v37  ;;  %v607_v23 = vmul.f32 %v3146_v43, %v3146_v43  ;;  %v892_v36 = vadd.f32 1.0, %v2396_v5  ;;  %v917_v48 = vmul.f32 %v893_v15, %v821_v14 }
 0x1b8   :  { %v630_v30 = vsub.f32 %v582_v28, %v606_v40  ;;  %v523_v10 = vpop.xlane.xlu1 %522  ;;  %v3156_v57 = vadd.f32 %v3046_v24, %v773_v12  ;;  %2407 = verf.f32 %v848_v22  ;;  %v746_v55 = vmul.f32 %v2398_v54, %v722_v46 }
 0x1b9   :  { %v453_v27 = vpop.xlane.xlu0 %452  ;;  %2409 = vrsqrt.f32 %v677_v6  ;;  %v583_v45 = vmul.f32 0.0078125, %v523_v10  ;;  %v916_v25 = vmul.f32 %v892_v36, %v820_v58  ;;  %v724_v54 = vsub.f32 %v2840_v29, %v3083_v38  ;;  %1714 = vmatmul.mubr.bf16.gmra.mrb[52].mxu0 %v2716_v19 }
 0x1ba   :  { %v654_v1 = vmax.f32 %v630_v30, 0.0  ;;  %v3159_v40 = vmul.f32 0.0078125, %v453_v27  ;;  %v849_v17 = vmul.f32 0.70710677, %v3156_v57  ;;  %v774_v30 = vmul.f32 %v3023_v53, %v746_v55  ;;  %1721 = vmatprep.mubr.bf16.mxu0 %v2721_v20 }
 0x1bb   :  { %v2400_v37 = vpop.eup %2399  ;;  %v631_v49 = vsub.f32 %v583_v45, %v607_v23  ;;  %v940_v18 = vpack.c.bf16 %v917_v48, %v916_v25  ;;  %v823_v45 = vmul.f32 0.5, %v3120_v2  ;;  %v824_v20 = vmul.f32 0.5, %v3141_v9 }
 0x1bc   :  { %v678_v28 = vadd.f32 1e-05, %v654_v1  ;;  %v608_v5 = vmul.f32 %v3159_v40, %v3159_v40  ;;  %v2402_v12 = vpop.eup %2401  ;;  %v455_v22 = vpop.xlane.xlu1 %454  ;;  %2411 = verf.f32 %v849_v17  ;;  %v747_v6 = vmul.f32 %v2400_v37, %v723_v16 }
 0x1bd   :  { %v525_v41 = vpop.xlane.xlu0 %524  ;;  %v655_v58 = vmax.f32 %v631_v49, 0.0  ;;  %v3165_v14 = vmul.f32 0.0078125, %v455_v22  ;;  %2262 = vmatprep.mubr.bf16.mxu1 %v940_v18  ;;  %v894_v23 = vadd.f32 1.0, %v2402_v12  ;;  %v3171_v27 = vadd.f32 %v3046_v24, %v774_v30 }
 0x1be   :  { %2413 = vrsqrt.f32 %v678_v28  ;;  %v584_v15 = vmul.f32 0.0078125, %v525_v41  ;;  %v2404_v46 = vpop.eup %2403  ;;  %v775_v10 = vmul.f32 %v3023_v53, %v747_v6  ;;  %v725_v16 = vsub.f32 %v2848_v33, %v3103_v4 }
 0x1bf   :  { %v679_v36 = vadd.f32 1e-05, %v655_v58  ;;  %v822_v49 = vmul.f32 0.5, %v3115_v59  ;;  %v609_v41 = vmul.f32 %v3165_v14, %v3165_v14  ;;  %v895_v25 = vadd.f32 1.0, %v2404_v46  ;;  %v2406_v33 = vpop.eup %2405 }
 0x1c0   :  { %v632_v1 = vsub.f32 %v584_v15, %v608_v5  ;;  %v527_v29 = vpop.xlane.xlu1 %526  ;;  %v3181_v48 = vadd.f32 %v3046_v24, %v775_v10  ;;  %v850_v28 = vmul.f32 0.70710677, %v3171_v27  ;;  %v748_v46 = vmul.f32 %v2406_v33, %v724_v54  ;;  %v2573_v33 = vld [vmem:[%s3927_s0 + $0x20] ss:$8 sps:$4 sm:$0xff]  }
 0x1c1   :  { %v457_v38 = vpop.xlane.xlu0 %456  ;;  %2415 = vrsqrt.f32 %v679_v36  ;;  %v585_v17 = vmul.f32 0.0078125, %v527_v29  ;;  %v918_v55 = vmul.f32 %v894_v23, %v822_v49  ;;  %v919_v37 = vmul.f32 %v895_v25, %v823_v45  ;;  %1722 = vmatmul.mubr.bf16.gmra.mrb[56].mxu0 %v2573_v33 }
 0x1c2   :  { %v656_v4 = vmax.f32 %v632_v1, 0.0  ;;  %v3184_v59 = vmul.f32 0.0078125, %v457_v38  ;;  %v2408_v19 = vpop.eup %2407  ;;  %v851_v5 = vmul.f32 0.70710677, %v3181_v48  ;;  %2417 = verf.f32 %v850_v28 }
 0x1c3   :  { %v2410_v2 = vpop.eup %2409  ;;  %v633_v22 = vsub.f32 %v585_v17, %v609_v41  ;;  %v941_v58 = vpack.c.bf16 %v919_v37, %v918_v55  ;;  %v896_v15 = vadd.f32 1.0, %v2408_v19  ;;  %v726_v49 = vsub.f32 %v2852_v39, %v3129_v60 }
 0x1c4   :  { %v680_v12 = vadd.f32 1e-05, %v656_v4  ;;  %v610_v18 = vmul.f32 %v3184_v59, %v3184_v59  ;;  %v459_v6 = vpop.xlane.xlu1 %458  ;;  %v749_v41 = vmul.f32 %v2410_v2, %v725_v16  ;;  %v776_v9 = vmul.f32 %v3023_v53, %v748_v46 }
 0x1c5   :  { %v529_v30 = vpop.xlane.xlu0 %528  ;;  %v657_v23 = vmax.f32 %v633_v22, 0.0  ;;  %v3191_v10 = vmul.f32 0.0078125, %v459_v6  ;;  %2263 = vmatmul.mubr.bf16.vlgmr.msra.gmra.mrb[0].mxu1 %v941_v58  ;;  %v825_v25 = vmul.f32 0.5, %v3156_v57  ;;  %v920_v54 = vmul.f32 %v896_v15, %v824_v20 }
 0x1c6   :  { %2419 = vrsqrt.f32 %v680_v12  ;;  %v586_v36 = vmul.f32 0.0078125, %v529_v30  ;;  %v2412_v1 = vpop.eup %2411  ;;  %2294 = vmatpush3.bf16.msra.mxu1 %v2981_v61  ;;  %v777_v17 = vmul.f32 %v3023_v53, %v749_v41  ;;  %v3205_v19 = vadd.f32 %v3046_v24, %v776_v9 }
 0x1c7   :  { %2421 = verf.f32 %v851_v5  ;;  %v681_v38 = vadd.f32 1e-05, %v657_v23  ;;  %v611_v39 = vmul.f32 %v3191_v10, %v3191_v10  ;;  %v897_v4 = vadd.f32 1.0, %v2412_v1  ;;  %2287 = vmatprep.subr.bf16.mxu1 %v2986_v0 }
 0x1c8   :  { %v2414_v29 = vpop.eup %2413  ;;  %v634_v45 = vsub.f32 %v586_v36, %v610_v18  ;;  %v531_v60 = vpop.xlane.xlu1 %530  ;;  %v3211_v28 = vadd.f32 %v3046_v24, %v777_v17  ;;  %v852_v5 = vmul.f32 0.70710677, %v3205_v19  ;;  %v727_v0 = vsub.f32 %v2863_v47, %v3146_v43 }
 0x1c9   :  { %v461_v16 = vpop.xlane.xlu0 %460  ;;  %2423 = vrsqrt.f32 %v681_v38  ;;  %v587_v57 = vmul.f32 0.0078125, %v531_v60  ;;  %v921_v37 = vmul.f32 %v897_v4, %v825_v25  ;;  %v750_v2 = vmul.f32 %v2414_v29, %v726_v49 }
 0x1ca   :  { %v658_v61 = vmax.f32 %v634_v45, 0.0  ;;  %v3208_v55 = vmul.f32 0.0078125, %v461_v16  ;;  %2295 = vmatpush3.bf16.msra.mxu1 %v2992_v8  ;;  %v853_v15 = vmul.f32 0.70710677, %v3211_v28  ;;  %2425 = verf.f32 %v852_v5 }
 0x1cb   :  { %v2416_v12 = vpop.eup %2415  ;;  %v635_v18 = vsub.f32 %v587_v57, %v611_v39  ;;  %v942_v58 = vpack.c.bf16 %v921_v37, %v920_v54  ;;  %2288 = vmatprep.subr.bf16.mxu1 %v3002_v21  ;;  %v728_v46 = vsub.f32 %v2870_v56, %v3159_v40  ;;  %v729_v8 = vsub.f32 %v2881_v63, %v3165_v14 }
 0x1cc   :  { %v682_v22 = vadd.f32 1e-05, %v658_v61  ;;  %v612_v20 = vmul.f32 %v3208_v55, %v3208_v55  ;;  %v463_v6 = vpop.xlane.xlu1 %462  ;;  %v2418_v49 = vpop.eup %2417  ;;  %2427 = verf.f32 %v853_v15  ;;  %v751_v47 = vmul.f32 %v2416_v12, %v727_v0 }
 0x1cd   :  { %v533_v30 = vpop.xlane.xlu0 %532  ;;  %v659_v23 = vmax.f32 %v635_v18, 0.0  ;;  %v3223_v36 = vmul.f32 0.0078125, %v463_v6  ;;  %2266 = vmatprep.mubr.bf16.mxu1 %v942_v58  ;;  %v778_v43 = vmul.f32 %v3023_v53, %v750_v2  ;;  %v826_v29 = vmul.f32 0.5, %v3171_v27 }
 0x1ce   :  { %v588_v1 = vmul.f32 0.0078125, %v533_v30  ;;  %2429 = vrsqrt.f32 %v682_v22  ;;  %2296 = vmatpush3.bf16.msra.mxu1 %v3011_v35  ;;  %v898_v63 = vadd.f32 1.0, %v2418_v49  ;;  %v779_v14 = vmul.f32 %v3023_v53, %v751_v47 }
 0x1cf   :  { %v683_v9 = vadd.f32 1e-05, %v659_v23  ;;  %v613_v40 = vmul.f32 %v3223_v36, %v3223_v36  ;;  %v3234_v25 = vadd.f32 %v3046_v24, %v778_v43  ;;  %2289 = vmatprep.subr.bf16.mxu1 %v3019_v44  ;;  %v827_v35 = vmul.f32 0.5, %v3181_v48 }
 0x1d0   :  { %v2420_v41 = vpop.eup %2419  ;;  %v636_v21 = vsub.f32 %v588_v1, %v612_v20  ;;  %v535_v38 = vpop.xlane.xlu1 %534  ;;  %v3241_v60 = vadd.f32 %v3046_v24, %v779_v14  ;;  %v730_v17 = vsub.f32 %v2888_v7, %v3184_v59  ;;  %v922_v2 = vmul.f32 %v898_v63, %v826_v29 }
 0x1d1   :  { %v2422_v56 = vpop.eup %2421  ;;  %v465_v45 = vpop.xlane.xlu0 %464  ;;  %2431 = vrsqrt.f32 %v683_v9  ;;  %v589_v33 = vmul.f32 0.0078125, %v535_v38  ;;  %v752_v16 = vmul.f32 %v2420_v41, %v728_v46  ;;  %v854_v12 = vmul.f32 0.70710677, %v3234_v25 }
 0x1d2   :  { %v660_v54 = vmax.f32 %v636_v21, 0.0  ;;  %v3237_v27 = vmul.f32 0.0078125, %v465_v45  ;;  %v899_v39 = vadd.f32 1.0, %v2422_v56  ;;  %2297 = vmatpush3.bf16.msra.mxu1 %v3033_v3  ;;  %v855_v22 = vmul.f32 0.70710677, %v3241_v60 }
 0x1d3   :  { %v2424_v4 = vpop.eup %2423  ;;  %v637_v57 = vsub.f32 %v589_v33, %v613_v40  ;;  %2290 = vmatprep.subr.bf16.mxu1 %v3041_v52  ;;  %v780_v3 = vmul.f32 %v3023_v53, %v752_v16  ;;  %v731_v15 = vsub.f32 %v2899_v13, %v3191_v10  ;;  %v829_v29 = vmul.f32 0.5, %v3211_v28 }
 0x1d4   :  { %v684_v61 = vadd.f32 1e-05, %v660_v54  ;;  %v614_v44 = vmul.f32 %v3237_v27, %v3237_v27  ;;  %v467_v37 = vpop.xlane.xlu1 %466  ;;  %v923_v48 = vmul.f32 %v899_v39, %v827_v35  ;;  %v2426_v6 = vpop.eup %2425  ;;  %v753_v58 = vmul.f32 %v2424_v4, %v729_v8 }
 0x1d5   :  { %v537_v5 = vpop.xlane.xlu0 %536  ;;  %v661_v18 = vmax.f32 %v637_v57, 0.0  ;;  %v3251_v20 = vmul.f32 0.0078125, %v467_v37  ;;  %v900_v43 = vadd.f32 1.0, %v2426_v6  ;;  %v3261_v41 = vadd.f32 %v3046_v24, %v780_v3 }
 0x1d6   :  { %2433 = vrsqrt.f32 %v684_v61  ;;  %v590_v0 = vmul.f32 0.0078125, %v537_v5  ;;  %v943_v30 = vpack.c.bf16 %v923_v48, %v922_v2  ;;  %2298 = vmatpush3.bf16.msra.mxu1 %v3055_v50  ;;  %v2428_v52 = vpop.eup %2427  ;;  %v781_v8 = vmul.f32 %v3023_v53, %v753_v58 }
 0x1d7   :  { %2435 = verf.f32 %v854_v12  ;;  %v685_v46 = vadd.f32 1e-05, %v661_v18  ;;  %v615_v23 = vmul.f32 %v3251_v20, %v3251_v20  ;;  %2291 = vmatprep.subr.bf16.mxu1 %v3063_v51  ;;  %v828_v50 = vmul.f32 0.5, %v3205_v19 }
 0x1d8   :  { %v638_v1 = vsub.f32 %v590_v0, %v614_v44  ;;  %2267 = vmatmul.mubr.bf16.gmra.mrb[4].mxu1 %v943_v30  ;;  %v539_v49 = vpop.xlane.xlu1 %538  ;;  %2437 = verf.f32 %v855_v22  ;;  %v2430_v13 = vpop.eup %2429  ;;  %v901_v56 = vadd.f32 1.0, %v2428_v52  ;;  %v3269_v40 = vadd.f32 %v3046_v24, %v781_v8 }
 0x1d9   :  { %v469_v47 = vpop.xlane.xlu0 %468  ;;  %2439 = vrsqrt.f32 %v685_v46  ;;  %v591_v9 = vmul.f32 0.0078125, %v539_v49  ;;  %v732_v45 = vsub.f32 %v2906_v26, %v3208_v55  ;;  %v924_v19 = vmul.f32 %v900_v43, %v828_v50 }
 0x1da   :  { %v662_v10 = vmax.f32 %v638_v1, 0.0  ;;  %v3264_v21 = vmul.f32 0.0078125, %v469_v47  ;;  %2299 = vmatpush3.bf16.msra.mxu1 %v3081_v31  ;;  %v925_v35 = vmul.f32 %v901_v56, %v829_v29  ;;  %v856_v28 = vmul.f32 0.70710677, %v3261_v41  ;;  %v3956_v29 = vld [vmem:[#allocation6_spill] sm:$0xff] }
 0x1db   :  { %v2432_v38 = vpop.eup %2431  ;;  %v639_v51 = vsub.f32 %v591_v9, %v615_v23  ;;  %v857_v39 = vmul.f32 0.70710677, %v3269_v40  ;;  %2292 = vmatprep.subr.bf16.mxu1 %v3089_v34  ;;  %v733_v26 = vsub.f32 %v2917_v32, %v3223_v36  ;;  %v754_v31 = vmul.f32 %v2430_v13, %v730_v17  ;;  %v3955_v23 = vld [vmem:[#allocation11_spill] sm:$0xff] }
 0x1dc   :  { %v686_v63 = vadd.f32 1e-05, %v662_v10  ;;  %v616_v14 = vmul.f32 %v3264_v21, %v3264_v21  ;;  %v471_v54 = vpop.xlane.xlu1 %470  ;;  %v944_v61 = vpack.c.bf16 %v925_v35, %v924_v19  ;;  %2441 = verf.f32 %v856_v28 }
 0x1dd   :  { %v541_v33 = vpop.xlane.xlu0 %540  ;;  %v663_v55 = vmax.f32 %v639_v51, 0.0  ;;  %v3281_v16 = vmul.f32 0.0078125, %v471_v54  ;;  %v755_v57 = vmul.f32 %v2432_v38, %v731_v15  ;;  %v782_v48 = vmul.f32 %v3023_v53, %v754_v31 }
 0x1de   :  { %v592_v4 = vmul.f32 0.0078125, %v541_v33  ;;  %2443 = vrsqrt.f32 %v686_v63  ;;  %2300 = vmatpush3.bf16.msra.mxu1 %v3101_v62  ;;  %2270 = vmatprep.mubr.bf16.mxu1 %v944_v61  ;;  %v830_v62 = vmul.f32 0.5, %v3234_v25  ;;  %v734_v3 = vsub.f32 %v2924_v42, %v3237_v27 }
 0x1df   :  { %v687_v37 = vadd.f32 1e-05, %v663_v55  ;;  %v617_v34 = vmul.f32 %v3281_v16, %v3281_v16  ;;  %2445 = verf.f32 %v857_v39  ;;  %v783_v7 = vmul.f32 %v3023_v53, %v755_v57  ;;  %2293 = vmatprep.subr.bf16.mxu1 %v3109_v11 }
 0x1e0   :  { %v2434_v44 = vpop.eup %2433  ;;  %v640_v5 = vsub.f32 %v592_v4, %v616_v14  ;;  %v543_v36 = vpop.xlane.xlu1 %542  ;;  %v3296_v6 = vadd.f32 %v3046_v24, %v782_v48  ;;  %v831_v52 = vmul.f32 0.5, %v3241_v60  ;;  %v735_v56 = vsub.f32 %v3956_v29, %v3251_v20 }
 0x1e1   :  { %v2436_v32 = vpop.eup %2435  ;;  %v473_v2 = vpop.xlane.xlu0 %472  ;;  %v756_v59 = vmul.f32 %v2434_v44, %v732_v45  ;;  %2447 = vrsqrt.f32 %v687_v37  ;;  %v593_v12 = vmul.f32 0.0078125, %v543_v36  ;;  %v3299_v30 = vadd.f32 %v3046_v24, %v783_v7 }
 0x1e2   :  { %v664_v17 = vmax.f32 %v640_v5, 0.0  ;;  %v3292_v22 = vmul.f32 0.0078125, %v473_v2  ;;  %v2438_v18 = vpop.eup %2437  ;;  %v902_v0 = vadd.f32 1.0, %v2436_v32  ;;  %2301 = vmatpush3.bf16.msra.mxu1 %v3955_v23  ;;  %v858_v10 = vmul.f32 0.70710677, %v3296_v6 }
 0x1e3   :  { %v2440_v58 = vpop.eup %2439  ;;  %v641_v15 = vsub.f32 %v593_v12, %v617_v34  ;;  %v903_v49 = vadd.f32 1.0, %v2438_v18  ;;  %v784_v43 = vmul.f32 %v3023_v53, %v756_v59  ;;  %v859_v9 = vmul.f32 0.70710677, %v3299_v30 }
 0x1e4   :  { %v688_v11 = vadd.f32 1e-05, %v664_v17  ;;  %v618_v46 = vmul.f32 %v3292_v22, %v3292_v22  ;;  %v475_v1 = vpop.xlane.xlu1 %474  ;;  %v926_v47 = vmul.f32 %v902_v0, %v830_v62  ;;  %v757_v50 = vmul.f32 %v2440_v58, %v733_v26 }
 0x1e5   :  { %v545_v25 = vpop.xlane.xlu0 %544  ;;  %v665_v8 = vmax.f32 %v641_v15, 0.0  ;;  %v3308_v13 = vmul.f32 0.0078125, %v475_v1  ;;  %v927_v27 = vmul.f32 %v903_v49, %v831_v52  ;;  %v3318_v33 = vadd.f32 %v3046_v24, %v784_v43 }
 0x1e6   :  { %2449 = vrsqrt.f32 %v688_v11  ;;  %v594_v42 = vmul.f32 0.0078125, %v545_v25  ;;  %v2442_v63 = vpop.eup %2441  ;;  %v785_v54 = vmul.f32 %v3023_v53, %v757_v50  ;;  %v832_v26 = vmul.f32 0.5, %v3261_v41  ;;  %v3957_v41 = vld [vmem:[#allocation7_spill] sm:$0xff]  ;;  %v3958_v11 = vld [vmem:[#allocation8_spill] sm:$0xff] }
 0x1e7   :  { %v689_v38 = vadd.f32 1e-05, %v665_v8  ;;  %v619_v60 = vmul.f32 %v3308_v13, %v3308_v13  ;;  %v945_v51 = vpack.c.bf16 %v927_v27, %v926_v47  ;;  %2451 = verf.f32 %v858_v10 }
 0x1e8   :  { %v642_v45 = vsub.f32 %v594_v42, %v618_v46  ;;  %v547_v14 = vpop.xlane.xlu1 %546  ;;  %v2444_v19 = vpop.eup %2443  ;;  %v904_v39 = vadd.f32 1.0, %v2442_v63  ;;  %v813_v55 = vadd.f32 %v3046_v24, %v785_v54  ;;  %v860_v4 = vmul.f32 0.70710677, %v3318_v33 }
 0x1e9   :  { %2453 = vrsqrt.f32 %v689_v38  ;;  %v595_v28 = vmul.f32 0.0078125, %v547_v14  ;;  %v2446_v20 = vpop.eup %2445  ;;  %2271 = vmatmul.mubr.bf16.gmra.mrb[8].mxu1 %v945_v51  ;;  %v833_v44 = vmul.f32 0.5, %v3269_v40  ;;  %v758_v32 = vmul.f32 %v2444_v19, %v734_v3  ;;  %v3960_v19 = vld [vmem:[#allocation10_spill] sm:$0xff] }
 0x1ea   :  { %v666_v35 = vmax.f32 %v642_v45, 0.0  ;;  %2455 = verf.f32 %v859_v9  ;;  %v905_v37 = vadd.f32 1.0, %v2446_v20  ;;  %v928_v34 = vmul.f32 %v904_v39, %v832_v26 }
 0x1eb   :  { %v2448_v61 = vpop.eup %2447  ;;  %v643_v57 = vsub.f32 %v595_v28, %v619_v60  ;;  %v861_v5 = vmul.f32 0.70710677, %v813_v55  ;;  %2457 = verf.f32 %v860_v4  ;;  %v736_v7 = vsub.f32 %v3957_v41, %v3264_v21 }
 0x1ec   :  { %v690_v31 = vadd.f32 1e-05, %v666_v35  ;;  %v929_v2 = vmul.f32 %v905_v37, %v833_v44  ;;  %v759_v48 = vmul.f32 %v2448_v61, %v735_v56  ;;  %v786_v59 = vmul.f32 %v3023_v53, %v758_v32 }
 0x1ed   :  { %v667_v36 = vmax.f32 %v643_v57, 0.0  ;;  %v737_v15 = vsub.f32 %v3958_v11, %v3281_v16  ;;  %v834_v43 = vmul.f32 0.5, %v3296_v6  ;;  %v835_v8 = vmul.f32 0.5, %v3299_v30  ;;  %v3959_v16 = vld [vmem:[#allocation9_spill] sm:$0xff] }
 0x1ee   :  { %2459 = vrsqrt.f32 %v690_v31  ;;  %v946_v18 = vpack.c.bf16 %v929_v2, %v928_v34  ;;  %v787_v40 = vmul.f32 %v3023_v53, %v759_v48  ;;  %v814_v62 = vadd.f32 %v3046_v24, %v786_v59 }
 0x1ef   :  { %2461 = verf.f32 %v861_v5  ;;  %v691_v12 = vadd.f32 1e-05, %v667_v36  ;;  %v738_v10 = vsub.f32 %v3959_v16, %v3292_v22  ;;  %v836_v30 = vmul.f32 0.5, %v3318_v33  ;;  %v2582_v16 = vld [vmem:[%s3927_s0 + $0x74] ss:$8 sps:$4 sm:$0xff]  }
 0x1f0   :  { %v2450_v17 = vpop.eup %2449  ;;  %2274 = vmatprep.mubr.bf16.mxu1 %v946_v18  ;;  %v815_v58 = vadd.f32 %v3046_v24, %v787_v40  ;;  %v862_v21 = vmul.f32 0.70710677, %v814_v62  ;;  %v837_v14 = vmul.f32 0.5, %v813_v55  ;;  %v739_v22 = vsub.f32 %v3960_v19, %v3308_v13 }
 0x1f1   :  { %v760_v0 = vmul.f32 %v2450_v17, %v736_v7  ;;  %2463 = vrsqrt.f32 %v691_v12  ;;  %v2452_v3 = vpop.eup %2451  ;;  %v838_v37 = vmul.f32 0.5, %v814_v62 }
 0x1f2   :  { %v906_v1 = vadd.f32 1.0, %v2452_v3  ;;  %v863_v25 = vmul.f32 0.70710677, %v815_v58  ;;  %2465 = verf.f32 %v862_v21  ;;  %v839_v34 = vmul.f32 0.5, %v815_v58 }
 0x1f3   :  { %v788_v46 = vmul.f32 %v3023_v53, %v760_v0  ;;  %v2454_v23 = vpop.eup %2453 }
 0x1f4   :  { %v2456_v52 = vpop.eup %2455  ;;  %v761_v49 = vmul.f32 %v2454_v23, %v737_v15  ;;  %2467 = verf.f32 %v863_v25  ;;  %v930_v56 = vmul.f32 %v906_v1, %v834_v43  ;;  %v2574_v25 = vld [vmem:[%s3927_s0 + $0x34] ss:$8 sps:$4 sm:$0xff]  }
 0x1f5   :  { %v816_v47 = vadd.f32 %v3046_v24, %v788_v46  ;;  %v907_v42 = vadd.f32 1.0, %v2456_v52  ;;  %v2458_v27 = vpop.eup %2457  ;;  %v2575_v52 = vld [vmem:[%s3927_s0 + $0x30] ss:$8 sps:$4 sm:$0xff]   ;;  %v2578_v43 = vld [vmem:[%s3927_s0 + $0x54] ss:$8 sps:$4 sm:$0xff]  }
 0x1f6   :  { %v789_v9 = vmul.f32 %v3023_v53, %v761_v49  ;;  %v908_v60 = vadd.f32 1.0, %v2458_v27  ;;  %v2576_v49 = vld [vmem:[%s3927_s0 + $0x44] ss:$8 sps:$4 sm:$0xff]   ;;  %v2581_v27 = vld [vmem:[%s3927_s0 + $0x60] ss:$8 sps:$4 sm:$0xff]  }
 0x1f7   :  { %v864_v50 = vmul.f32 0.70710677, %v816_v47  ;;  %v931_v38 = vmul.f32 %v907_v42, %v835_v8  ;;  %v2579_v8 = vld [vmem:[%s3927_s0 + $0x50] ss:$8 sps:$4 sm:$0xff]   ;;  %v2580_v42 = vld [vmem:[%s3927_s0 + $0x64] ss:$8 sps:$4 sm:$0xff]  }
 0x1f8   :  { %v2460_v29 = vpop.eup %2459  ;;  %v817_v63 = vadd.f32 %v3046_v24, %v789_v9  ;;  %v932_v20 = vmul.f32 %v908_v60, %v836_v30  ;;  %v2584_v9 = vld [vmem:[%s3927_s0 + $0x84] ss:$8 sps:$4 sm:$0xff]   ;;  %v2589_v60 = vld [vmem:[%s3927_s0 + $0xa0] ss:$8 sps:$4 sm:$0xff]  }
 0x1f9   :  { %v2462_v45 = vpop.eup %2461  ;;  %2469 = verf.f32 %v864_v50  ;;  %v762_v6 = vmul.f32 %v2460_v29, %v738_v10  ;;  %v947_v51 = vpack.c.bf16 %v931_v38, %v930_v56  ;;  %v2583_v10 = vld [vmem:[%s3927_s0 + $0x70] ss:$8 sps:$4 sm:$0xff]   ;;  %v2585_v50 = vld [vmem:[%s3927_s0 + $0x80] ss:$8 sps:$4 sm:$0xff]   ;;  %v2586_v29 = vld [vmem:[%s3927_s0 + $0x94] ss:$8 sps:$4 sm:$0xff]  }
 0x1fa   :  { %v909_v54 = vadd.f32 1.0, %v2462_v45  ;;  %v865_v35 = vmul.f32 0.70710677, %v817_v63  ;;  %v841_v12 = vmul.f32 0.5, %v817_v63  ;;  %v2587_v56 = vld [vmem:[%s3927_s0 + $0x90] ss:$8 sps:$4 sm:$0xff]  }
 0x1fb   :  { %v790_v28 = vmul.f32 %v3023_v53, %v762_v6  ;;  %v2464_v39 = vpop.eup %2463  ;;  %2275 = vmatmul.mubr.bf16.gmra.mrb[12].mxu1 %v947_v51  ;;  %v2588_v38 = vld [vmem:[%s3927_s0 + $0xa4] ss:$8 sps:$4 sm:$0xff]   ;;  %v2590_v45 = vld [vmem:[%s3927_s0 + $0xb4] ss:$8 sps:$4 sm:$0xff]   ;;  %v2591_v63 = vld [vmem:[%s3927_s0 + $0xb0] ss:$8 sps:$4 sm:$0xff]  }
 0x1fc   :  { %v933_v26 = vmul.f32 %v909_v54, %v837_v14  ;;  %2471 = verf.f32 %v865_v35  ;;  %v763_v4 = vmul.f32 %v2464_v39, %v739_v22  ;;  %v2466_v57 = vpop.eup %2465  ;;  %v3961_v6 = vld [vmem:[#allocation5_spill] sm:$0xff] }
 0x1fd   :  { %v818_v61 = vadd.f32 %v3046_v24, %v790_v28  ;;  %v910_v13 = vadd.f32 1.0, %v2466_v57  ;;  %v970_v51 = vsub.s32 3, %v3961_v6  ;;  %v3405_v30 = vld [vmem:[%s3931_s4] sm:$0xff] }
 0x1fe   :  { %v948_v31 = vpack.c.bf16 %v933_v26, %v932_v20  ;;  %v791_v33 = vmul.f32 %v3023_v53, %v763_v4  ;;  %v2468_v44 = vpop.eup %2467  ;;  %v840_v53 = vmul.f32 0.5, %v816_v47  ;;  %v2577_v47 = vld [vmem:[%s3927_s0 + $0x40] ss:$8 sps:$4 sm:$0xff]   ;;  %s2617_s0 = smov [#allocation2]  }
 0x1ff   :  { %v866_v55 = vmul.f32 0.70710677, %v818_v61  ;;  %v911_v5 = vadd.f32 1.0, %v2468_v44  ;;  %v934_v2 = vmul.f32 %v910_v13, %v838_v37  ;;  %v842_v11 = vmul.f32 0.5, %v818_v61  ;;  %s1975_s4 = sshll.u32 %s2617_s0, 4  ;;  %s1976_s4 = int_to_ptr.vmem [resolvable:$true] %s1975_s4 }
 0x200   :  { %2278 = vmatprep.mubr.bf16.mxu1 %v948_v31  ;;  %v819_v32 = vadd.f32 %v3046_v24, %v791_v33  ;;  %v3408_v14 = vrot.slane %v3405_v30, %v970_v51  ;;  %s2593_s28 = scalar_lea.vmem %s1976_s4, 3072  ;;  %p2598_p1 = scmp.lt.s32.totalorder %s1976_s4, %s1976_s4 }
 0x201   :  { %2473 = verf.f32 %v866_v55  ;;  %v935_v48 = vmul.f32 %v911_v5, %v839_v34  ;;  %p2594_p0 = scmp.ne.s32.totalorder %s1976_s4, %s2593_s28  ;;  %p2599_p2 = scmp.lt.s32.totalorder %s2593_s28, %s2593_s28 }
 0x202   :  { %v867_v41 = vmul.f32 0.70710677, %v819_v32  ;;  %v843_v15 = vmul.f32 0.5, %v819_v32 }
 0x203   :  { %v2470_v36 = vpop.eup %2469  ;;  %v949_v7 = vpack.c.bf16 %v935_v48, %v934_v2  ;;  %p2600_p3 = por %p2599_p2, %p2598_p1 }
 0x204   :  { %2475 = verf.f32 %v867_v41  ;;  %v912_v59 = vadd.f32 1.0, %v2470_v36 }
 0x205   :  { %2279 = vmatmul.mubr.bf16.gmra.mrb[16].mxu1 %v949_v7  ;;  %p2601_p4 = pnand %p2600_p3, %p2594_p0 }
 0x206   :  { %v2472_v17 = vpop.eup %2471  ;;  %v936_v40 = vmul.f32 %v912_v59, %v840_v53 }
 0x207   :  { %v913_v18 = vadd.f32 1.0, %v2472_v17 }
 0x209   :  { %v937_v62 = vmul.f32 %v913_v18, %v841_v12 }
 0x20b   :  { %v2474_v0 = vpop.eup %2473  ;;  %v950_v58 = vpack.c.bf16 %v937_v62, %v936_v40 }
 0x20c   :  { %v914_v3 = vadd.f32 1.0, %v2474_v0 }
 0x20d   :  { %2282 = vmatprep.mubr.bf16.mxu1 %v950_v58 }
 0x20e   :  { %v2476_v24 = vpop.eup %2475  ;;  %v938_v46 = vmul.f32 %v914_v3, %v842_v11 }
 0x20f   :  { %v915_v21 = vadd.f32 1.0, %v2476_v24 }
 0x211   :  { %v939_v23 = vmul.f32 %v915_v21, %v843_v15 }
 0x213   :  { %v951_v1 = vpack.c.bf16 %v939_v23, %v938_v46 }
 0x215   :  { %2283 = vmatmul.mubr.bf16.gmra.mrb[20].mxu1 %v951_v1 }
 0x216   :  { %1729 = vmatprep.mubr.bf16.mxu1 %v2574_v25 }
 0x21d   :  { %1730 = vmatmul.mubr.bf16.vlgmr.msra.gmra.mrb[24].mxu1 %v2575_v52 }
 0x21e   :  { %1737 = vmatprep.mubr.bf16.mxu1 %v2576_v49 }
 0x225   :  { %1738 = vmatmul.mubr.bf16.gmra.mrb[28].mxu1 %v2577_v47 }
 0x226   :  { %1745 = vmatprep.mubr.bf16.mxu1 %v2578_v43 }
 0x22d   :  { %1746 = vmatmul.mubr.bf16.gmra.mrb[32].mxu1 %v2579_v8 }
 0x22e   :  { %1753 = vmatprep.mubr.bf16.mxu1 %v2580_v42 }
 0x235   :  { %1754 = vmatmul.mubr.bf16.gmra.mrb[36].mxu1 %v2581_v27 }
 0x236   :  { %1761 = vmatprep.mubr.bf16.mxu1 %v2582_v16 }
 0x23d   :  { %1762 = vmatmul.mubr.bf16.gmra.mrb[40].mxu1 %v2583_v10 }
 0x23e   :  { %1769 = vmatprep.mubr.bf16.mxu1 %v2584_v9 }
 0x245   :  { %1770 = vmatmul.mubr.bf16.gmra.mrb[44].mxu1 %v2585_v50 }
 0x246   :  { %1777 = vmatprep.mubr.bf16.mxu1 %v2586_v29 }
 0x24d   :  { %1778 = vmatmul.mubr.bf16.gmra.mrb[48].mxu1 %v2587_v56 }
 0x24e   :  { %1785 = vmatprep.mubr.bf16.mxu1 %v2588_v38 }
 0x255   :  { %1786 = vmatmul.mubr.bf16.gmra.mrb[52].mxu1 %v2589_v60 }
 0x256   :  { %1793 = vmatprep.mubr.bf16.mxu1 %v2590_v45 }
 0x25d   :  { %1794 = vmatmul.mubr.bf16.gmra.mrb[56].mxu1 %v2591_v63 }
 0x284   :  { %v2174_v0 = vpop.f32.mrb[48].mxu0 }
 0x285   :  { %v2175_v24 = vpop.f32.mrb[49].mxu0 }
 0x286   :  { %v2177_v15 = vpop.f32.mrb[50].mxu0  ;;  %v3482_v1 = vadd.f32 %v2175_v24, %v2174_v0 }
 0x287   :  { %v2178_v21 = vpop.f32.mrb[51].mxu0 }
 0x288   :  { %v3499_v29 = vadd.f32 %v2178_v21, %v2177_v15 }
 0x28c   :  { %v2180_v23 = vpop.f32.mrb[52].mxu0 }
 0x28d   :  { %v2181_v25 = vpop.f32.mrb[53].mxu0 }
 0x28e   :  { %v3484_v49 = vadd.f32 %v2181_v25, %v2180_v23  ;;  %v2183_v47 = vpop.f32.mrb[54].mxu0 }
 0x28f   :  { %v2184_v42 = vpop.f32.mrb[55].mxu0 }
 0x290   :  { %v3489_v16 = vadd.f32 %v2184_v42, %v2183_v47 }
 0x298   :  { %v2264_v54 = vpop.f32.mrb[0].mxu1 }
 0x299   :  { %v3411_v19 = vadd.f32 %v2264_v54, %v3408_v14  ;;  %v1054_v22 = vpop.f32.mrb[1].mxu1 }
 0x29a   :  { %v2265_v35 = vpop.f32.mrb[2].mxu1  ;;  %v3418_v20 = vadd.f32 %v1054_v22, %v3408_v14 }
 0x29b   :  { %v3414_v28 = vadd.f32 %v2265_v35, %v3408_v14  ;;  %1153 = vadd.xlane.f32.xlu0 %v3411_v19  ;;  %v1057_v39 = vpop.f32.mrb[3].mxu1  ;;  %v1199_v4 = vmul.f32 %v3411_v19, %v3411_v19 }
 0x29c   :  { %v3422_v26 = vadd.f32 %v1057_v39, %v3408_v14  ;;  %v1197_v31 = vmul.f32 %v3418_v20, %v3418_v20 }
 0x29d   :  { %1155 = vadd.xlane.f32.xlu1 %v3414_v28  ;;  %v1200_v61 = vmul.f32 %v3414_v28, %v3414_v28 }
 0x29e   :  { %v1198_v57 = vmul.f32 %v3422_v26, %v3422_v26 }
 0x29f   :  { %1149 = vadd.xlane.f32.xlu0 %v3418_v20 }
 0x2a1   :  { %1151 = vadd.xlane.f32.xlu1 %v3422_v26 }
 0x2a3   :  { %1225 = vadd.xlane.f32.xlu0 %v1199_v4 }
 0x2a5   :  { %1227 = vadd.xlane.f32.xlu1 %v1200_v61  ;;  %v2186_v61 = vpop.f32.mrb[56].mxu0 }
 0x2a7   :  { %1221 = vadd.xlane.f32.xlu0 %v1197_v31  ;;  %v2187_v31 = vpop.f32.mrb[57].mxu0 }
 0x2a9   :  { %1223 = vadd.xlane.f32.xlu1 %v1198_v57 }
 0x2ab   :  { %v2268_v33 = vpop.f32.mrb[4].mxu1 }
 0x2ac   :  { %v3435_v55 = vadd.f32 %v2268_v33, %v3408_v14  ;;  %v1070_v44 = vpop.f32.mrb[5].mxu1  ;;  %v3525_v33 = vadd.f32 %v2187_v31, %v2186_v61 }
 0x2ad   :  { %v2269_v37 = vpop.f32.mrb[6].mxu1  ;;  %v3442_v5 = vadd.f32 %v1070_v44, %v3408_v14  ;;  %v2189_v44 = vpop.f32.mrb[58].mxu0 }
 0x2ae   :  { %v3438_v13 = vadd.f32 %v2269_v37, %v3408_v14  ;;  %1161 = vadd.xlane.f32.xlu0 %v3435_v55  ;;  %v1073_v34 = vpop.f32.mrb[7].mxu1  ;;  %v1203_v36 = vmul.f32 %v3435_v55, %v3435_v55 }
 0x2af   :  { %v3446_v32 = vadd.f32 %v1073_v34, %v3408_v14  ;;  %v1201_v48 = vmul.f32 %v3442_v5, %v3442_v5  ;;  %v2190_v34 = vpop.f32.mrb[59].mxu0 }
 0x2b0   :  { %1163 = vadd.xlane.f32.xlu1 %v3438_v13  ;;  %v1204_v2 = vmul.f32 %v3438_v13, %v3438_v13 }
 0x2b1   :  { %v1202_v41 = vmul.f32 %v3446_v32, %v3446_v32 }
 0x2b2   :  { %1157 = vadd.xlane.f32.xlu0 %v3442_v5 }
 0x2b4   :  { %1159 = vadd.xlane.f32.xlu1 %v3446_v32 }
 0x2b6   :  { %1233 = vadd.xlane.f32.xlu0 %v1203_v36  ;;  %v3531_v36 = vadd.f32 %v2190_v34, %v2189_v44 }
 0x2b8   :  { %1235 = vadd.xlane.f32.xlu1 %v1204_v2 }
 0x2ba   :  { %1229 = vadd.xlane.f32.xlu0 %v1201_v48 }
 0x2bc   :  { %1231 = vadd.xlane.f32.xlu1 %v1202_v41  ;;  %v2272_v7 = vpop.f32.mrb[8].mxu1 }
 0x2bd   :  { %v3459_v59 = vadd.f32 %v2272_v7, %v3408_v14  ;;  %v1086_v17 = vpop.f32.mrb[9].mxu1 }
 0x2be   :  { %v2273_v53 = vpop.f32.mrb[10].mxu1  ;;  %v3466_v40 = vadd.f32 %v1086_v17, %v3408_v14 }
 0x2bf   :  { %v3462_v12 = vadd.f32 %v2273_v53, %v3408_v14  ;;  %1169 = vadd.xlane.f32.xlu0 %v3459_v59  ;;  %v1089_v18 = vpop.f32.mrb[11].mxu1  ;;  %v1207_v58 = vmul.f32 %v3459_v59, %v3459_v59 }
 0x2c0   :  { %v3470_v62 = vadd.f32 %v1089_v18, %v3408_v14  ;;  %v1205_v11 = vmul.f32 %v3466_v40, %v3466_v40 }
 0x2c1   :  { %1171 = vadd.xlane.f32.xlu1 %v3462_v12  ;;  %v1208_v3 = vmul.f32 %v3462_v12, %v3462_v12 }
 0x2c2   :  { %v1206_v46 = vmul.f32 %v3470_v62, %v3470_v62 }
 0x2c3   :  { %1165 = vadd.xlane.f32.xlu0 %v3466_v40 }
 0x2c5   :  { %1167 = vadd.xlane.f32.xlu1 %v3470_v62 }
 0x2c7   :  { %1241 = vadd.xlane.f32.xlu0 %v1207_v58 }
 0x2c9   :  { %1243 = vadd.xlane.f32.xlu1 %v1208_v3 }
 0x2cb   :  { %1237 = vadd.xlane.f32.xlu0 %v1205_v11 }
 0x2cd   :  { %1239 = vadd.xlane.f32.xlu1 %v1206_v46 }
 0x2ce   :  { %v2276_v52 = vpop.f32.mrb[12].mxu1 }
 0x2cf   :  { %v3487_v43 = vadd.f32 %v2276_v52, %v3408_v14  ;;  %v1102_v8 = vpop.f32.mrb[13].mxu1 }
 0x2d0   :  { %v2277_v27 = vpop.f32.mrb[14].mxu1  ;;  %v3496_v50 = vadd.f32 %v1102_v8, %v3408_v14 }
 0x2d1   :  { %v3492_v10 = vadd.f32 %v2277_v27, %v3408_v14  ;;  %1177 = vadd.xlane.f32.xlu0 %v3487_v43  ;;  %v1105_v9 = vpop.f32.mrb[15].mxu1  ;;  %v1211_v38 = vmul.f32 %v3487_v43, %v3487_v43 }
 0x2d2   :  { %v3502_v56 = vadd.f32 %v1105_v9, %v3408_v14  ;;  %v1209_v51 = vmul.f32 %v3496_v50, %v3496_v50 }
 0x2d3   :  { %1179 = vadd.xlane.f32.xlu1 %v3492_v10  ;;  %v1212_v60 = vmul.f32 %v3492_v10, %v3492_v10 }
 0x2d4   :  { %v1210_v39 = vmul.f32 %v3502_v56, %v3502_v56 }
 0x2d5   :  { %1173 = vadd.xlane.f32.xlu0 %v3496_v50 }
 0x2d7   :  { %1175 = vadd.xlane.f32.xlu1 %v3502_v56 }
 0x2d8   :  { %v2280_v45 = vpop.f32.mrb[16].mxu1 }
 0x2d9   :  { %1249 = vadd.xlane.f32.xlu0 %v1211_v38  ;;  %v1118_v63 = vpop.f32.mrb[17].mxu1  ;;  %v3513_v35 = vadd.f32 %v2280_v45, %v3408_v14 }
 0x2da   :  { %v2281_v54 = vpop.f32.mrb[18].mxu1  ;;  %v3522_v57 = vadd.f32 %v1118_v63, %v3408_v14 }
 0x2db   :  { %1251 = vadd.xlane.f32.xlu1 %v1212_v60  ;;  %v1121_v22 = vpop.f32.mrb[19].mxu1  ;;  %v3518_v4 = vadd.f32 %v2281_v54, %v3408_v14  ;;  %v1215_v2 = vmul.f32 %v3513_v35, %v3513_v35 }
 0x2dc   :  { %3963 = vst [vmem:[#allocation6_spill] sm:$0xff] %v3522_v57  ;;  %v3528_v37 = vadd.f32 %v1121_v22, %v3408_v14  ;;  %v1213_v53 = vmul.f32 %v3522_v57, %v3522_v57 }
 0x2dd   :  { %1245 = vadd.xlane.f32.xlu0 %v1209_v51  ;;  %3962 = vst [vmem:[#allocation11_spill] sm:$0xff] %v3518_v4  ;;  %v1216_v41 = vmul.f32 %v3518_v4, %v3518_v4 }
 0x2de   :  { %3964 = vst [vmem:[#allocation7_spill] sm:$0xff] %v3528_v37  ;;  %v1214_v58 = vmul.f32 %v3528_v37, %v3528_v37 }
 0x2df   :  { %1247 = vadd.xlane.f32.xlu1 %v1210_v39 }
 0x2e1   :  { %1185 = vadd.xlane.f32.xlu0 %v3513_v35 }
 0x2e3   :  { %1187 = vadd.xlane.f32.xlu1 %v3518_v4 }
 0x2e5   :  { %1181 = vadd.xlane.f32.xlu0 %v3522_v57 }
 0x2e7   :  { %1183 = vadd.xlane.f32.xlu1 %v3528_v37 }
 0x2e8   :  { %v2284_v48 = vpop.f32.mrb[20].mxu1 }
 0x2e9   :  { %1257 = vadd.xlane.f32.xlu0 %v1215_v2  ;;  %v1134_v7 = vpop.f32.mrb[21].mxu1  ;;  %v3541_v0 = vadd.f32 %v2284_v48, %v3408_v14 }
 0x2ea   :  { %v2285_v17 = vpop.f32.mrb[22].mxu1  ;;  %v3552_v46 = vadd.f32 %v1134_v7, %v3408_v14 }
 0x2eb   :  { %1259 = vadd.xlane.f32.xlu1 %v1216_v41  ;;  %v1137_v18 = vpop.f32.mrb[23].mxu1  ;;  %3965 = vst [vmem:[#allocation8_spill] sm:$0xff] %v3541_v0  ;;  %v3546_v3 = vadd.f32 %v2285_v17, %v3408_v14 }
 0x2ec   :  { %3967 = vst [vmem:[#allocation10_spill] sm:$0xff] %v3552_v46  ;;  %v3558_v52 = vadd.f32 %v1137_v18, %v3408_v14  ;;  %v1217_v47 = vmul.f32 %v3552_v46, %v3552_v46  ;;  %v1219_v14 = vmul.f32 %v3541_v0, %v3541_v0 }
 0x2ed   :  { %1253 = vadd.xlane.f32.xlu0 %v1213_v53  ;;  %3966 = vst [vmem:[#allocation9_spill] sm:$0xff] %v3546_v3  ;;  %v1220_v63 = vmul.f32 %v3546_v3, %v3546_v3 }
 0x2ee   :  { %3968 = vst [vmem:[#allocation5_spill] sm:$0xff] %v3558_v52  ;;  %v1218_v42 = vmul.f32 %v3558_v52, %v3558_v52 }
 0x2ef   :  { %1255 = vadd.xlane.f32.xlu1 %v1214_v58 }
 0x2f0   :  { %v2192_v24 = vpop.f32.mrb[24].mxu1 }
 0x2f1   :  { %1193 = vadd.xlane.f32.xlu0 %v3541_v0  ;;  %v2193_v11 = vpop.f32.mrb[25].mxu1 }
 0x2f2   :  { %v3549_v15 = vadd.f32 %v2193_v11, %v2192_v24  ;;  %v2195_v21 = vpop.f32.mrb[26].mxu1 }
 0x2f3   :  { %1195 = vadd.xlane.f32.xlu1 %v3546_v3  ;;  %v2196_v23 = vpop.f32.mrb[27].mxu1 }
 0x2f4   :  { %v3555_v25 = vadd.f32 %v2196_v23, %v2195_v21 }
 0x2f5   :  { %1189 = vadd.xlane.f32.xlu0 %v3552_v46 }
 0x2f7   :  { %1191 = vadd.xlane.f32.xlu1 %v3558_v52 }
 0x2f8   :  { %v2198_v8 = vpop.f32.mrb[28].mxu1 }
 0x2f9   :  { %1261 = vadd.xlane.f32.xlu0 %v1217_v47  ;;  %v2199_v27 = vpop.f32.mrb[29].mxu1 }
 0x2fa   :  { %v3566_v9 = vadd.f32 %v2199_v27, %v2198_v8  ;;  %v2201_v38 = vpop.f32.mrb[30].mxu1 }
 0x2fb   :  { %1263 = vadd.xlane.f32.xlu1 %v1218_v42  ;;  %v2202_v60 = vpop.f32.mrb[31].mxu1 }
 0x2fc   :  { %v3570_v45 = vadd.f32 %v2202_v60, %v2201_v38 }
 0x2fd   :  { %1265 = vadd.xlane.f32.xlu0 %v1219_v14 }
 0x2ff   :  { %1267 = vadd.xlane.f32.xlu1 %v1220_v63 }
 0x300   :  { %v2204_v51 = vpop.f32.mrb[32].mxu1 }
 0x301   :  { %v2205_v54 = vpop.f32.mrb[33].mxu1 }
 0x302   :  { %v3574_v22 = vadd.f32 %v2205_v54, %v2204_v51  ;;  %v2207_v39 = vpop.f32.mrb[34].mxu1 }
 0x303   :  { %v2208_v61 = vpop.f32.mrb[35].mxu1 }
 0x304   :  { %v3576_v31 = vadd.f32 %v2208_v61, %v2207_v39 }
 0x308   :  { %v2210_v44 = vpop.f32.mrb[36].mxu1 }
 0x309   :  { %v2211_v34 = vpop.f32.mrb[37].mxu1 }
 0x30a   :  { %v3578_v2 = vadd.f32 %v2211_v34, %v2210_v44  ;;  %v2213_v48 = vpop.f32.mrb[38].mxu1 }
 0x30b   :  { %v2214_v41 = vpop.f32.mrb[39].mxu1 }
 0x30c   :  { %v3580_v7 = vadd.f32 %v2214_v41, %v2213_v48 }
 0x310   :  { %v2216_v17 = vpop.f32.mrb[40].mxu1 }
 0x311   :  { %v2217_v53 = vpop.f32.mrb[41].mxu1 }
 0x312   :  { %v3582_v18 = vadd.f32 %v2217_v53, %v2216_v17  ;;  %v2219_v58 = vpop.f32.mrb[42].mxu1 }
 0x313   :  { %v2220_v24 = vpop.f32.mrb[43].mxu1 }
 0x314   :  { %v3584_v11 = vadd.f32 %v2220_v24, %v2219_v58 }
 0x318   :  { %v2222_v21 = vpop.f32.mrb[44].mxu1 }
 0x319   :  { %v2223_v23 = vpop.f32.mrb[45].mxu1 }
 0x31a   :  { %v3586_v47 = vadd.f32 %v2223_v23, %v2222_v21  ;;  %v2225_v8 = vpop.f32.mrb[46].mxu1 }
 0x31b   :  { %v2226_v42 = vpop.f32.mrb[47].mxu1 }
 0x31c   :  { %v3588_v27 = vadd.f32 %v2226_v42, %v2225_v8 }
 0x31e   :  { %3969 = vst [vmem:[#allocation12_spill] sm:$0xff] %v3588_v27 }
 0x320   :  { %v2228_v38 = vpop.f32.mrb[48].mxu1 }
 0x321   :  { %v2229_v14 = vpop.f32.mrb[49].mxu1 }
 0x322   :  { %v3590_v60 = vadd.f32 %v2229_v14, %v2228_v38  ;;  %v2231_v63 = vpop.f32.mrb[50].mxu1 }
 0x323   :  { %v2232_v51 = vpop.f32.mrb[51].mxu1 }
 0x324   :  { %v3592_v54 = vadd.f32 %v2232_v51, %v2231_v63 }
 0x328   :  { %v2234_v39 = vpop.f32.mrb[52].mxu1  ;;  %v1154_v61 = vpop.xlane.xlu0 %1153 }
 0x329   :  { %v2235_v44 = vpop.f32.mrb[53].mxu1  ;;  %v1271_v24 = vmul.f32 0.0078125, %v1154_v61 }
 0x32a   :  { %v3594_v34 = vadd.f32 %v2235_v44, %v2234_v39  ;;  %v2237_v48 = vpop.f32.mrb[54].mxu1  ;;  %v1156_v41 = vpop.xlane.xlu1 %1155 }
 0x32b   :  { %v2238_v17 = vpop.f32.mrb[55].mxu1  ;;  %v3598_v23 = vmul.f32 0.0078125, %v1156_v41  ;;  %v1319_v14 = vmul.f32 %v1271_v24, %v1271_v24 }
 0x32c   :  { %3970 = vst [vmem:[#allocation13_spill] sm:$0xff] %v3594_v34  ;;  %v1150_v53 = vpop.xlane.xlu0 %1149  ;;  %v3596_v58 = vadd.f32 %v2238_v17, %v2237_v48 }
 0x32d   :  { %v3600_v63 = vmul.f32 0.0078125, %v1150_v53  ;;  %v1320_v61 = vmul.f32 %v3598_v23, %v3598_v23 }
 0x32e   :  { %3971 = vst [vmem:[#allocation14_spill] sm:$0xff] %v3596_v58  ;;  %v1152_v21 = vpop.xlane.xlu1 %1151 }
 0x32f   :  { %v3604_v44 = vmul.f32 0.0078125, %v1152_v21  ;;  %v1317_v53 = vmul.f32 %v3600_v63, %v3600_v63 }
 0x330   :  { %v2240_v8 = vpop.f32.mrb[56].mxu1  ;;  %v1226_v42 = vpop.xlane.xlu0 %1225 }
 0x331   :  { %v2241_v38 = vpop.f32.mrb[57].mxu1  ;;  %v1295_v51 = vmul.f32 0.0078125, %v1226_v42  ;;  %v1318_v21 = vmul.f32 %v3604_v44, %v3604_v44 }
 0x332   :  { %v3602_v3 = vadd.f32 %v2241_v38, %v2240_v8  ;;  %v2243_v39 = vpop.f32.mrb[58].mxu1  ;;  %v1228_v34 = vpop.xlane.xlu1 %1227 }
 0x333   :  { %v2244_v0 = vpop.f32.mrb[59].mxu1  ;;  %v1343_v48 = vsub.f32 %v1295_v51, %v1319_v14  ;;  %v1296_v41 = vmul.f32 0.0078125, %v1228_v34 }
 0x334   :  { %3972 = vst [vmem:[#allocation15_spill] sm:$0xff] %v3602_v3  ;;  %v3608_v17 = vadd.f32 %v2244_v0, %v2243_v39  ;;  %v1222_v58 = vpop.xlane.xlu0 %1221 }
 0x335   :  { %v1367_v52 = vmax.f32 %v1343_v48, 0.0  ;;  %v1344_v42 = vsub.f32 %v1296_v41, %v1320_v61  ;;  %v1293_v8 = vmul.f32 0.0078125, %v1222_v58  ;;  %v1575_v61 = vsub.s32 6, %v3961_v6 }
 0x336   :  { %3973 = vst [vmem:[#allocation16_spill] sm:$0xff] %v3608_v17  ;;  %v1224_v38 = vpop.xlane.xlu1 %1223  ;;  %v1487_v41 = vsub.s32 4, %v3961_v6 }
 0x337   :  { %v1391_v3 = vadd.f32 1e-05, %v1367_v52  ;;  %v1368_v46 = vmax.f32 %v1344_v42, 0.0  ;;  %v1341_v27 = vsub.f32 %v1293_v8, %v1317_v53  ;;  %v1294_v37 = vmul.f32 0.0078125, %v1224_v38 }
 0x338   :  { %v1515_v52 = vsub.s32 5, %v3961_v6  ;;  %v3626_v8 = vrot.slane %v3405_v30, %v1487_v41 }
 0x339   :  { %2477 = vrsqrt.f32 %v1391_v3  ;;  %v1392_v14 = vadd.f32 1e-05, %v1368_v46  ;;  %v1365_v34 = vmax.f32 %v1341_v27, 0.0  ;;  %v1342_v0 = vsub.f32 %v1294_v37, %v1318_v21 }
 0x33a   :  { %v3620_v37 = vrot.slane %v3405_v30, %v1575_v61  ;;  %v1439_v27 = vsub.f32 %v3411_v19, %v1271_v24  ;;  %v1440_v19 = vsub.f32 %v3414_v28, %v3598_v23  ;;  %v1438_v28 = vsub.f32 %v3422_v26, %v3604_v44 }
 0x33b   :  { %v1162_v51 = vpop.xlane.xlu0 %1161  ;;  %2479 = vrsqrt.f32 %v1392_v14  ;;  %v1389_v39 = vadd.f32 1e-05, %v1365_v34  ;;  %v1366_v17 = vmax.f32 %v1342_v0, 0.0 }
 0x33c   :  { %v3617_v53 = vmul.f32 0.0078125, %v1162_v51 }
 0x33d   :  { %v1164_v57 = vpop.xlane.xlu1 %1163  ;;  %2481 = vrsqrt.f32 %v1389_v39  ;;  %v1390_v58 = vadd.f32 1e-05, %v1366_v17  ;;  %v3629_v17 = vrot.slane %v3405_v30, %v1515_v52  ;;  %v1716_v30 = vadd.f32 %v3484_v49, %v3620_v37 }
 0x33e   :  { %v3622_v46 = vmul.f32 0.0078125, %v1164_v57  ;;  %v1323_v6 = vmul.f32 %v3617_v53, %v3617_v53  ;;  %v1708_v57 = vadd.f32 %v3482_v1, %v3620_v37  ;;  %v1437_v1 = vsub.f32 %v3418_v20, %v3600_v63 }
 0x33f   :  { %v1158_v48 = vpop.xlane.xlu0 %1157  ;;  %2483 = vrsqrt.f32 %v1390_v58 }
 0x340   :  { %v3633_v38 = vmul.f32 0.0078125, %v1158_v48  ;;  %v1324_v39 = vmul.f32 %v3622_v46, %v3622_v46  ;;  %v1719_v48 = vadd.f32 %v3489_v16, %v3620_v37 }
 0x341   :  { %v1160_v3 = vpop.xlane.xlu1 %1159 }
 0x342   :  { %v3639_v24 = vmul.f32 0.0078125, %v1160_v3  ;;  %v1321_v3 = vmul.f32 %v3633_v38, %v3633_v38 }
 0x343   :  { %v1234_v42 = vpop.xlane.xlu0 %1233  ;;  %v2478_v21 = vpop.eup %2477 }
 0x344   :  { %v1299_v14 = vmul.f32 0.0078125, %v1234_v42  ;;  %v1463_v0 = vmul.f32 %v2478_v21, %v1439_v27  ;;  %v1322_v16 = vmul.f32 %v3639_v24, %v3639_v24 }
 0x345   :  { %v1236_v34 = vpop.xlane.xlu1 %1235  ;;  %v2480_v51 = vpop.eup %2479 }
 0x346   :  { %v1347_v61 = vsub.f32 %v1299_v14, %v1323_v6  ;;  %v1300_v58 = vmul.f32 0.0078125, %v1236_v34  ;;  %v1491_v41 = vmul.f32 %v3626_v8, %v1463_v0  ;;  %v1464_v52 = vmul.f32 %v2480_v51, %v1440_v19 }
 0x347   :  { %v1230_v23 = vpop.xlane.xlu0 %1229  ;;  %v2482_v49 = vpop.eup %2481 }
 0x348   :  { %v1371_v27 = vmax.f32 %v1347_v61, 0.0  ;;  %v1348_v42 = vsub.f32 %v1300_v58, %v1324_v39  ;;  %v1297_v21 = vmul.f32 0.0078125, %v1230_v23  ;;  %v1461_v6 = vmul.f32 %v2482_v49, %v1437_v1 }
 0x349   :  { %v1519_v20 = vadd.f32 %v3629_v17, %v1491_v41  ;;  %v1232_v63 = vpop.xlane.xlu1 %1231  ;;  %v1492_v26 = vmul.f32 %v3626_v8, %v1464_v52  ;;  %v2484_v44 = vpop.eup %2483  ;;  %v1711_v52 = vadd.f32 %v3499_v29, %v3620_v37  ;;  %v3669_v29 = vadd.f32 %v3525_v33, %v3620_v37 }
 0x34a   :  { %v1395_v14 = vadd.f32 1e-05, %v1371_v27  ;;  %v1372_v34 = vmax.f32 %v1348_v42, 0.0  ;;  %v1345_v19 = vsub.f32 %v1297_v21, %v1321_v3  ;;  %v1298_v0 = vmul.f32 0.0078125, %v1232_v63 }
 0x34b   :  { %v1489_v51 = vmul.f32 %v3626_v8, %v1461_v6  ;;  %v1462_v4 = vmul.f32 %v2484_v44, %v1438_v28  ;;  %v1804_v61 = vadd.f32 %v1716_v30, %v1519_v20  ;;  %v1520_v39 = vadd.f32 %v3629_v17, %v1492_v26 }
 0x34c   :  { %2485 = vrsqrt.f32 %v1395_v14  ;;  %v1396_v58 = vadd.f32 1e-05, %v1372_v34  ;;  %v1369_v23 = vmax.f32 %v1345_v19, 0.0  ;;  %v1346_v1 = vsub.f32 %v1298_v0, %v1322_v16  ;;  %v1170_v3 = vpop.xlane.xlu0 %1169 }
 0x34d   :  { %v1517_v41 = vadd.f32 %v3629_v17, %v1489_v51  ;;  %v1490_v49 = vmul.f32 %v3626_v8, %v1462_v4  ;;  %v1852_v27 = vmul.f32 0.70710677, %v1804_v61  ;;  %v1805_v21 = vadd.f32 %v1719_v48, %v1520_v39 }
 0x34e   :  { %2487 = vrsqrt.f32 %v1396_v58  ;;  %v1393_v42 = vadd.f32 1e-05, %v1369_v23  ;;  %v1370_v6 = vmax.f32 %v1346_v1, 0.0  ;;  %v1172_v20 = vpop.xlane.xlu1 %1171  ;;  %v3673_v44 = vadd.f32 %v3531_v36, %v3620_v37 }
 0x34f   :  { %v1802_v28 = vadd.f32 %v1708_v57, %v1517_v41  ;;  %v1518_v30 = vadd.f32 %v3629_v17, %v1490_v49  ;;  %2489 = verf.f32 %v1852_v27  ;;  %v1853_v16 = vmul.f32 0.70710677, %v1805_v21 }
 0x350   :  { %2491 = vrsqrt.f32 %v1393_v42  ;;  %v1166_v4 = vpop.xlane.xlu0 %1165  ;;  %v3675_v57 = vmul.f32 0.0078125, %v1170_v3  ;;  %v1732_v48 = vadd.f32 %v3549_v15, %v3620_v37  ;;  %v3681_v14 = vadd.f32 %v3555_v25, %v3620_v37 }
 0x351   :  { %v1850_v63 = vmul.f32 0.70710677, %v1802_v28  ;;  %v3665_v26 = vadd.f32 %v1711_v52, %v1518_v30  ;;  %v3685_v34 = vadd.f32 %v3566_v9, %v3620_v37  ;;  %v1394_v19 = vadd.f32 1e-05, %v1370_v6 }
 0x352   :  { %v1168_v0 = vpop.xlane.xlu1 %1167  ;;  %v3690_v36 = vadd.f32 %v3570_v45, %v3620_v37  ;;  %v3692_v51 = vmul.f32 0.0078125, %v1172_v20  ;;  %v3696_v15 = vadd.f32 %v3574_v22, %v3620_v37  ;;  %v3700_v25 = vadd.f32 %v3576_v31, %v3620_v37 }
 0x353   :  { %2493 = verf.f32 %v1850_v63  ;;  %v1851_v33 = vmul.f32 0.70710677, %v3665_v26  ;;  %v1443_v9 = vsub.f32 %v3435_v55, %v3617_v53  ;;  %v3704_v39 = vmul.f32 0.0078125, %v1166_v4 }
 0x354   :  { %2495 = verf.f32 %v1853_v16  ;;  %v1242_v58 = vpop.xlane.xlu0 %1241  ;;  %v3708_v45 = vadd.f32 %v3578_v2, %v3620_v37  ;;  %v1444_v22 = vsub.f32 %v3438_v13, %v3622_v46  ;;  %v1441_v1 = vsub.f32 %v3442_v5, %v3633_v38 }
 0x355   :  { %2497 = verf.f32 %v1851_v33  ;;  %v1327_v31 = vmul.f32 %v3675_v57, %v3675_v57  ;;  %v1303_v41 = vmul.f32 0.0078125, %v1242_v58  ;;  %v1828_v55 = vmul.f32 0.5, %v1804_v61 }
 0x356   :  { %v2486_v23 = vpop.eup %2485  ;;  %2499 = vrsqrt.f32 %v1394_v19  ;;  %v3716_v53 = vmul.f32 0.0078125, %v1168_v0  ;;  %v1244_v49 = vpop.xlane.xlu1 %1243  ;;  %v1829_v2 = vmul.f32 0.5, %v1805_v21  ;;  %v1328_v3 = vmul.f32 %v3692_v51, %v3692_v51 }
 0x357   :  { %v1467_v52 = vmul.f32 %v2486_v23, %v1443_v9  ;;  %v1351_v42 = vsub.f32 %v1303_v41, %v1327_v31  ;;  %v1304_v13 = vmul.f32 0.0078125, %v1244_v49  ;;  %v1826_v30 = vmul.f32 0.5, %v1802_v28 }
 0x358   :  { %v2488_v27 = vpop.eup %2487  ;;  %v1325_v5 = vmul.f32 %v3704_v39, %v3704_v39  ;;  %v1238_v38 = vpop.xlane.xlu0 %1237  ;;  %v1326_v21 = vmul.f32 %v3716_v53, %v3716_v53 }
 0x359   :  { %v2490_v46 = vpop.eup %2489  ;;  %v1495_v61 = vmul.f32 %v3626_v8, %v1467_v52  ;;  %v1468_v6 = vmul.f32 %v2488_v27, %v1444_v22  ;;  %v1375_v63 = vmax.f32 %v1351_v42, 0.0  ;;  %v1352_v4 = vsub.f32 %v1304_v13, %v1328_v3 }
 0x35a   :  { %v2492_v20 = vpop.eup %2491  ;;  %v1900_v16 = vadd.f32 1.0, %v2490_v46  ;;  %v1301_v33 = vmul.f32 0.0078125, %v1238_v38  ;;  %v1240_v0 = vpop.xlane.xlu1 %1239 }
 0x35b   :  { %v1523_v19 = vadd.f32 %v3629_v17, %v1495_v61  ;;  %v1496_v28 = vmul.f32 %v3626_v8, %v1468_v6  ;;  %v1465_v9 = vmul.f32 %v2492_v20, %v1441_v1  ;;  %v1399_v23 = vadd.f32 1e-05, %v1375_v63 }
 0x35c   :  { %v1924_v58 = vmul.f32 %v1900_v16, %v1828_v55  ;;  %v1376_v31 = vmax.f32 %v1352_v4, 0.0  ;;  %v1349_v41 = vsub.f32 %v1301_v33, %v1325_v5  ;;  %v1302_v52 = vmul.f32 0.0078125, %v1240_v0 }
 0x35d   :  { %v2494_v49 = vpop.eup %2493  ;;  %v1808_v22 = vadd.f32 %v1732_v48, %v1523_v19  ;;  %v1524_v27 = vadd.f32 %v3629_v17, %v1496_v28  ;;  %v1493_v3 = vmul.f32 %v3626_v8, %v1465_v9  ;;  %2501 = vrsqrt.f32 %v1399_v23 }
 0x35e   :  { %v2496_v42 = vpop.eup %2495  ;;  %v1898_v13 = vadd.f32 1.0, %v2494_v49  ;;  %1948 = vst [vmem:[#allocation2 + $0x10] sm:$0xff] %v1924_v58  ;;  %v1400_v46 = vadd.f32 1e-05, %v1376_v31  ;;  %v1373_v38 = vmax.f32 %v1349_v41, 0.0  ;;  %v1178_v61 = vpop.xlane.xlu0 %1177  ;;  %v1827_v1 = vmul.f32 0.5, %v3665_v26 }
 0x35f   :  { %v2498_v6 = vpop.eup %2497  ;;  %v1901_v55 = vadd.f32 1.0, %v2496_v42  ;;  %v1856_v20 = vmul.f32 0.70710677, %v1808_v22  ;;  %v1350_v5 = vsub.f32 %v1302_v52, %v1326_v21  ;;  %v1809_v28 = vadd.f32 %v3681_v14, %v1524_v27 }
 0x360   :  { %v1922_v16 = vmul.f32 %v1898_v13, %v1826_v30  ;;  %v1899_v48 = vadd.f32 1.0, %v2498_v6  ;;  %2503 = vrsqrt.f32 %v1400_v46  ;;  %v1397_v63 = vadd.f32 1e-05, %v1373_v38  ;;  %v1180_v4 = vpop.xlane.xlu1 %1179  ;;  %v2500_v33 = vpop.eup %2499 }
 0x361   :  { %v1925_v19 = vmul.f32 %v1901_v55, %v1829_v2  ;;  %2505 = verf.f32 %v1856_v20  ;;  %v1374_v0 = vmax.f32 %v1350_v5, 0.0  ;;  %v1442_v9 = vsub.f32 %v3446_v32, %v3639_v24 }
 0x362   :  { %1946 = vst [vmem:[#allocation2] sm:$0xff] %v1922_v16  ;;  %v1923_v58 = vmul.f32 %v1899_v48, %v1827_v1  ;;  %2507 = vrsqrt.f32 %v1397_v63  ;;  %v1521_v26 = vadd.f32 %v3629_v17, %v1493_v3  ;;  %v1174_v21 = vpop.xlane.xlu0 %1173  ;;  %v1857_v23 = vmul.f32 0.70710677, %v1809_v28 }
 0x363   :  { %1949 = vst [vmem:[#allocation2 + $0x18] sm:$0xff] %v1925_v19  ;;  %v1398_v30 = vadd.f32 1e-05, %v1374_v0  ;;  %v3734_v31 = vmul.f32 0.0078125, %v1178_v61  ;;  %v3738_v2 = vadd.f32 %v3580_v7, %v3620_v37  ;;  %v1466_v32 = vmul.f32 %v2500_v33, %v1442_v9 }
 0x364   :  { %1947 = vst [vmem:[#allocation2 + $0x8] sm:$0xff] %v1923_v58  ;;  %v3741_v14 = vadd.f32 %v3669_v29, %v1521_v26  ;;  %v1176_v24 = vpop.xlane.xlu1 %1175  ;;  %v3745_v41 = vadd.f32 %v3582_v18, %v3620_v37  ;;  %v3749_v49 = vadd.f32 %v3584_v11, %v3620_v37  ;;  %v1447_v52 = vsub.f32 %v3459_v59, %v3675_v57 }
 0x365   :  { %2509 = vrsqrt.f32 %v1398_v30  ;;  %v3753_v7 = vmul.f32 0.0078125, %v1180_v4  ;;  %v3757_v29 = vadd.f32 %v3586_v47, %v3620_v37  ;;  %v1494_v18 = vmul.f32 %v3626_v8, %v1466_v32 }
 0x366   :  { %2511 = verf.f32 %v1857_v23  ;;  %v1854_v27 = vmul.f32 0.70710677, %v3741_v14  ;;  %v3761_v3 = vmul.f32 0.0078125, %v1174_v21  ;;  %v1250_v42 = vpop.xlane.xlu0 %1249  ;;  %v1448_v11 = vsub.f32 %v3462_v12, %v3692_v51 }
 0x367   :  { %v1331_v59 = vmul.f32 %v3734_v31, %v3734_v31  ;;  %v3767_v57 = vmul.f32 0.0078125, %v1176_v24  ;;  %v1307_v13 = vmul.f32 0.0078125, %v1250_v42  ;;  %v2502_v46 = vpop.eup %2501  ;;  %v1445_v47 = vsub.f32 %v3466_v40, %v3704_v39 }
 0x368   :  { %v1446_v38 = vsub.f32 %v3470_v62, %v3716_v53  ;;  %2513 = verf.f32 %v1854_v27  ;;  %v1522_v61 = vadd.f32 %v3629_v17, %v1494_v18  ;;  %v1252_v6 = vpop.xlane.xlu1 %1251  ;;  %v1832_v1 = vmul.f32 0.5, %v1808_v22 }
 0x369   :  { %v1332_v12 = vmul.f32 %v3753_v7, %v3753_v7  ;;  %v1355_v51 = vsub.f32 %v1307_v13, %v1331_v59  ;;  %v1308_v55 = vmul.f32 0.0078125, %v1252_v6  ;;  %v1833_v5 = vmul.f32 0.5, %v1809_v28 }
 0x36a   :  { %v2504_v20 = vpop.eup %2503  ;;  %v3777_v16 = vadd.f32 %v3673_v44, %v1522_v61  ;;  %v1329_v40 = vmul.f32 %v3761_v3, %v3761_v3  ;;  %v1246_v39 = vpop.xlane.xlu0 %1245  ;;  %v1471_v62 = vmul.f32 %v2502_v46, %v1447_v52  ;;  %v1330_v48 = vmul.f32 %v3767_v57, %v3767_v57 }
 0x36b   :  { %v2506_v53 = vpop.eup %2505  ;;  %v1379_v22 = vmax.f32 %v1355_v51, 0.0  ;;  %v1356_v63 = vsub.f32 %v1308_v55, %v1332_v12  ;;  %v1305_v4 = vmul.f32 0.0078125, %v1246_v39  ;;  %v1472_v9 = vmul.f32 %v2504_v20, %v1448_v11 }
 0x36c   :  { %v2508_v33 = vpop.eup %2507  ;;  %v1904_v19 = vadd.f32 1.0, %v2506_v53  ;;  %v1855_v0 = vmul.f32 0.70710677, %v3777_v16  ;;  %v1499_v28 = vmul.f32 %v3626_v8, %v1471_v62  ;;  %v1248_v44 = vpop.xlane.xlu1 %1247  ;;  %v1830_v20 = vmul.f32 0.5, %v3741_v14 }
 0x36d   :  { %v1469_v58 = vmul.f32 %v2508_v33, %v1445_v47  ;;  %v1403_v26 = vadd.f32 1e-05, %v1379_v22  ;;  %v1380_v21 = vmax.f32 %v1356_v63, 0.0  ;;  %v1353_v30 = vsub.f32 %v1305_v4, %v1329_v40 }
 0x36e   :  { %v1928_v23 = vmul.f32 %v1904_v19, %v1832_v1  ;;  %2515 = verf.f32 %v1855_v0  ;;  %v1527_v32 = vadd.f32 %v3629_v17, %v1499_v28  ;;  %v1306_v24 = vmul.f32 0.0078125, %v1248_v44  ;;  %v1186_v52 = vpop.xlane.xlu0 %1185 }
 0x36f   :  { %v2510_v27 = vpop.eup %2509  ;;  %v1497_v18 = vmul.f32 %v3626_v8, %v1469_v58  ;;  %2517 = vrsqrt.f32 %v1403_v26  ;;  %v1404_v42 = vadd.f32 1e-05, %v1380_v21  ;;  %v1377_v59 = vmax.f32 %v1353_v30, 0.0 }
 0x370   :  { %v2512_v13 = vpop.eup %2511  ;;  %1952 = vst [vmem:[#allocation2 + $0x30] sm:$0xff] %v1928_v23  ;;  %v1470_v46 = vmul.f32 %v2510_v27, %v1446_v38  ;;  %v1812_v11 = vadd.f32 %v3696_v15, %v1527_v32  ;;  %v1354_v47 = vsub.f32 %v1306_v24, %v1330_v48  ;;  %v1500_v61 = vmul.f32 %v3626_v8, %v1472_v9  ;;  %v1188_v6 = vpop.xlane.xlu1 %1187 }
 0x371   :  { %v1905_v1 = vadd.f32 1.0, %v2512_v13  ;;  %v1525_v12 = vadd.f32 %v3629_v17, %v1497_v18  ;;  %2519 = vrsqrt.f32 %v1404_v42  ;;  %v1401_v51 = vadd.f32 1e-05, %v1377_v59 }
 0x372   :  { %v2514_v55 = vpop.eup %2513  ;;  %v1498_v40 = vmul.f32 %v3626_v8, %v1470_v46  ;;  %v1860_v39 = vmul.f32 0.70710677, %v1812_v11  ;;  %v1378_v62 = vmax.f32 %v1354_v47, 0.0  ;;  %v1182_v53 = vpop.xlane.xlu0 %1181  ;;  %v1528_v4 = vadd.f32 %v3629_v17, %v1500_v61 }
 0x373   :  { %v1929_v38 = vmul.f32 %v1905_v1, %v1833_v5  ;;  %v1902_v22 = vadd.f32 1.0, %v2514_v55  ;;  %v1810_v15 = vadd.f32 %v3685_v34, %v1525_v12  ;;  %2521 = vrsqrt.f32 %v1401_v51 }
 0x374   :  { %v1526_v48 = vadd.f32 %v3629_v17, %v1498_v40  ;;  %2523 = verf.f32 %v1860_v39  ;;  %v1402_v63 = vadd.f32 1e-05, %v1378_v62  ;;  %v1184_v33 = vpop.xlane.xlu1 %1183  ;;  %v3795_v0 = vmul.f32 0.0078125, %v1186_v52 }
 0x375   :  { %1953 = vst [vmem:[#allocation2 + $0x38] sm:$0xff] %v1929_v38  ;;  %v1926_v19 = vmul.f32 %v1902_v22, %v1830_v20  ;;  %v1858_v14 = vmul.f32 0.70710677, %v1810_v15  ;;  %v3799_v28 = vadd.f32 %v3590_v60, %v3620_v37  ;;  %v3805_v34 = vadd.f32 %v3700_v25, %v1528_v4 }
 0x376   :  { %v3802_v5 = vadd.f32 %v3690_v36, %v1526_v48  ;;  %2525 = vrsqrt.f32 %v1402_v63  ;;  %v3807_v44 = vmul.f32 0.0078125, %v1188_v6  ;;  %v1258_v9 = vpop.xlane.xlu0 %1257  ;;  %v1451_v58 = vsub.f32 %v3487_v43, %v3734_v31 }
 0x377   :  { %1950 = vst [vmem:[#allocation2 + $0x20] sm:$0xff] %v1926_v19  ;;  %v1452_v26 = vsub.f32 %v3492_v10, %v3753_v7  ;;  %2527 = verf.f32 %v1858_v14  ;;  %v3813_v60 = vmul.f32 0.0078125, %v1182_v53  ;;  %v1449_v36 = vsub.f32 %v3496_v50, %v3761_v3 }
 0x378   :  { %v2516_v21 = vpop.eup %2515  ;;  %v1450_v25 = vsub.f32 %v3502_v56, %v3767_v57  ;;  %v1859_v30 = vmul.f32 0.70710677, %v3802_v5  ;;  %v1861_v23 = vmul.f32 0.70710677, %v3805_v34  ;;  %v1260_v32 = vpop.xlane.xlu1 %1259  ;;  %v1831_v31 = vmul.f32 0.5, %v3777_v16 }
 0x379   :  { %v2518_v43 = vpop.eup %2517  ;;  %v1903_v24 = vadd.f32 1.0, %v2516_v21  ;;  %v1335_v10 = vmul.f32 %v3795_v0, %v3795_v0  ;;  %v1336_v7 = vmul.f32 %v3807_v44, %v3807_v44  ;;  %v1333_v50 = vmul.f32 %v3813_v60, %v3813_v60 }
 0x37a   :  { %2529 = verf.f32 %v1859_v30  ;;  %v3828_v56 = vmul.f32 0.0078125, %v1184_v33  ;;  %v1311_v3 = vmul.f32 0.0078125, %v1258_v9  ;;  %v1254_v57 = vpop.xlane.xlu0 %1253  ;;  %v1312_v18 = vmul.f32 0.0078125, %v1260_v32 }
 0x37b   :  { %v2520_v52 = vpop.eup %2519  ;;  %v1927_v27 = vmul.f32 %v1903_v24, %v1831_v31  ;;  %2531 = verf.f32 %v1861_v23  ;;  %v1309_v16 = vmul.f32 0.0078125, %v1254_v57  ;;  %v1836_v42 = vmul.f32 0.5, %v1812_v11 }
 0x37c   :  { %v1334_v59 = vmul.f32 %v3828_v56, %v3828_v56  ;;  %v1359_v13 = vsub.f32 %v1311_v3, %v1335_v10  ;;  %v1475_v46 = vmul.f32 %v2518_v43, %v1451_v58  ;;  %v1256_v47 = vpop.xlane.xlu1 %1255  ;;  %v1360_v6 = vsub.f32 %v1312_v18, %v1336_v7 }
 0x37d   :  { %v2522_v61 = vpop.eup %2521  ;;  %1951 = vst [vmem:[#allocation2 + $0x28] sm:$0xff] %v1927_v27  ;;  %v1357_v1 = vsub.f32 %v1309_v16, %v1333_v50  ;;  %v1310_v12 = vmul.f32 0.0078125, %v1256_v47  ;;  %v1476_v51 = vmul.f32 %v2520_v52, %v1452_v26  ;;  %v1834_v20 = vmul.f32 0.5, %v1810_v15 }
 0x37e   :  { %v2524_v55 = vpop.eup %2523  ;;  %v1473_v40 = vmul.f32 %v2522_v61, %v1449_v36  ;;  %v1383_v39 = vmax.f32 %v1359_v13, 0.0  ;;  %v1503_v62 = vmul.f32 %v3626_v8, %v1475_v46  ;;  %v1194_v53 = vpop.xlane.xlu0 %1193  ;;  %v1384_v38 = vmax.f32 %v1360_v6, 0.0 }
 0x37f   :  { %v1908_v11 = vadd.f32 1.0, %v2524_v55  ;;  %v1381_v22 = vmax.f32 %v1357_v1, 0.0  ;;  %v1358_v48 = vsub.f32 %v1310_v12, %v1334_v59  ;;  %v1504_v14 = vmul.f32 %v3626_v8, %v1476_v51 }
 0x380   :  { %v2526_v63 = vpop.eup %2525  ;;  %v1501_v4 = vmul.f32 %v3626_v8, %v1473_v40  ;;  %v1407_v33 = vadd.f32 1e-05, %v1383_v39  ;;  %v1531_v19 = vadd.f32 %v3629_v17, %v1503_v62  ;;  %v1196_v9 = vpop.xlane.xlu1 %1195  ;;  %v1408_v21 = vadd.f32 1e-05, %v1384_v38  ;;  %v3976_v38 = vld [vmem:[#allocation7_spill] sm:$0xff] }
 0x381   :  { %v2528_v58 = vpop.eup %2527  ;;  %v1932_v15 = vmul.f32 %v1908_v11, %v1836_v42  ;;  %v1474_v26 = vmul.f32 %v2526_v63, %v1450_v25  ;;  %v1405_v36 = vadd.f32 1e-05, %v1381_v22  ;;  %v1382_v24 = vmax.f32 %v1358_v48, 0.0 }
 0x382   :  { %v1906_v30 = vadd.f32 1.0, %v2528_v58  ;;  %v1529_v23 = vadd.f32 %v3629_v17, %v1501_v4  ;;  %2533 = vrsqrt.f32 %v1407_v33  ;;  %v1816_v32 = vadd.f32 %v3745_v41, %v1531_v19  ;;  %v1190_v43 = vpop.xlane.xlu0 %1189 }
 0x383   :  { %1956 = vst [vmem:[#allocation2 + $0x50] sm:$0xff] %v1932_v15  ;;  %v1502_v31 = vmul.f32 %v3626_v8, %v1474_v26  ;;  %2535 = vrsqrt.f32 %v1408_v21  ;;  %v1532_v10 = vadd.f32 %v3629_v17, %v1504_v14  ;;  %v1835_v25 = vmul.f32 0.5, %v3802_v5 }
 0x384   :  { %v2530_v7 = vpop.eup %2529  ;;  %v1930_v50 = vmul.f32 %v1906_v30, %v1834_v20  ;;  %v1814_v3 = vadd.f32 %v3708_v45, %v1529_v23  ;;  %2537 = vrsqrt.f32 %v1405_v36  ;;  %v1192_v57 = vpop.xlane.xlu1 %1191  ;;  %v1864_v18 = vmul.f32 0.70710677, %v1816_v32 }
 0x385   :  { %v2532_v52 = vpop.eup %2531  ;;  %v1907_v27 = vadd.f32 1.0, %v2530_v7  ;;  %v1530_v41 = vadd.f32 %v3629_v17, %v1502_v31  ;;  %v1406_v16 = vadd.f32 1e-05, %v1382_v24  ;;  %v1837_v42 = vmul.f32 0.5, %v3805_v34 }
 0x386   :  { %1954 = vst [vmem:[#allocation2 + $0x40] sm:$0xff] %v1930_v50  ;;  %v1909_v59 = vadd.f32 1.0, %v2532_v52  ;;  %v1862_v13 = vmul.f32 0.70710677, %v1814_v3  ;;  %v1817_v46 = vadd.f32 %v3749_v49, %v1532_v10  ;;  %v1262_v47 = vpop.xlane.xlu0 %1261  ;;  %2539 = verf.f32 %v1864_v18  ;;  %v3974_v49 = vld [vmem:[#allocation11_spill] sm:$0xff] }
 0x387   :  { %v1931_v61 = vmul.f32 %v1907_v27, %v1835_v25  ;;  %v3846_v5 = vadd.f32 %v3738_v2, %v1530_v41  ;;  %v3850_v45 = vadd.f32 %v3592_v54, %v3620_v37  ;;  %v1455_v1 = vsub.f32 %v3513_v35, %v3795_v0  ;;  %v3975_v54 = vld [vmem:[#allocation6_spill] sm:$0xff] }
 0x388   :  { %v1933_v6 = vmul.f32 %v1909_v59, %v1837_v42  ;;  %2541 = verf.f32 %v1862_v13  ;;  %v1865_v34 = vmul.f32 0.70710677, %v1817_v46  ;;  %v1264_v12 = vpop.xlane.xlu1 %1263  ;;  %v1456_v51 = vsub.f32 %v3974_v49, %v3807_v44 }
 0x389   :  { %1955 = vst [vmem:[#allocation2 + $0x48] sm:$0xff] %v1931_v61  ;;  %v1863_v55 = vmul.f32 0.70710677, %v3846_v5  ;;  %2543 = vrsqrt.f32 %v1406_v16  ;;  %v3857_v2 = vmul.f32 0.0078125, %v1194_v53  ;;  %v1453_v20 = vsub.f32 %v3975_v54, %v3813_v60 }
 0x38a   :  { %1957 = vst [vmem:[#allocation2 + $0x58] sm:$0xff] %v1933_v6  ;;  %2545 = verf.f32 %v1865_v34  ;;  %v3861_v40 = vmul.f32 0.0078125, %v1196_v9  ;;  %v3863_v35 = vmul.f32 0.0078125, %v1190_v43  ;;  %v1266_v0 = vpop.xlane.xlu0 %1265  ;;  %v3865_v39 = vmul.f32 0.0078125, %v1192_v57 }
 0x38b   :  { %2547 = verf.f32 %v1863_v55  ;;  %v1313_v62 = vmul.f32 0.0078125, %v1262_v47  ;;  %v1314_v44 = vmul.f32 0.0078125, %v1264_v12  ;;  %v1454_v53 = vsub.f32 %v3976_v38, %v3828_v56 }
 0x38c   :  { %v2534_v11 = vpop.eup %2533  ;;  %v1838_v22 = vmul.f32 0.5, %v1814_v3  ;;  %v1840_v48 = vmul.f32 0.5, %v1816_v32  ;;  %v1337_v60 = vmul.f32 %v3863_v35, %v3863_v35  ;;  %v1268_v63 = vpop.xlane.xlu1 %1267  ;;  %v1339_v33 = vmul.f32 %v3857_v2, %v3857_v2 }
 0x38d   :  { %v2536_v4 = vpop.eup %2535  ;;  %v1338_v19 = vmul.f32 %v3865_v39, %v3865_v39  ;;  %v1315_v14 = vmul.f32 0.0078125, %v1266_v0  ;;  %v1479_v9 = vmul.f32 %v2534_v11, %v1455_v1  ;;  %v1340_v15 = vmul.f32 %v3861_v40, %v3861_v40  ;;  %v3977_v11 = vld [vmem:[#allocation12_spill] sm:$0xff] }
 0x38e   :  { %v2538_v58 = vpop.eup %2537  ;;  %v1361_v56 = vsub.f32 %v1313_v62, %v1337_v60  ;;  %v1316_v26 = vmul.f32 0.0078125, %v1268_v63  ;;  %v1480_v21 = vmul.f32 %v2536_v4, %v1456_v51  ;;  %v1841_v43 = vmul.f32 0.5, %v1817_v46  ;;  %v3978_v4 = vld [vmem:[#allocation10_spill] sm:$0xff] }
 0x38f   :  { %v1477_v36 = vmul.f32 %v2538_v58, %v1453_v20  ;;  %v1362_v30 = vsub.f32 %v1314_v44, %v1338_v19  ;;  %v1363_v23 = vsub.f32 %v1315_v14, %v1339_v33  ;;  %v1507_v32 = vmul.f32 %v3626_v8, %v1479_v9  ;;  %v3979_v14 = vld [vmem:[#allocation5_spill] sm:$0xff] }
 0x390   :  { %v1385_v31 = vmax.f32 %v1361_v56, 0.0  ;;  %v1364_v24 = vsub.f32 %v1316_v26, %v1340_v15  ;;  %v1508_v10 = vmul.f32 %v3626_v8, %v1480_v21  ;;  %v2540_v7 = vpop.eup %2539  ;;  %v1839_v54 = vmul.f32 0.5, %v3846_v5 }
 0x391   :  { %v1505_v50 = vmul.f32 %v3626_v8, %v1477_v36  ;;  %v1386_v25 = vmax.f32 %v1362_v30, 0.0  ;;  %v1387_v3 = vmax.f32 %v1363_v23, 0.0  ;;  %v1535_v57 = vadd.f32 %v3629_v17, %v1507_v32  ;;  %v3981_v23 = vld [vmem:[#allocation13_spill] sm:$0xff] }
 0x392   :  { %v2542_v52 = vpop.eup %2541  ;;  %v1912_v27 = vadd.f32 1.0, %v2540_v7  ;;  %v1409_v41 = vadd.f32 1e-05, %v1385_v31  ;;  %v1388_v18 = vmax.f32 %v1364_v24, 0.0  ;;  %v1536_v16 = vadd.f32 %v3629_v17, %v1508_v10 }
 0x393   :  { %v2544_v42 = vpop.eup %2543  ;;  %v1910_v59 = vadd.f32 1.0, %v2542_v52  ;;  %v1533_v13 = vadd.f32 %v3629_v17, %v1505_v50  ;;  %v1410_v46 = vadd.f32 1e-05, %v1386_v25  ;;  %v1411_v47 = vadd.f32 1e-05, %v1387_v3  ;;  %v3984_v25 = vld [vmem:[#allocation9_spill] sm:$0xff] }
 0x394   :  { %v2546_v61 = vpop.eup %2545  ;;  %v1936_v6 = vmul.f32 %v1912_v27, %v1840_v48  ;;  %v1478_v1 = vmul.f32 %v2544_v42, %v1454_v53  ;;  %2549 = vrsqrt.f32 %v1409_v41  ;;  %v1820_v34 = vadd.f32 %v3799_v28, %v1535_v57 }
 0x395   :  { %v2548_v12 = vpop.eup %2547  ;;  %v1934_v49 = vmul.f32 %v1910_v59, %v1838_v22  ;;  %v1913_v51 = vadd.f32 1.0, %v2546_v61  ;;  %v1818_v55 = vadd.f32 %v3757_v29, %v1533_v13  ;;  %2551 = vrsqrt.f32 %v1410_v46 }
 0x396   :  { %v1911_v20 = vadd.f32 1.0, %v2548_v12  ;;  %1960 = vst [vmem:[#allocation2 + $0x70] sm:$0xff] %v1936_v6  ;;  %v1506_v0 = vmul.f32 %v3626_v8, %v1478_v1  ;;  %2553 = vrsqrt.f32 %v1411_v47  ;;  %v1775_v38 = vadd.f32 %v3977_v11, %v3620_v37  ;;  %v3985_v11 = vld [vmem:[#allocation16_spill] sm:$0xff] }
 0x397   :  { %1958 = vst [vmem:[#allocation2 + $0x60] sm:$0xff] %v1934_v49  ;;  %v1937_v62 = vmul.f32 %v1913_v51, %v1841_v43  ;;  %v1866_v44 = vmul.f32 0.70710677, %v1818_v55  ;;  %v1868_v28 = vmul.f32 0.70710677, %v1820_v34  ;;  %v1821_v29 = vadd.f32 %v3850_v45, %v1536_v16  ;;  %v3980_v45 = vld [vmem:[#allocation8_spill] sm:$0xff] }
 0x398   :  { %v1935_v53 = vmul.f32 %v1911_v20, %v1839_v54  ;;  %v1534_v22 = vadd.f32 %v3629_v17, %v1506_v0  ;;  %v1412_v48 = vadd.f32 1e-05, %v1388_v18  ;;  %v1457_v33 = vsub.f32 %v3978_v4, %v3863_v35 }
 0x399   :  { %1961 = vst [vmem:[#allocation2 + $0x78] sm:$0xff] %v1937_v62  ;;  %2555 = verf.f32 %v1866_v44  ;;  %v1869_v60 = vmul.f32 0.70710677, %v1821_v29  ;;  %v1458_v9 = vsub.f32 %v3979_v14, %v3865_v39  ;;  %v1459_v15 = vsub.f32 %v3980_v45, %v3857_v2  ;;  %v3982_v39 = vld [vmem:[#allocation14_spill] sm:$0xff]  ;;  %v3983_v2 = vld [vmem:[#allocation15_spill] sm:$0xff] }
 0x39a   :  { %1959 = vst [vmem:[#allocation2 + $0x68] sm:$0xff] %v1935_v53  ;;  %v1819_v5 = vadd.f32 %v1775_v38, %v1534_v22  ;;  %2557 = verf.f32 %v1868_v28  ;;  %v1788_v32 = vadd.f32 %v3981_v23, %v3620_v37  ;;  %v1791_v24 = vadd.f32 %v3982_v39, %v3620_v37 }
 0x39b   :  { %2559 = vrsqrt.f32 %v1412_v48  ;;  %v1796_v7 = vadd.f32 %v3983_v2, %v3620_v37  ;;  %v1460_v3 = vsub.f32 %v3984_v25, %v3861_v40  ;;  %v1842_v57 = vmul.f32 0.5, %v1818_v55 }
 0x39c   :  { %v1867_v63 = vmul.f32 0.70710677, %v1819_v5  ;;  %2561 = verf.f32 %v1869_v60  ;;  %v1844_v18 = vmul.f32 0.5, %v1820_v34  ;;  %v1845_v1 = vmul.f32 0.5, %v1821_v29 }
 0x39d   :  { %v1843_v20 = vmul.f32 0.5, %v1819_v5  ;;  %v1799_v38 = vadd.f32 %v3985_v11, %v3620_v37 }
 0x39e   :  { %v2550_v19 = vpop.eup %2549  ;;  %2563 = verf.f32 %v1867_v63 }
 0x39f   :  { %v2552_v58 = vpop.eup %2551  ;;  %v1481_v56 = vmul.f32 %v2550_v19, %v1457_v33 }
 0x3a0   :  { %v2554_v26 = vpop.eup %2553  ;;  %v1482_v21 = vmul.f32 %v2552_v58, %v1458_v9 }
 0x3a1   :  { %v1509_v36 = vmul.f32 %v3626_v8, %v1481_v56  ;;  %v1483_v30 = vmul.f32 %v2554_v26, %v1459_v15 }
 0x3a2   :  { %v1510_v35 = vmul.f32 %v3626_v8, %v1482_v21 }
 0x3a3   :  { %v2556_v43 = vpop.eup %2555  ;;  %v1537_v31 = vadd.f32 %v3629_v17, %v1509_v36  ;;  %v1511_v10 = vmul.f32 %v3626_v8, %v1483_v30 }
 0x3a4   :  { %v2558_v50 = vpop.eup %2557  ;;  %v1914_v52 = vadd.f32 1.0, %v2556_v43  ;;  %v1538_v27 = vadd.f32 %v3629_v17, %v1510_v35 }
 0x3a5   :  { %v2560_v41 = vpop.eup %2559  ;;  %v1916_v16 = vadd.f32 1.0, %v2558_v50  ;;  %v1822_v42 = vadd.f32 %v1788_v32, %v1537_v31  ;;  %v1539_v59 = vadd.f32 %v3629_v17, %v1511_v10 }
 0x3a6   :  { %v2562_v13 = vpop.eup %2561  ;;  %v1938_v46 = vmul.f32 %v1914_v52, %v1842_v57  ;;  %v1823_v47 = vadd.f32 %v1791_v24, %v1538_v27  ;;  %v1484_v61 = vmul.f32 %v2560_v41, %v1460_v3 }
 0x3a7   :  { %v1940_v6 = vmul.f32 %v1916_v16, %v1844_v18  ;;  %v1917_v12 = vadd.f32 1.0, %v2562_v13  ;;  %v1870_v49 = vmul.f32 0.70710677, %v1822_v42  ;;  %v1824_v55 = vadd.f32 %v1796_v7, %v1539_v59 }
 0x3a8   :  { %v2564_v51 = vpop.eup %2563  ;;  %1962 = vst [vmem:[#allocation2 + $0x80] sm:$0xff] %v1938_v46  ;;  %v1871_v40 = vmul.f32 0.70710677, %v1823_v47  ;;  %v1512_v54 = vmul.f32 %v3626_v8, %v1484_v61  ;;  %v1846_v29 = vmul.f32 0.5, %v1822_v42  ;;  %v1847_v60 = vmul.f32 0.5, %v1823_v47 }
 0x3a9   :  { %v1915_v34 = vadd.f32 1.0, %v2564_v51  ;;  %1964 = vst [vmem:[#allocation2 + $0x90] sm:$0xff] %v1940_v6  ;;  %v1941_v0 = vmul.f32 %v1917_v12, %v1845_v1  ;;  %2565 = verf.f32 %v1870_v49  ;;  %v1872_v62 = vmul.f32 0.70710677, %v1824_v55 }
 0x3aa   :  { %2567 = verf.f32 %v1871_v40  ;;  %v1540_v44 = vadd.f32 %v3629_v17, %v1512_v54  ;;  %v1848_v17 = vmul.f32 0.5, %v1824_v55 }
 0x3ab   :  { %v1939_v28 = vmul.f32 %v1915_v34, %v1843_v20  ;;  %1965 = vst [vmem:[#allocation2 + $0x98] sm:$0xff] %v1941_v0  ;;  %2569 = verf.f32 %v1872_v62 }
 0x3ac   :  { %v1825_v53 = vadd.f32 %v1799_v38, %v1540_v44 }
 0x3ad   :  { %1963 = vst [vmem:[#allocation2 + $0x88] sm:$0xff] %v1939_v28 }
 0x3ae   :  { %v1873_v22 = vmul.f32 0.70710677, %v1825_v53  ;;  %v1849_v58 = vmul.f32 0.5, %v1825_v53 }
 0x3b0   :  { %2571 = verf.f32 %v1873_v22 }
 0x3b3   :  { %v2566_v8 = vpop.eup %2565 }
 0x3b4   :  { %v2568_v48 = vpop.eup %2567  ;;  %v1918_v5 = vadd.f32 1.0, %v2566_v8 }
 0x3b5   :  { %v1919_v63 = vadd.f32 1.0, %v2568_v48  ;;  %v2570_v4 = vpop.eup %2569 }
 0x3b6   :  { %v1942_v33 = vmul.f32 %v1918_v5, %v1846_v29  ;;  %v1920_v14 = vadd.f32 1.0, %v2570_v4 }
 0x3b7   :  { %v1943_v19 = vmul.f32 %v1919_v63, %v1847_v60 }
 0x3b8   :  { %1966 = vst [vmem:[#allocation2 + $0xa0] sm:$0xff] %v1942_v33  ;;  %v1944_v37 = vmul.f32 %v1920_v14, %v1848_v17 }
 0x3b9   :  { %1967 = vst [vmem:[#allocation2 + $0xa8] sm:$0xff] %v1943_v19 }
 0x3ba   :  { %v2572_v9 = vpop.eup %2571  ;;  %1968 = vst [vmem:[#allocation2 + $0xb0] sm:$0xff] %v1944_v37 }
 0x3bb   :  { %v1921_v45 = vadd.f32 1.0, %v2572_v9 }
 0x3bd   :  { %v1945_v15 = vmul.f32 %v1921_v45, %v1849_v58 }
 0x3bf   :  { %1969 = vst [vmem:[#allocation2 + $0xb8] sm:$0xff] %v1945_v15 }
 0x3c0   :  { %2604 = shalt.err (!%p2601_p4)
}
 0x3c1   :  { %s2605_s6 = scalar_lea.hbm %s3932_s5, 3072 }
 0x3c2   :  { %p2606_p5 = scmp.ne.s32.totalorder %s3932_s5, %s2605_s6  ;;  %p2609_p6 = scmp.lt.u32.totalorder %s2605_s6, %s3932_s5 }
 0x3c4   :  { %p2611_p7 = pnand %p2609_p6, %p2606_p5 }
 0x3c6   :  { %2614 = shalt.err (!%p2611_p7)
}
 0x3c7   :  { %s2618_s10 = smov 128   ;;  %s2619_s11 = smov 8  }
 0x3c8   :  { %1981 = dma.vmem_to_hbm [thread:$0]  %s1976_s4, 3072, %s3932_s5, [#allocation3], %s2618_s10, %s2618_s10, %s2619_s11  }
 0x3c9   :  { %2615 = dma.done.wait [#allocation3], 3072  }
 0x3ca   :  { %2616 = vsyncadd [#allocation3], 4294964224 }
 0x3cb   :  { %1985 = vsyncpa [#allocation3], 1 }

</bundles_post_ra>
